<compile_context>
chip_gen: v5e
topology: v5e:2x2
jax: 0.10.0
libtpu: 0.0.40
codegen_flags: <defaults>
</compile_context>

<pallas_src>
import jax
import jax.numpy as jnp
from jax.experimental import pallas as pl
from jax.experimental.pallas import tpu as pltpu

DIM = 512          # nn.Linear(dim=512, 2048)
HIDDEN = 2048
NUM_CLASSES = 10   # stand-in for len(classtype)
LANE = 128         # TPU lane width -> class dim pre-padded to this at init


def _fcn_kernel(x_ref, w1_ref, b1_ref, w2_ref, b2_ref, o_ref):
    """Fused MLP: out = relu(x @ W1 + b1) @ W2 + b2, whole problem in VMEM."""
    # Cast activations at the MXU input only; accumulate in f32.
    x_bf = x_ref[...].astype(jnp.bfloat16)
    h = jnp.dot(x_bf, w1_ref[...], preferred_element_type=jnp.float32)
    # Bias + ReLU in f32 on the VPU (v5e has no bf16 VPU path).
    h = jnp.maximum(h + b1_ref[...], 0.0)
    # Second matmul: cast only at the MXU input, accumulate f32.
    out = jnp.dot(h.astype(w2_ref.dtype), w2_ref[...],
                  preferred_element_type=jnp.float32)
    o_ref[...] = (out + b2_ref[...]).astype(o_ref.dtype)


def _round_up(n, m):
    return (n + m - 1) // m * m


def prepare_params(w1, b1, w2, b2):
    """One-time weight prep: cast to bf16, pad class dim to a full lane.

    Call once at model-load time; fcn_forward then only reads the prepped
    (bf16 / lane-padded) copies, avoiding per-call cast/pad HBM traffic.
    """
    D, H = w1.shape
    C = w2.shape[1]
    Cp = max(_round_up(C, LANE), LANE)

    w1_b = w1.astype(jnp.bfloat16)                                  # (D, H)
    w2_p = jnp.zeros((H, Cp), jnp.bfloat16).at[:, :C].set(
        w2.astype(jnp.bfloat16))                                    # (H, Cp)
    b1_2d = b1.reshape(1, H).astype(jnp.float32)                    # (1, H)
    b2_2d = jnp.zeros((1, Cp), jnp.float32).at[:, :C].set(
        b2.astype(jnp.float32))                                     # (1, Cp)

    # Materialize now so the cast/pad never re-runs per forward call.
    return jax.tree_util.tree_map(
        jax.block_until_ready, (w1_b, b1_2d, w2_p, b2_2d)) + (C,)


def fcn_forward(x, params):
    """x: (B, C, H, W) or (B, D) float32.  Returns (B, num_classes) float32."""
    w1_b, b1_2d, w2_p, b2_2d, C = params
    B = x.shape[0]
    x2 = x.reshape(B, -1)                      # torch.flatten(x, 1)
    D = x2.shape[1]
    H = w1_b.shape[1]
    Cp = w2_p.shape[1]
    assert D == w1_b.shape[0] and H == w2_p.shape[0]

    flops = 2 * B * D * H + 2 * B * H * Cp
    bytes_accessed = (x2.size * x2.dtype.itemsize
                      + w1_b.size * 2 + b1_2d.size * 4
                      + w2_p.size * 2 + b2_2d.size * 4
                      + B * Cp * 4)

    vmem_spec = pl.BlockSpec(memory_space=pltpu.MemorySpace.VMEM)
    out = pl.pallas_call(
        _fcn_kernel,
        out_shape=jax.ShapeDtypeStruct((B, Cp), jnp.float32),
        in_specs=[vmem_spec] * 5,              # whole arrays resident in VMEM
        out_specs=vmem_spec,
        cost_estimate=pl.CostEstimate(
            flops=flops, transcendentals=0, bytes_accessed=bytes_accessed),
    )(x2, w1_b, b1_2d, w2_p, b2_2d)

    # Strip the class padding (padding lives only in the pre-prepped weights).
    return out[:, :C]


def init_params(key, dim=DIM, hidden=HIDDEN, num_classes=NUM_CLASSES):
    k1, k2, k3, k4 = jax.random.split(key, 4)
    # deterministic synthetic weights (shapes match the nn.Linear layers)
    w1 = jax.random.normal(k1, (dim, hidden), jnp.float32) * 0.02
    b1 = jax.random.normal(k2, (hidden,), jnp.float32) * 0.01
    w2 = jax.random.normal(k3, (hidden, num_classes), jnp.float32) * 0.02
    b2 = jax.random.normal(k4, (num_classes,), jnp.float32) * 0.01
    return w1, b1, w2, b2


if __name__ == "__main__":
    key = jax.random.PRNGKey(0)
    kx, kp = jax.random.split(key)

    # small NCHW input whose flattened feature size equals dim=512: 2*16*16 = 512
    x = jax.random.normal(kx, (2, 2, 16, 16), jnp.float32)
    w1, b1, w2, b2 = init_params(kp)

    params = prepare_params(w1, b1, w2, b2)    # one-time bf16 cast + lane pad
    out = fcn_forward(x, params)
    out = jax.block_until_ready(out)

    # pure-JAX f32 reference; tolerance sized for bf16 matmul inputs.
    ref = jnp.maximum(x.reshape(2, -1) @ w1 + b1, 0.0) @ w2 + b2
    assert out.shape == (2, NUM_CLASSES)
    assert jnp.allclose(out, ref, atol=3e-2, rtol=3e-2), (
        float(jnp.max(jnp.abs(out - ref))))

    print("KERNEL_OK")
</pallas_src>

<mosaic_0001>
module attributes {stable_mosaic.version = 11 : i64} {
  func.func @_fcn_kernel(%arg0: memref<2x512xf32, #tpu.memory_space<vmem>>, %arg1: memref<512x2048xbf16, #tpu.memory_space<vmem>>, %arg2: memref<1x2048xf32, #tpu.memory_space<vmem>>, %arg3: memref<2048x128xbf16, #tpu.memory_space<vmem>>, %arg4: memref<1x128xf32, #tpu.memory_space<vmem>>, %arg5: memref<2x128xf32, #tpu.memory_space<vmem>>) attributes {dimension_semantics = [], scalar_prefetch = 0 : i64, scratch_operands = 0 : i64, tpu.core_type = #tpu.core_type<tc>} {
    %c0 = arith.constant 0 : index
    %c0_0 = arith.constant 0 : index
    %0 = vector.load %arg0[%c0, %c0_0] : memref<2x512xf32, #tpu.memory_space<vmem>>, vector<2x512xf32>
    %1 = arith.truncf %0 : vector<2x512xf32> to vector<2x512xbf16>
    %c0_1 = arith.constant 0 : index
    %c0_2 = arith.constant 0 : index
    %2 = vector.load %arg1[%c0_1, %c0_2] : memref<512x2048xbf16, #tpu.memory_space<vmem>>, vector<512x2048xbf16>
    %cst = arith.constant dense<0.000000e+00> : vector<2x2048xf32>
    %3 = tpu.matmul %1, %2, %cst {dimension_numbers = #tpu.dot_dimension_numbers<[1], [0], [0], [1], [0, 0, 1, 1], [], []>} : vector<2x512xbf16>, vector<512x2048xbf16>, vector<2x2048xf32> -> vector<2x2048xf32>
    %c0_3 = arith.constant 0 : index
    %c0_4 = arith.constant 0 : index
    %4 = vector.load %arg2[%c0_3, %c0_4] : memref<1x2048xf32, #tpu.memory_space<vmem>>, vector<1x2048xf32>
    %5 = vector.broadcast %4 : vector<1x2048xf32> to vector<2x2048xf32>
    %6 = arith.addf %3, %5 : vector<2x2048xf32>
    %cst_5 = arith.constant 0.000000e+00 : f32
    %7 = vector.broadcast %cst_5 : f32 to vector<2x2048xf32>
    %8 = arith.maximumf %6, %7 : vector<2x2048xf32>
    %9 = arith.truncf %8 : vector<2x2048xf32> to vector<2x2048xbf16>
    %c0_6 = arith.constant 0 : index
    %c0_7 = arith.constant 0 : index
    %10 = vector.load %arg3[%c0_6, %c0_7] : memref<2048x128xbf16, #tpu.memory_space<vmem>>, vector<2048x128xbf16>
    %cst_8 = arith.constant dense<0.000000e+00> : vector<2x128xf32>
    %11 = tpu.matmul %9, %10, %cst_8 {dimension_numbers = #tpu.dot_dimension_numbers<[1], [0], [0], [1], [0, 0, 1, 1], [], []>} : vector<2x2048xbf16>, vector<2048x128xbf16>, vector<2x128xf32> -> vector<2x128xf32>
    %c0_9 = arith.constant 0 : index
    %c0_10 = arith.constant 0 : index
    %12 = vector.load %arg4[%c0_9, %c0_10] : memref<1x128xf32, #tpu.memory_space<vmem>>, vector<1x128xf32>
    %13 = vector.broadcast %12 : vector<1x128xf32> to vector<2x128xf32>
    %14 = arith.addf %11, %13 : vector<2x128xf32>
    %c0_11 = arith.constant 0 : index
    %c0_12 = arith.constant 0 : index
    %15 = vector.load %arg5[%c0_11, %c0_12] : memref<2x128xf32, #tpu.memory_space<vmem>>, vector<2x128xf32>
    tpu.vector_store %arg5[%c0_11, %c0_12], %14 {strides = array<i32>} : memref<2x128xf32, #tpu.memory_space<vmem>>, vector<2x128xf32>,
    return
  }
}

</mosaic_0001>

<bundles_post_ra>
// kernel: tpu_custom_call.1
= control target key start
LH: loop header
LB: loop body
LE: loop exit
PB: predicated region body
PF: predicated region fallthrough
CT: control target
= control target key end

     0   :  { %10 = vsyncpa [#allocation3], 0  ;;  %s8904_s0 = inlined_call_operand.hbm [shape: f32[2,512], index: 0, kind: input, shape index: {}]   ;;  %s8905_s1 = inlined_call_operand.hbm [shape: bf16[512,2048], index: 1, kind: input, shape index: {}]   ;;  %s8906_s2 = inlined_call_operand.hbm [shape: f32[1,2048], index: 2, kind: input, shape index: {}]   ;;  %s8907_s3 = inlined_call_operand.hbm [shape: bf16[2048,128], index: 3, kind: input, shape index: {}]   ;;  %s8908_s4 = inlined_call_operand.hbm [shape: f32[1,128], index: 4, kind: input, shape index: {}]   ;;  %s8909_s5 = inlined_call_operand.hbm [shape: f32[2,128], index: 5, kind: output, shape index: {}]  }
   0x1   :  { %11 = vsyncpa [#allocation6], 0 }
   0x2   :  { %12 = vsyncpa [#allocation9], 0  ;;  %s29_s20 = sshll.u32 %s8905_s1, 4  ;;  %s30_s20 = int_to_ptr.hbm [resolvable:$true] %s29_s20 }
   0x3   :  { %13 = vsyncpa [#allocation4], 0  ;;  %s8700_s21 = smov [#allocation5]   ;;  %s53_s25 = sshll.u32 %s8907_s3, 4  ;;  %s54_s25 = int_to_ptr.hbm [resolvable:$true] %s53_s25 }
   0x4   :  { %s31_s22 = sshll.u32 %s8700_s21, 4  ;;  %s8701_s26 = smov 1024   ;;  %s32_s22 = int_to_ptr.vmem [resolvable:$true] %s31_s22 }
   0x5   :  { %s8702_s27 = smov 64   ;;  %s8703_s28 = smov [#allocation8]  }
   0x6   :  { %37 = dma.hbm_to_vmem [thread:$0]  %s30_s20, 65536, %s32_s22, [#allocation6], %s8701_s26, %s8701_s26, %s8702_s27  }
   0x7   :  { %s55_s29 = sshll.u32 %s8703_s28, 4  ;;  %s19_s1 = sshll.u32 %s8904_s0, 4  ;;  %s56_s29 = int_to_ptr.vmem [resolvable:$true] %s55_s29  ;;  %s20_s1 = int_to_ptr.hbm [resolvable:$true] %s19_s1 }
   0x8   :  { %s8704_s7 = smov 4   ;;  %s8705_s8 = smov [#allocation2]  }
   0x9   :  { %61 = dma.hbm_to_vmem [thread:$0]  %s54_s25, 16384, %s56_s29, [#allocation9], %s8702_s27, %s8702_s27, %s8704_s7  }
   0xa   :  { %s21_s9 = sshll.u32 %s8705_s8, 4  ;;  %s43_s3 = sshll.u32 %s8906_s2, 4  ;;  %s22_s9 = int_to_ptr.vmem [resolvable:$true] %s21_s9  ;;  %s44_s3 = int_to_ptr.hbm [resolvable:$true] %s43_s3 }
   0xb   :  { %24 = dma.hbm_to_vmem [thread:$0]  %s20_s1, 128, %s22_s9, [#allocation3]  }
   0xc   :  { %s67_s14 = sshll.u32 %s8908_s4, 4  ;;  %s8706_s15 = smov [#allocation7]   ;;  %s68_s14 = int_to_ptr.hbm [resolvable:$true] %s67_s14 }
   0xd   :  { %s45_s16 = sshll.u32 %s8706_s15, 4  ;;  %s8707_s0 = smov [#allocation10]   ;;  %s46_s16 = int_to_ptr.vmem [resolvable:$true] %s45_s16 }
   0xe   :  { %48 = dma.hbm_to_vmem [thread:$0]  %s44_s3, 256, %s46_s16, [#allocation6]  }
   0xf   :  { %s69_s17 = sshll.u32 %s8707_s0, 4  ;;  %s70_s17 = int_to_ptr.vmem [resolvable:$true] %s69_s17 }
  0x10   :  { %72 = dma.hbm_to_vmem [thread:$0]  %s68_s14, 16, %s70_s17, [#allocation9]  }
  0x11   :  { %8692 = dma.done.wait [#allocation3], 128  }
  0x12   :  { %8693 = vsyncadd [#allocation3], 4294967168 }
  0x13   :  { %8694 = dma.done.wait [#allocation6], 65792  }
  0x14   :  { %8695 = vsyncadd [#allocation6], 4294901504 }
  0x15   :  { %8696 = dma.done.wait [#allocation9], 16400  }
  0x16   :  { %8697 = vsyncadd [#allocation9], 4294950896  ;;  %v5786_v0 = vld [vmem:[#allocation5 + $0x380] sm:$0xf]  ;;  %s8708_s2 = smov [#allocation11]   ;;  %s5324_s20 = sshll.u32 %s8909_s5, 4  ;;  %s5325_s20 = int_to_ptr.hbm [resolvable:$true] %s5324_s20 }
  0x17   :  { %v8016_v1 = vld [vmem:[#allocation5 + $0x3bc] sm:$0xf0]  ;;  %s5322_s4 = sshll.u32 %s8708_s2, 4  ;;  %s5323_s4 = int_to_ptr.vmem [resolvable:$true] %s5322_s4 }
  0x18   :  { %v6298_v2 = vld [vmem:[#allocation5 + $0x780] sm:$0xf]  ;;  %v5787_v3 = vor.u32 %v8016_v1, %v5786_v0 }
  0x19   :  { %v8144_v4 = vld [vmem:[#allocation5 + $0x7bc] sm:$0xf0] }
  0x1a   :  { %v6810_v5 = vld [vmem:[#allocation5 + $0xb80] sm:$0xf]  ;;  %v6299_v7 = vor.u32 %v8144_v4, %v6298_v2  ;;  %3216 = vmatpush.bf16.msra.mxu0 %v5787_v3 }
  0x1b   :  { %v8272_v6 = vld [vmem:[#allocation5 + $0xbbc] sm:$0xf0] }
  0x1c   :  { %v6811_v8 = vor.u32 %v8272_v6, %v6810_v5  ;;  %v7322_v9 = vld [vmem:[#allocation5 + $0xf80] sm:$0xf]  ;;  %3229 = vmatpush.bf16.msra.mxu1 %v6299_v7 }
  0x1d   :  { %v8400_v10 = vld [vmem:[#allocation5 + $0xfbc] sm:$0xf0] }
  0x1e   :  { %v5722_v11 = vld [vmem:[#allocation5 + $0x300] sm:$0xf]  ;;  %v7323_v12 = vor.u32 %v8400_v10, %v7322_v9  ;;  %3242 = vmatpush.bf16.msra.mxu2 %v6811_v8 }
  0x1f   :  { %v8000_v13 = vld [vmem:[#allocation5 + $0x33c] sm:$0xf0] }
  0x20   :  { %v6234_v14 = vld [vmem:[#allocation5 + $0x700] sm:$0xf]  ;;  %v5723_v16 = vor.u32 %v8000_v13, %v5722_v11  ;;  %3255 = vmatpush.bf16.msra.mxu3 %v7323_v12 }
  0x21   :  { %v8128_v15 = vld [vmem:[#allocation5 + $0x73c] sm:$0xf0] }
  0x22   :  { %v6235_v17 = vor.u32 %v8128_v15, %v6234_v14  ;;  %v6746_v18 = vld [vmem:[#allocation5 + $0xb00] sm:$0xf]  ;;  %3217 = vmatpush.bf16.msra.mxu0 %v5723_v16 }
  0x23   :  { %v8256_v19 = vld [vmem:[#allocation5 + $0xb3c] sm:$0xf0] }
  0x24   :  { %v7258_v20 = vld [vmem:[#allocation5 + $0xf00] sm:$0xf]  ;;  %v6747_v21 = vor.u32 %v8256_v19, %v6746_v18  ;;  %3230 = vmatpush.bf16.msra.mxu1 %v6235_v17 }
  0x25   :  { %v8384_v22 = vld [vmem:[#allocation5 + $0xf3c] sm:$0xf0] }
  0x26   :  { %v5658_v23 = vld [vmem:[#allocation5 + $0x280] sm:$0xf]  ;;  %v7259_v25 = vor.u32 %v8384_v22, %v7258_v20  ;;  %3243 = vmatpush.bf16.msra.mxu2 %v6747_v21 }
  0x27   :  { %v7984_v24 = vld [vmem:[#allocation5 + $0x2bc] sm:$0xf0] }
  0x28   :  { %v6170_v26 = vld [vmem:[#allocation5 + $0x680] sm:$0xf]  ;;  %v5659_v29 = vor.u32 %v7984_v24, %v5658_v23  ;;  %3256 = vmatpush.bf16.msra.mxu3 %v7259_v25 }
  0x29   :  { %v8112_v27 = vld [vmem:[#allocation5 + $0x6bc] sm:$0xf0] }
  0x2a   :  { %v6682_v28 = vld [vmem:[#allocation5 + $0xa80] sm:$0xf]  ;;  %v6171_v33 = vor.u32 %v8112_v27, %v6170_v26  ;;  %3218 = vmatpush.bf16.msra.mxu0 %v5659_v29  ;;  %v5788_v29 = vld [vmem:[#allocation5 + $0x3c0] sm:$0xf0] }
  0x2b   :  { %v8240_v30 = vld [vmem:[#allocation5 + $0xabc] sm:$0xf0] }
  0x2c   :  { %v7194_v31 = vld [vmem:[#allocation5 + $0xe80] sm:$0xf]  ;;  %v6683_v34 = vor.u32 %v8240_v30, %v6682_v28  ;;  %3231 = vmatpush.bf16.msra.mxu1 %v6171_v33  ;;  %v8008_v28 = vld [vmem:[#allocation5 + $0x384] sm:$0xf] }
  0x2d   :  { %v8368_v32 = vld [vmem:[#allocation5 + $0xebc] sm:$0xf0]  ;;  %v8136_v30 = vld [vmem:[#allocation5 + $0x784] sm:$0xf] }
  0x2e   :  { %v5594_v35 = vld [vmem:[#allocation5 + $0x200] sm:$0xf]  ;;  %v7195_v38 = vor.u32 %v8368_v32, %v7194_v31  ;;  %3244 = vmatpush.bf16.msra.mxu2 %v6683_v34  ;;  %v6300_v32 = vld [vmem:[#allocation5 + $0x7c0] sm:$0xf0] }
  0x2f   :  { %v7968_v36 = vld [vmem:[#allocation5 + $0x23c] sm:$0xf0]  ;;  %v8264_v33 = vld [vmem:[#allocation5 + $0xb84] sm:$0xf] }
  0x30   :  { %v6106_v37 = vld [vmem:[#allocation5 + $0x600] sm:$0xf]  ;;  %v5595_v44 = vor.u32 %v7968_v36, %v5594_v35  ;;  %3257 = vmatpush.bf16.msra.mxu3 %v7195_v38  ;;  %v6812_v34 = vld [vmem:[#allocation5 + $0xbc0] sm:$0xf0] }
  0x31   :  { %v8096_v39 = vld [vmem:[#allocation5 + $0x63c] sm:$0xf0]  ;;  %v7324_v38 = vld [vmem:[#allocation5 + $0xfc0] sm:$0xf0] }
  0x32   :  { %v6618_v40 = vld [vmem:[#allocation5 + $0xa00] sm:$0xf]  ;;  %v6107_v45 = vor.u32 %v8096_v39, %v6106_v37  ;;  %3219 = vmatpush.bf16.msra.mxu0 %v5595_v44  ;;  %v8392_v37 = vld [vmem:[#allocation5 + $0xf84] sm:$0xf] }
  0x33   :  { %v8224_v41 = vld [vmem:[#allocation5 + $0xa3c] sm:$0xf0]  ;;  %v5724_v44 = vld [vmem:[#allocation5 + $0x340] sm:$0xf0] }
  0x34   :  { %v7130_v42 = vld [vmem:[#allocation5 + $0xe00] sm:$0xf]  ;;  %v6619_v46 = vor.u32 %v8224_v41, %v6618_v40  ;;  %3232 = vmatpush.bf16.msra.mxu1 %v6107_v45  ;;  %v5791_v40 = vor.u32 %v8008_v28, %v5788_v29  ;;  %v6303_v41 = vor.u32 %v8136_v30, %v6300_v32  ;;  %v8120_v45 = vld [vmem:[#allocation5 + $0x704] sm:$0xf] }
  0x35   :  { %v8352_v43 = vld [vmem:[#allocation5 + $0xe3c] sm:$0xf0]  ;;  %v8056_v29 = vld [vmem:[#allocation5 + $0x504] sm:$0xf] }
  0x36   :  { %v5530_v47 = vld [vmem:[#allocation5 + $0x180] sm:$0xf]  ;;  %v7131_v50 = vor.u32 %v8352_v43, %v7130_v42  ;;  %3245 = vmatpush.bf16.msra.mxu2 %v6619_v46  ;;  %v6815_v42 = vor.u32 %v8264_v33, %v6812_v34  ;;  %v7992_v43 = vld [vmem:[#allocation5 + $0x304] sm:$0xf]  ;;  %v7327_v46 = vor.u32 %v8392_v37, %v7324_v38 }
  0x37   :  { %v7952_v48 = vld [vmem:[#allocation5 + $0x1bc] sm:$0xf0]  ;;  %v5980_v38 = vld [vmem:[#allocation5 + $0x540] sm:$0xf0] }
  0x38   :  { %v6042_v49 = vld [vmem:[#allocation5 + $0x580] sm:$0xf]  ;;  %v5531_v56 = vor.u32 %v7952_v48, %v5530_v47  ;;  %3258 = vmatpush.bf16.msra.mxu3 %v7131_v50  ;;  %v6236_v47 = vld [vmem:[#allocation5 + $0x740] sm:$0xf0] }
  0x39   :  { %v8080_v51 = vld [vmem:[#allocation5 + $0x5bc] sm:$0xf0]  ;;  %v8248_v48 = vld [vmem:[#allocation5 + $0xb04] sm:$0xf] }
  0x3a   :  { %v6554_v52 = vld [vmem:[#allocation5 + $0x980] sm:$0xf]  ;;  %v6043_v57 = vor.u32 %v8080_v51, %v6042_v49  ;;  %3220 = vmatpush.bf16.msra.mxu0 %v5531_v56  ;;  %v6748_v49 = vld [vmem:[#allocation5 + $0xb40] sm:$0xf0] }
  0x3b   :  { %v8208_v53 = vld [vmem:[#allocation5 + $0x9bc] sm:$0xf0]  ;;  %v8376_v50 = vld [vmem:[#allocation5 + $0xf04] sm:$0xf] }
  0x3c   :  { %v7066_v54 = vld [vmem:[#allocation5 + $0xd80] sm:$0xf]  ;;  %v6555_v58 = vor.u32 %v8208_v53, %v6554_v52  ;;  %3233 = vmatpush.bf16.msra.mxu1 %v6043_v57  ;;  %v7260_v51 = vld [vmem:[#allocation5 + $0xf40] sm:$0xf0]  ;;  %v5727_v52 = vor.u32 %v7992_v43, %v5724_v44  ;;  %v6239_v53 = vor.u32 %v8120_v45, %v6236_v47 }
  0x3d   :  { %v8336_v55 = vld [vmem:[#allocation5 + $0xdbc] sm:$0xf0]  ;;  %v5660_v56 = vld [vmem:[#allocation5 + $0x2c0] sm:$0xf0] }
  0x3e   :  { %v5466_v59 = vld [vmem:[#allocation5 + $0x100] sm:$0xf]  ;;  %v7067_v62 = vor.u32 %v8336_v55, %v7066_v54  ;;  %3246 = vmatpush.bf16.msra.mxu2 %v6555_v58  ;;  %v6751_v54 = vor.u32 %v8248_v48, %v6748_v49  ;;  %v7976_v55 = vld [vmem:[#allocation5 + $0x284] sm:$0xf]  ;;  %v7263_v58 = vor.u32 %v8376_v50, %v7260_v51 }
  0x3f   :  { %v7936_v60 = vld [vmem:[#allocation5 + $0x13c] sm:$0xf0]  ;;  %v8104_v57 = vld [vmem:[#allocation5 + $0x684] sm:$0xf] }
  0x40   :  { %v5978_v61 = vld [vmem:[#allocation5 + $0x500] sm:$0xf]  ;;  %v5467_v4 = vor.u32 %v7936_v60, %v5466_v59  ;;  %3259 = vmatpush.bf16.msra.mxu3 %v7067_v62  ;;  %v6172_v59 = vld [vmem:[#allocation5 + $0x6c0] sm:$0xf0] }
  0x41   :  { %v8064_v63 = vld [vmem:[#allocation5 + $0x53c] sm:$0xf0]  ;;  %v8232_v60 = vld [vmem:[#allocation5 + $0xa84] sm:$0xf] }
  0x42   :  { %v6490_v0 = vld [vmem:[#allocation5 + $0x900] sm:$0xf]  ;;  %v5979_v5 = vor.u32 %v8064_v63, %v5978_v61  ;;  %3221 = vmatpush.bf16.msra.mxu0 %v5467_v4  ;;  %v6684_v61 = vld [vmem:[#allocation5 + $0xac0] sm:$0xf0] }
  0x43   :  { %v8192_v1 = vld [vmem:[#allocation5 + $0x93c] sm:$0xf0]  ;;  %v8360_v62 = vld [vmem:[#allocation5 + $0xe84] sm:$0xf]  ;;  %v6687_v4 = vor.u32 %v8232_v60, %v6684_v61 }
  0x44   :  { %v7002_v2 = vld [vmem:[#allocation5 + $0xd00] sm:$0xf]  ;;  %v6491_v6 = vor.u32 %v8192_v1, %v6490_v0  ;;  %3234 = vmatpush.bf16.msra.mxu1 %v5979_v5  ;;  %v7196_v63 = vld [vmem:[#allocation5 + $0xec0] sm:$0xf0]  ;;  %v5663_v0 = vor.u32 %v7976_v55, %v5660_v56 }
  0x45   :  { %v8320_v3 = vld [vmem:[#allocation5 + $0xd3c] sm:$0xf0]  ;;  %v7960_v1 = vld [vmem:[#allocation5 + $0x204] sm:$0xf] }
  0x46   :  { %v5402_v7 = vld [vmem:[#allocation5 + $0x80] sm:$0xf]  ;;  %v7003_v10 = vor.u32 %v8320_v3, %v7002_v2  ;;  %3247 = vmatpush.bf16.msra.mxu2 %v6491_v6  ;;  %v93_v2 = vld [vmem:[#allocation2] sm:$0xff]  ;;  %v6175_v3 = vor.u32 %v8104_v57, %v6172_v59  ;;  %v5596_v5 = vld [vmem:[#allocation5 + $0x240] sm:$0xf0] }
  0x47   :  { %v7920_v8 = vld [vmem:[#allocation5 + $0xbc] sm:$0xf0]  ;;  %v8088_v6 = vld [vmem:[#allocation5 + $0x604] sm:$0xf]  ;;  %95 = vst [vmem:[#allocation1] ss:$4 sm:$0xff] %v93_v2 }
  0x48   :  { %v5914_v9 = vld [vmem:[#allocation5 + $0x480] sm:$0xf]  ;;  %v5403_v16 = vor.u32 %v7920_v8, %v5402_v7  ;;  %3260 = vmatpush.bf16.msra.mxu3 %v7003_v10  ;;  %v7199_v7 = vor.u32 %v8360_v62, %v7196_v63  ;;  %v6108_v8 = vld [vmem:[#allocation5 + $0x640] sm:$0xf0] }
  0x49   :  { %v8048_v11 = vld [vmem:[#allocation5 + $0x4bc] sm:$0xf0]  ;;  %v6620_v10 = vld [vmem:[#allocation5 + $0xa40] sm:$0xf0] }
  0x4a   :  { %v6426_v12 = vld [vmem:[#allocation5 + $0x880] sm:$0xf]  ;;  %v5915_v19 = vor.u32 %v8048_v11, %v5914_v9  ;;  %3222 = vmatpush.bf16.msra.mxu0 %v5403_v16  ;;  %v8216_v9 = vld [vmem:[#allocation5 + $0xa04] sm:$0xf] }
  0x4b   :  { %v8176_v13 = vld [vmem:[#allocation5 + $0x8bc] sm:$0xf0]  ;;  %v8344_v11 = vld [vmem:[#allocation5 + $0xe04] sm:$0xf]  ;;  %v6623_v16 = vor.u32 %v8216_v9, %v6620_v10  ;;  %v8145_v9 = vld [vmem:[#allocation5 + $0x7c4] sm:$0xf0] }
  0x4c   :  { %v6938_v14 = vld [vmem:[#allocation5 + $0xc80] sm:$0xf]  ;;  %v6427_v20 = vor.u32 %v8176_v13, %v6426_v12  ;;  %3235 = vmatpush.bf16.msra.mxu1 %v5915_v19  ;;  %v7132_v12 = vld [vmem:[#allocation5 + $0xe40] sm:$0xf0]  ;;  %v5599_v13 = vor.u32 %v7960_v1, %v5596_v5  ;;  %v5794_v5 = vld [vmem:[#allocation5 + $0x388] sm:$0xf] }
  0x4d   :  { %v8304_v15 = vld [vmem:[#allocation5 + $0xcbc] sm:$0xf0]  ;;  %v6044_v19 = vld [vmem:[#allocation5 + $0x5c0] sm:$0xf0]  ;;  %v6818_v10 = vld [vmem:[#allocation5 + $0xb88] sm:$0xf] }
  0x4e   :  { %v5338_v17 = vld [vmem:[#allocation5] sm:$0xf]  ;;  %v6939_v24 = vor.u32 %v8304_v15, %v6938_v14  ;;  %3248 = vmatpush.bf16.msra.mxu2 %v6427_v20  ;;  %v7944_v14 = vld [vmem:[#allocation5 + $0x184] sm:$0xf]  ;;  %v6111_v15 = vor.u32 %v8088_v6, %v6108_v8  ;;  %v7135_v20 = vor.u32 %v8344_v11, %v7132_v12  ;;  %v8017_v6 = vld [vmem:[#allocation5 + $0x3c4] sm:$0xf0] }
  0x4f   :  { %v7904_v18 = vld [vmem:[#allocation5 + $0x3c] sm:$0xf0]  ;;  %v8312_v43 = vld [vmem:[#allocation5 + $0xd04] sm:$0xf]  ;;  %v8273_v11 = vld [vmem:[#allocation5 + $0xbc4] sm:$0xf0] }
  0x50   :  { %v5850_v21 = vld [vmem:[#allocation5 + $0x400] sm:$0xf]  ;;  %v5339_v31 = vor.u32 %v7904_v18, %v5338_v17  ;;  %3261 = vmatpush.bf16.msra.mxu3 %v6939_v24  ;;  %v5532_v17 = vld [vmem:[#allocation5 + $0x1c0] sm:$0xf0] }
  0x51   :  { %v8032_v22 = vld [vmem:[#allocation5 + $0x43c] sm:$0xf0]  ;;  %v8072_v18 = vld [vmem:[#allocation5 + $0x584] sm:$0xf] }
  0x52   :  { %v6362_v23 = vld [vmem:[#allocation5 + $0x800] sm:$0xf]  ;;  %v5851_v35 = vor.u32 %v8032_v22, %v5850_v21  ;;  %3223 = vmatpush.bf16.msra.mxu0 %v5339_v31  ;;  %v8200_v21 = vld [vmem:[#allocation5 + $0x984] sm:$0xf]  ;;  %v6047_v28 = vor.u32 %v8072_v18, %v6044_v19  ;;  %v6819_v19 = vor.u32 %v8273_v11, %v6818_v10  ;;  %v5986_v10 = vld [vmem:[#allocation5 + $0x508] sm:$0xf] }
  0x53   :  { %v8160_v25 = vld [vmem:[#allocation5 + $0x83c] sm:$0xf0]  ;;  %v6556_v22 = vld [vmem:[#allocation5 + $0x9c0] sm:$0xf0] }
  0x54   :  { %v6874_v26 = vld [vmem:[#allocation5 + $0xc00] sm:$0xf]  ;;  %v6363_v36 = vor.u32 %v8160_v25, %v6362_v23  ;;  %3236 = vmatpush.bf16.msra.mxu1 %v5851_v35  ;;  %v8328_v23 = vld [vmem:[#allocation5 + $0xd84] sm:$0xf]  ;;  %v6559_v32 = vor.u32 %v8200_v21, %v6556_v22  ;;  %v8001_v21 = vld [vmem:[#allocation5 + $0x344] sm:$0xf0] }
  0x55   :  { %v8288_v27 = vld [vmem:[#allocation5 + $0xc3c] sm:$0xf0]  ;;  %v7068_v24 = vld [vmem:[#allocation5 + $0xdc0] sm:$0xf0]  ;;  %v6242_v22 = vld [vmem:[#allocation5 + $0x708] sm:$0xf] }
  0x56   :  { %v6875_v39 = vor.u32 %v8288_v27, %v6874_v26  ;;  %3249 = vmatpush.bf16.msra.mxu2 %v6363_v36  ;;  %3268 = vmatpush.bf16.msrb.mxu0 %v5791_v40  ;;  %v7928_v25 = vld [vmem:[#allocation5 + $0x104] sm:$0xf]  ;;  %v5535_v27 = vor.u32 %v7944_v14, %v5532_v17  ;;  %v96_v31 = vld.sshfl [vmem:[#allocation1] sm:$0xff pattern:$0x73625140]  ;;  %v7071_v37 = vor.u32 %v8328_v23, %v7068_v24 }
  0x57   :  { %v5468_v26 = vld [vmem:[#allocation5 + $0x140] sm:$0xf0]  ;;  %v8756_v34 = vpack.c.bf16 %v96_v31, %v96_v31  ;;  %v99_v35 = vld.sshfl [vmem:[#allocation1 + $0x18] sm:$0xff pattern:$0x73625140]  ;;  %v5795_v17 = vor.u32 %v8017_v6, %v5794_v5 }
  0x58   :  { %3262 = vmatpush.bf16.msra.mxu3 %v6875_v39  ;;  %3281 = vmatpush.bf16.msrb.mxu1 %v6303_v41  ;;  %v98_v30 = vld.sshfl [vmem:[#allocation1 + $0x10] sm:$0xff pattern:$0x73625140]  ;;  %v97_v36 = vld.sshfl [vmem:[#allocation1 + $0x8] sm:$0xff pattern:$0x73625140]  ;;  %v8758_v41 = vpack.c.bf16 %v99_v35, %v99_v35  ;;  %v5471_v45 = vor.u32 %v7928_v25, %v5468_v26 }
  0x59   :  { %v8754_v33 = vpack.c.bf16 %v98_v30, %v98_v30  ;;  %v8184_v39 = vld [vmem:[#allocation5 + $0x904] sm:$0xf]  ;;  %3224 = vmatmul.bf16.vlgmr.msra.gmra.mxu0 %v8756_v34  ;;  %v7330_v14 = vld [vmem:[#allocation5 + $0xf88] sm:$0xf] }
  0x5a   :  { %3294 = vmatpush.bf16.msrb.mxu2 %v6815_v42  ;;  %3269 = vmatpush.bf16.msrb.mxu0 %v5727_v52  ;;  %v6492_v40 = vld [vmem:[#allocation5 + $0x940] sm:$0xf0]  ;;  %v8760_v42 = vpack.c.bf16 %v97_v36, %v97_v36  ;;  %v8129_v24 = vld [vmem:[#allocation5 + $0x744] sm:$0xf0] }
  0x5b   :  { %v7004_v44 = vld [vmem:[#allocation5 + $0xd40] sm:$0xf0]  ;;  %3250 = vmatmul.bf16.vlgmr.msra.gmra.mxu2 %v8754_v33  ;;  %3263 = vmatmul.bf16.vlgmr.msra.gmra.mxu3 %v8758_v41  ;;  %v6495_v47 = vor.u32 %v8184_v39, %v6492_v40  ;;  %v6754_v25 = vld [vmem:[#allocation5 + $0xb08] sm:$0xf]  ;;  %v6243_v30 = vor.u32 %v8129_v24, %v6242_v22 }
  0x5c   :  { %3307 = vmatpush.bf16.msrb.mxu3 %v7327_v46  ;;  %3282 = vmatpush.bf16.msrb.mxu1 %v6239_v53  ;;  %v5983_v46 = vor.u32 %v8056_v29, %v5980_v38  ;;  %v7912_v48 = vld [vmem:[#allocation5 + $0x84] sm:$0xf]  ;;  %v7007_v51 = vor.u32 %v8312_v43, %v7004_v44  ;;  %v8257_v26 = vld [vmem:[#allocation5 + $0xb44] sm:$0xf0] }
  0x5d   :  { %v5404_v49 = vld [vmem:[#allocation5 + $0xc0] sm:$0xf0]  ;;  %3237 = vmatmul.bf16.vlgmr.msra.gmra.mxu1 %v8760_v42  ;;  %v6755_v31 = vor.u32 %v8257_v26, %v6754_v25  ;;  %v7985_v35 = vld [vmem:[#allocation5 + $0x2c4] sm:$0xf0] }
  0x5e   :  { %3295 = vmatpush.bf16.msrb.mxu2 %v6751_v54  ;;  %3270 = vmatpush.bf16.msrb.mxu0 %v5663_v0  ;;  %v8040_v50 = vld [vmem:[#allocation5 + $0x484] sm:$0xf]  ;;  %v5407_v57 = vor.u32 %v7912_v48, %v5404_v49  ;;  %v6178_v36 = vld [vmem:[#allocation5 + $0x688] sm:$0xf] }
  0x5f   :  { %v5916_v52 = vld [vmem:[#allocation5 + $0x4c0] sm:$0xf0]  ;;  %v8113_v38 = vld [vmem:[#allocation5 + $0x6c4] sm:$0xf0] }
  0x60   :  { %3308 = vmatpush.bf16.msrb.mxu3 %v7263_v58  ;;  %3283 = vmatpush.bf16.msrb.mxu1 %v6175_v3  ;;  %v8168_v53 = vld [vmem:[#allocation5 + $0x884] sm:$0xf]  ;;  %v5919_v60 = vor.u32 %v8040_v50, %v5916_v52  ;;  %v6690_v39 = vld [vmem:[#allocation5 + $0xa88] sm:$0xf] }
  0x61   :  { %v6428_v54 = vld [vmem:[#allocation5 + $0x8c0] sm:$0xf0]  ;;  %v8241_v40 = vld [vmem:[#allocation5 + $0xac4] sm:$0xf0] }
  0x62   :  { %3296 = vmatpush.bf16.msrb.mxu2 %v6687_v4  ;;  %3271 = vmatpush.bf16.msrb.mxu0 %v5599_v13  ;;  %v8296_v55 = vld [vmem:[#allocation5 + $0xc84] sm:$0xf]  ;;  %v6431_v61 = vor.u32 %v8168_v53, %v6428_v54  ;;  %v7202_v43 = vld [vmem:[#allocation5 + $0xe88] sm:$0xf] }
  0x63   :  { %v6940_v56 = vld [vmem:[#allocation5 + $0xcc0] sm:$0xf0]  ;;  %v8369_v44 = vld [vmem:[#allocation5 + $0xec4] sm:$0xf0] }
  0x64   :  { %3309 = vmatpush.bf16.msrb.mxu3 %v7199_v7  ;;  %3284 = vmatpush.bf16.msrb.mxu1 %v6111_v15  ;;  %v7896_v58 = vld [vmem:[#allocation5 + $0x4] sm:$0xf]  ;;  %v6943_v1 = vor.u32 %v8296_v55, %v6940_v56  ;;  %v6306_v7 = vld [vmem:[#allocation5 + $0x788] sm:$0xf] }
  0x65   :  { %v5340_v59 = vld [vmem:[#allocation5 + $0x40] sm:$0xf0]  ;;  %v8401_v15 = vld [vmem:[#allocation5 + $0xfc4] sm:$0xf0]  ;;  %v6307_v18 = vor.u32 %v8145_v9, %v6306_v7 }
  0x66   :  { %3297 = vmatpush.bf16.msrb.mxu2 %v6623_v16  ;;  %3272 = vmatpush.bf16.msrb.mxu0 %v5535_v27  ;;  %v8024_v62 = vld [vmem:[#allocation5 + $0x404] sm:$0xf]  ;;  %v5343_v8 = vor.u32 %v7896_v58, %v5340_v59  ;;  %v7331_v23 = vor.u32 %v8401_v15, %v7330_v14  ;;  %v7266_v27 = vld [vmem:[#allocation5 + $0xf08] sm:$0xf] }
  0x67   :  { %v5852_v63 = vld [vmem:[#allocation5 + $0x440] sm:$0xf0]  ;;  %v5602_v48 = vld [vmem:[#allocation5 + $0x208] sm:$0xf] }
  0x68   :  { %3310 = vmatpush.bf16.msrb.mxu3 %v7135_v20  ;;  %3285 = vmatpush.bf16.msrb.mxu1 %v6047_v28  ;;  %v8152_v0 = vld [vmem:[#allocation5 + $0x804] sm:$0xf]  ;;  %v5855_v12 = vor.u32 %v8024_v62, %v5852_v63  ;;  %v5730_v20 = vld [vmem:[#allocation5 + $0x308] sm:$0xf] }
  0x69   :  { %v6364_v2 = vld [vmem:[#allocation5 + $0x840] sm:$0xf0]  ;;  %v8385_v28 = vld [vmem:[#allocation5 + $0xf44] sm:$0xf0]  ;;  %v5731_v29 = vor.u32 %v8001_v21, %v5730_v20 }
  0x6a   :  { %3298 = vmatpush.bf16.msrb.mxu2 %v6559_v32  ;;  %3273 = vmatpush.bf16.msrb.mxu0 %v5471_v45  ;;  %v8280_v3 = vld [vmem:[#allocation5 + $0xc04] sm:$0xf]  ;;  %v6367_v13 = vor.u32 %v8152_v0, %v6364_v2  ;;  %v5666_v32 = vld [vmem:[#allocation5 + $0x288] sm:$0xf] }
  0x6b   :  { %v6876_v4 = vld [vmem:[#allocation5 + $0xc40] sm:$0xf0]  ;;  %v5667_v45 = vor.u32 %v7985_v35, %v5666_v32  ;;  %v7969_v49 = vld [vmem:[#allocation5 + $0x244] sm:$0xf0] }
  0x6c   :  { %3311 = vmatpush.bf16.msrb.mxu3 %v7071_v37  ;;  %3286 = vmatpush.bf16.msrb.mxu1 %v5983_v46  ;;  %v6879_v16 = vor.u32 %v8280_v3, %v6876_v4  ;;  %v7267_v37 = vor.u32 %v8385_v28, %v7266_v27  ;;  %v6179_v46 = vor.u32 %v8113_v38, %v6178_v36  ;;  %v6114_v50 = vld [vmem:[#allocation5 + $0x608] sm:$0xf] }
  0x6d   :  { %v8097_v52 = vld [vmem:[#allocation5 + $0x644] sm:$0xf0] }
  0x6e   :  { %3299 = vmatpush.bf16.msrb.mxu2 %v6495_v47  ;;  %3274 = vmatpush.bf16.msrb.mxu0 %v5407_v57  ;;  %v6691_v47 = vor.u32 %v8241_v40, %v6690_v39  ;;  %v6626_v53 = vld [vmem:[#allocation5 + $0xa08] sm:$0xf]  ;;  %v5603_v57 = vor.u32 %v7969_v49, %v5602_v48  ;;  %v6115_v58 = vor.u32 %v8097_v52, %v6114_v50  ;;  %v6308_v49 = vld [vmem:[#allocation5 + $0x7c8] sm:$0xf0] }
  0x6f   :  { %v8225_v54 = vld [vmem:[#allocation5 + $0xa44] sm:$0xf0]  ;;  %v8265_v50 = vld [vmem:[#allocation5 + $0xb8c] sm:$0xf] }
  0x70   :  { %3312 = vmatpush.bf16.msrb.mxu3 %v7007_v51  ;;  %3287 = vmatpush.bf16.msrb.mxu1 %v5919_v60  ;;  %v7203_v51 = vor.u32 %v8369_v44, %v7202_v43  ;;  %v7138_v55 = vld [vmem:[#allocation5 + $0xe08] sm:$0xf]  ;;  %v6627_v59 = vor.u32 %v8225_v54, %v6626_v53  ;;  %v8393_v54 = vld [vmem:[#allocation5 + $0xf8c] sm:$0xf] }
  0x71   :  { %v8353_v56 = vld [vmem:[#allocation5 + $0xe44] sm:$0xf0] }
  0x72   :  { %3300 = vmatpush.bf16.msrb.mxu2 %v6431_v61  ;;  %3275 = vmatpush.bf16.msrb.mxu0 %v5343_v8  ;;  %v5538_v60 = vld [vmem:[#allocation5 + $0x188] sm:$0xf]  ;;  %v7139_v63 = vor.u32 %v8353_v56, %v7138_v55  ;;  %v7332_v55 = vld [vmem:[#allocation5 + $0xfc8] sm:$0xf0] }
  0x73   :  { %v7953_v61 = vld [vmem:[#allocation5 + $0x1c4] sm:$0xf0] }
  0x74   :  { %3313 = vmatpush.bf16.msrb.mxu3 %v6943_v1  ;;  %3288 = vmatpush.bf16.msrb.mxu1 %v5855_v12  ;;  %v6050_v62 = vld [vmem:[#allocation5 + $0x588] sm:$0xf]  ;;  %v5539_v5 = vor.u32 %v7953_v61, %v5538_v60  ;;  %v7993_v60 = vld [vmem:[#allocation5 + $0x30c] sm:$0xf] }
  0x75   :  { %3276 = vmatmul.bf16.vlgmr.msrb.gmra.mxu0 %v8756_v34  ;;  %v8081_v0 = vld [vmem:[#allocation5 + $0x5c4] sm:$0xf0]  ;;  %v5732_v61 = vld [vmem:[#allocation5 + $0x348] sm:$0xf0] }
  0x76   :  { %3301 = vmatpush.bf16.msrb.mxu2 %v6367_v13  ;;  %3320 = vmatpush.bf16.msra.mxu0 %v5795_v17  ;;  %v6562_v1 = vld [vmem:[#allocation5 + $0x988] sm:$0xf]  ;;  %v6051_v6 = vor.u32 %v8081_v0, %v6050_v62  ;;  %v8121_v62 = vld [vmem:[#allocation5 + $0x70c] sm:$0xf] }
  0x77   :  { %3289 = vmatmul.bf16.vlgmr.msrb.gmra.mxu1 %v8760_v42  ;;  %v8209_v2 = vld [vmem:[#allocation5 + $0x9c4] sm:$0xf0]  ;;  %v6244_v0 = vld [vmem:[#allocation5 + $0x748] sm:$0xf0] }
  0x78   :  { %3314 = vmatpush.bf16.msrb.mxu3 %v6879_v16  ;;  %3333 = vmatpush.bf16.msra.mxu1 %v6307_v18  ;;  %v7074_v3 = vld [vmem:[#allocation5 + $0xd88] sm:$0xf]  ;;  %v6563_v7 = vor.u32 %v8209_v2, %v6562_v1  ;;  %v8249_v1 = vld [vmem:[#allocation5 + $0xb0c] sm:$0xf] }
  0x79   :  { %3302 = vmatmul.bf16.vlgmr.msrb.gmra.mxu2 %v8754_v33  ;;  %v8337_v4 = vld [vmem:[#allocation5 + $0xdc4] sm:$0xf0]  ;;  %v6756_v2 = vld [vmem:[#allocation5 + $0xb48] sm:$0xf0] }
  0x7a   :  { %3346 = vmatpush.bf16.msra.mxu2 %v6819_v19  ;;  %3321 = vmatpush.bf16.msra.mxu0 %v5731_v29  ;;  %v5474_v8 = vld [vmem:[#allocation5 + $0x108] sm:$0xf]  ;;  %v7075_v11 = vor.u32 %v8337_v4, %v7074_v3  ;;  %v8377_v3 = vld [vmem:[#allocation5 + $0xf0c] sm:$0xf] }
  0x7b   :  { %3315 = vmatmul.bf16.vlgmr.msrb.gmra.mxu3 %v8758_v41  ;;  %v7937_v9 = vld [vmem:[#allocation5 + $0x144] sm:$0xf0]  ;;  %v7268_v4 = vld [vmem:[#allocation5 + $0xf48] sm:$0xf0] }
  0x7c   :  { %3359 = vmatpush.bf16.msra.mxu3 %v7331_v23  ;;  %3334 = vmatpush.bf16.msra.mxu1 %v6243_v30  ;;  %v8065_v12 = vld [vmem:[#allocation5 + $0x544] sm:$0xf0]  ;;  %v5475_v17 = vor.u32 %v7937_v9, %v5474_v8  ;;  %v7977_v8 = vld [vmem:[#allocation5 + $0x28c] sm:$0xf] }
  0x7d   :  { %v6498_v13 = vld [vmem:[#allocation5 + $0x908] sm:$0xf]  ;;  %v5987_v18 = vor.u32 %v8065_v12, %v5986_v10  ;;  %v5668_v9 = vld [vmem:[#allocation5 + $0x2c8] sm:$0xf0] }
  0x7e   :  { %3347 = vmatpush.bf16.msra.mxu2 %v6755_v31  ;;  %3322 = vmatpush.bf16.msra.mxu0 %v5667_v45  ;;  %v8193_v14 = vld [vmem:[#allocation5 + $0x944] sm:$0xf0]  ;;  %v8009_v45 = vld [vmem:[#allocation5 + $0x38c] sm:$0xf] }
  0x7f   :  { %v7010_v15 = vld [vmem:[#allocation5 + $0xd08] sm:$0xf]  ;;  %v6499_v19 = vor.u32 %v8193_v14, %v6498_v13  ;;  %v8105_v10 = vld [vmem:[#allocation5 + $0x68c] sm:$0xf] }
  0x80   :  { %3360 = vmatpush.bf16.msra.mxu3 %v7267_v37  ;;  %3335 = vmatpush.bf16.msra.mxu1 %v6179_v46  ;;  %v8321_v16 = vld [vmem:[#allocation5 + $0xd44] sm:$0xf0]  ;;  %v5796_v46 = vld [vmem:[#allocation5 + $0x3c8] sm:$0xf0] }
  0x81   :  { %v5410_v20 = vld [vmem:[#allocation5 + $0x88] sm:$0xf]  ;;  %v7011_v23 = vor.u32 %v8321_v16, %v7010_v15  ;;  %v6180_v12 = vld [vmem:[#allocation5 + $0x6c8] sm:$0xf0] }
  0x82   :  { %3348 = vmatpush.bf16.msra.mxu2 %v6691_v47  ;;  %3323 = vmatpush.bf16.msra.mxu0 %v5603_v57  ;;  %v7921_v21 = vld [vmem:[#allocation5 + $0xc4] sm:$0xf0]  ;;  %v8137_v47 = vld [vmem:[#allocation5 + $0x78c] sm:$0xf]  ;;  %v5799_v57 = vor.u32 %v8009_v45, %v5796_v46 }
  0x83   :  { %v5922_v22 = vld [vmem:[#allocation5 + $0x488] sm:$0xf]  ;;  %v5411_v29 = vor.u32 %v7921_v21, %v5410_v20  ;;  %v8233_v13 = vld [vmem:[#allocation5 + $0xa8c] sm:$0xf] }
  0x84   :  { %3361 = vmatpush.bf16.msra.mxu3 %v7203_v51  ;;  %3336 = vmatpush.bf16.msra.mxu1 %v6115_v58  ;;  %v8049_v24 = vld [vmem:[#allocation5 + $0x4c4] sm:$0xf0]  ;;  %v6820_v51 = vld [vmem:[#allocation5 + $0xbc8] sm:$0xf0]  ;;  %v6311_v58 = vor.u32 %v8137_v47, %v6308_v49 }
  0x85   :  { %v6434_v25 = vld [vmem:[#allocation5 + $0x888] sm:$0xf]  ;;  %v5923_v32 = vor.u32 %v8049_v24, %v5922_v22  ;;  %v6692_v14 = vld [vmem:[#allocation5 + $0xac8] sm:$0xf0] }
  0x86   :  { %3349 = vmatpush.bf16.msra.mxu2 %v6627_v59  ;;  %3324 = vmatpush.bf16.msra.mxu0 %v5539_v5  ;;  %v8177_v26 = vld [vmem:[#allocation5 + $0x8c4] sm:$0xf0]  ;;  %v6823_v59 = vor.u32 %v8265_v50, %v6820_v51  ;;  %v5735_v5 = vor.u32 %v7993_v60, %v5732_v61  ;;  %v8361_v15 = vld [vmem:[#allocation5 + $0xe8c] sm:$0xf] }
  0x87   :  { %v6946_v27 = vld [vmem:[#allocation5 + $0xc88] sm:$0xf]  ;;  %v6435_v35 = vor.u32 %v8177_v26, %v6434_v25  ;;  %v7204_v16 = vld [vmem:[#allocation5 + $0xec8] sm:$0xf0] }
  0x88   :  { %3362 = vmatpush.bf16.msra.mxu3 %v7139_v63  ;;  %3337 = vmatpush.bf16.msra.mxu1 %v6051_v6  ;;  %v8305_v28 = vld [vmem:[#allocation5 + $0xcc4] sm:$0xf0]  ;;  %v7335_v63 = vor.u32 %v8393_v54, %v7332_v55  ;;  %v6247_v6 = vor.u32 %v8121_v62, %v6244_v0  ;;  %v7961_v20 = vld [vmem:[#allocation5 + $0x20c] sm:$0xf] }
  0x89   :  { %v5346_v30 = vld [vmem:[#allocation5 + $0x8] sm:$0xf]  ;;  %v6947_v39 = vor.u32 %v8305_v28, %v6946_v27  ;;  %v5604_v21 = vld [vmem:[#allocation5 + $0x248] sm:$0xf0] }
  0x8a   :  { %3350 = vmatpush.bf16.msra.mxu2 %v6563_v7  ;;  %3325 = vmatpush.bf16.msra.mxu0 %v5475_v17  ;;  %v7905_v31 = vld [vmem:[#allocation5 + $0x44] sm:$0xf0]  ;;  %v6759_v7 = vor.u32 %v8249_v1, %v6756_v2  ;;  %v5671_v17 = vor.u32 %v7977_v8, %v5668_v9  ;;  %v8089_v22 = vld [vmem:[#allocation5 + $0x60c] sm:$0xf] }
  0x8b   :  { %v5858_v36 = vld [vmem:[#allocation5 + $0x408] sm:$0xf]  ;;  %v5347_v48 = vor.u32 %v7905_v31, %v5346_v30  ;;  %v6116_v24 = vld [vmem:[#allocation5 + $0x648] sm:$0xf0] }
  0x8c   :  { %3363 = vmatpush.bf16.msra.mxu3 %v7075_v11  ;;  %3338 = vmatpush.bf16.msra.mxu1 %v5987_v18  ;;  %v8033_v37 = vld [vmem:[#allocation5 + $0x444] sm:$0xf0]  ;;  %v7271_v11 = vor.u32 %v8377_v3, %v7268_v4  ;;  %v6183_v18 = vor.u32 %v8105_v10, %v6180_v12  ;;  %v8217_v25 = vld [vmem:[#allocation5 + $0xa0c] sm:$0xf]  ;;  %v6119_v30 = vor.u32 %v8089_v22, %v6116_v24  ;;  %v6826_v22 = vld [vmem:[#allocation5 + $0xb90] sm:$0xf] }
  0x8d   :  { %v6370_v38 = vld [vmem:[#allocation5 + $0x808] sm:$0xf]  ;;  %v5859_v52 = vor.u32 %v8033_v37, %v5858_v36  ;;  %v6628_v26 = vld [vmem:[#allocation5 + $0xa48] sm:$0xf0] }
  0x8e   :  { %3351 = vmatpush.bf16.msra.mxu2 %v6499_v19  ;;  %v8161_v40 = vld [vmem:[#allocation5 + $0x844] sm:$0xf0]  ;;  %3326 = vmatpush.bf16.msra.mxu0 %v5411_v29  ;;  %v6695_v19 = vor.u32 %v8233_v13, %v6692_v14  ;;  %v8345_v27 = vld [vmem:[#allocation5 + $0xe0c] sm:$0xf]  ;;  %v5607_v29 = vor.u32 %v7961_v20, %v5604_v21  ;;  %v6631_v31 = vor.u32 %v8217_v25, %v6628_v26  ;;  %v8146_v21 = vld [vmem:[#allocation5 + $0x7cc] sm:$0xf0] }
  0x8f   :  { %v6882_v43 = vld [vmem:[#allocation5 + $0xc08] sm:$0xf]  ;;  %v6371_v53 = vor.u32 %v8161_v40, %v6370_v38  ;;  %v7140_v28 = vld [vmem:[#allocation5 + $0xe48] sm:$0xf0]  ;;  %v7338_v26 = vld [vmem:[#allocation5 + $0xf90] sm:$0xf] }
  0x90   :  { %3364 = vmatpush.bf16.msra.mxu3 %v7011_v23  ;;  %v8289_v44 = vld [vmem:[#allocation5 + $0xc44] sm:$0xf0]  ;;  %3339 = vmatpush.bf16.msra.mxu1 %v5923_v32  ;;  %v7207_v23 = vor.u32 %v8361_v15, %v7204_v16  ;;  %v7945_v32 = vld [vmem:[#allocation5 + $0x18c] sm:$0xf]  ;;  %v7143_v37 = vor.u32 %v8345_v27, %v7140_v28  ;;  %v8402_v27 = vld [vmem:[#allocation5 + $0xfcc] sm:$0xf0] }
  0x91   :  { %v6883_v56 = vor.u32 %v8289_v44, %v6882_v43  ;;  %v8073_v36 = vld [vmem:[#allocation5 + $0x58c] sm:$0xf] }
  0x92   :  { %3352 = vmatpush.bf16.msra.mxu2 %v6435_v35  ;;  %3327 = vmatpush.bf16.msra.mxu0 %v5347_v48  ;;  %v5540_v35 = vld [vmem:[#allocation5 + $0x1c8] sm:$0xf0] }
  0x93   :  { %v6052_v38 = vld [vmem:[#allocation5 + $0x5c8] sm:$0xf0]  ;;  %v5543_v45 = vor.u32 %v7945_v32, %v5540_v35  ;;  %v5738_v32 = vld [vmem:[#allocation5 + $0x310] sm:$0xf] }
  0x94   :  { %3365 = vmatpush.bf16.msra.mxu3 %v6947_v39  ;;  %3340 = vmatpush.bf16.msra.mxu1 %v5859_v52  ;;  %v8201_v39 = vld [vmem:[#allocation5 + $0x98c] sm:$0xf]  ;;  %v6055_v46 = vor.u32 %v8073_v36, %v6052_v38  ;;  %v8002_v35 = vld [vmem:[#allocation5 + $0x34c] sm:$0xf0] }
  0x95   :  { %3328 = vmatmul.bf16.vlgmr.msra.gmra.mxu0 %v8756_v34  ;;  %v6564_v40 = vld [vmem:[#allocation5 + $0x9c8] sm:$0xf0]  ;;  %v6250_v36 = vld [vmem:[#allocation5 + $0x710] sm:$0xf] }
  0x96   :  { %3353 = vmatpush.bf16.msra.mxu2 %v6371_v53  ;;  %3372 = vmatpush.bf16.msrb.mxu0 %v5799_v57  ;;  %v8329_v43 = vld [vmem:[#allocation5 + $0xd8c] sm:$0xf]  ;;  %v6567_v47 = vor.u32 %v8201_v39, %v6564_v40  ;;  %v8130_v38 = vld [vmem:[#allocation5 + $0x74c] sm:$0xf0] }
  0x97   :  { %3341 = vmatmul.bf16.vlgmr.msra.gmra.mxu1 %v8760_v42  ;;  %v7076_v44 = vld [vmem:[#allocation5 + $0xdc8] sm:$0xf0]  ;;  %v6762_v39 = vld [vmem:[#allocation5 + $0xb10] sm:$0xf] }
  0x98   :  { %3366 = vmatpush.bf16.msra.mxu3 %v6883_v56  ;;  %3385 = vmatpush.bf16.msrb.mxu1 %v6311_v58  ;;  %v7929_v48 = vld [vmem:[#allocation5 + $0x10c] sm:$0xf]  ;;  %v7079_v51 = vor.u32 %v8329_v43, %v7076_v44  ;;  %v8258_v40 = vld [vmem:[#allocation5 + $0xb4c] sm:$0xf0] }
  0x99   :  { %3354 = vmatmul.bf16.vlgmr.msra.gmra.mxu2 %v8754_v33  ;;  %v5476_v49 = vld [vmem:[#allocation5 + $0x148] sm:$0xf0]  ;;  %v7274_v43 = vld [vmem:[#allocation5 + $0xf10] sm:$0xf] }
  0x9a   :  { %3398 = vmatpush.bf16.msrb.mxu2 %v6823_v59  ;;  %3373 = vmatpush.bf16.msrb.mxu0 %v5735_v5  ;;  %v8057_v50 = vld [vmem:[#allocation5 + $0x50c] sm:$0xf]  ;;  %v5479_v57 = vor.u32 %v7929_v48, %v5476_v49  ;;  %v8386_v44 = vld [vmem:[#allocation5 + $0xf4c] sm:$0xf0] }
  0x9b   :  { %3367 = vmatmul.bf16.vlgmr.msra.gmra.mxu3 %v8758_v41  ;;  %v5988_v52 = vld [vmem:[#allocation5 + $0x548] sm:$0xf0]  ;;  %v5674_v48 = vld [vmem:[#allocation5 + $0x290] sm:$0xf] }
  0x9c   :  { %3411 = vmatpush.bf16.msrb.mxu3 %v7335_v63  ;;  %3386 = vmatpush.bf16.msrb.mxu1 %v6247_v6  ;;  %v8185_v53 = vld [vmem:[#allocation5 + $0x90c] sm:$0xf]  ;;  %v5991_v58 = vor.u32 %v8057_v50, %v5988_v52  ;;  %v7986_v49 = vld [vmem:[#allocation5 + $0x2cc] sm:$0xf0] }
  0x9d   :  { %v6500_v54 = vld [vmem:[#allocation5 + $0x948] sm:$0xf0]  ;;  %v6186_v50 = vld [vmem:[#allocation5 + $0x690] sm:$0xf] }
  0x9e   :  { %3399 = vmatpush.bf16.msrb.mxu2 %v6759_v7  ;;  %3374 = vmatpush.bf16.msrb.mxu0 %v5671_v17  ;;  %v8313_v55 = vld [vmem:[#allocation5 + $0xd0c] sm:$0xf]  ;;  %v6503_v59 = vor.u32 %v8185_v53, %v6500_v54  ;;  %v5802_v17 = vld [vmem:[#allocation5 + $0x390] sm:$0xf] }
  0x9f   :  { %v7012_v56 = vld [vmem:[#allocation5 + $0xd48] sm:$0xf0]  ;;  %v8114_v52 = vld [vmem:[#allocation5 + $0x6cc] sm:$0xf0] }
  0xa0   :  { %3412 = vmatpush.bf16.msrb.mxu3 %v7271_v11  ;;  %3387 = vmatpush.bf16.msrb.mxu1 %v6183_v18  ;;  %v7913_v60 = vld [vmem:[#allocation5 + $0x8c] sm:$0xf]  ;;  %v7015_v63 = vor.u32 %v8313_v55, %v7012_v56  ;;  %v8018_v18 = vld [vmem:[#allocation5 + $0x3cc] sm:$0xf0] }
  0xa1   :  { %v5412_v61 = vld [vmem:[#allocation5 + $0xc8] sm:$0xf0]  ;;  %v6698_v53 = vld [vmem:[#allocation5 + $0xa90] sm:$0xf] }
  0xa2   :  { %3400 = vmatpush.bf16.msrb.mxu2 %v6695_v19  ;;  %3375 = vmatpush.bf16.msrb.mxu0 %v5607_v29  ;;  %v8041_v62 = vld [vmem:[#allocation5 + $0x48c] sm:$0xf]  ;;  %v5415_v5 = vor.u32 %v7913_v60, %v5412_v61  ;;  %v6314_v19 = vld [vmem:[#allocation5 + $0x790] sm:$0xf]  ;;  %v5803_v29 = vor.u32 %v8018_v18, %v5802_v17 }
  0xa3   :  { %v5924_v0 = vld [vmem:[#allocation5 + $0x4c8] sm:$0xf0]  ;;  %v8242_v54 = vld [vmem:[#allocation5 + $0xacc] sm:$0xf0] }
  0xa4   :  { %3413 = vmatpush.bf16.msrb.mxu3 %v7207_v23  ;;  %3388 = vmatpush.bf16.msrb.mxu1 %v6119_v30  ;;  %v8169_v1 = vld [vmem:[#allocation5 + $0x88c] sm:$0xf]  ;;  %v5927_v8 = vor.u32 %v8041_v62, %v5924_v0  ;;  %v8274_v23 = vld [vmem:[#allocation5 + $0xbcc] sm:$0xf0]  ;;  %v6315_v30 = vor.u32 %v8146_v21, %v6314_v19 }
  0xa5   :  { %v6436_v2 = vld [vmem:[#allocation5 + $0x8c8] sm:$0xf0]  ;;  %v7210_v55 = vld [vmem:[#allocation5 + $0xe90] sm:$0xf] }
  0xa6   :  { %3401 = vmatpush.bf16.msrb.mxu2 %v6631_v31  ;;  %3376 = vmatpush.bf16.msrb.mxu0 %v5543_v45  ;;  %v8297_v3 = vld [vmem:[#allocation5 + $0xc8c] sm:$0xf]  ;;  %v6439_v9 = vor.u32 %v8169_v1, %v6436_v2  ;;  %v6827_v31 = vor.u32 %v8274_v23, %v6826_v22  ;;  %v5739_v45 = vor.u32 %v8002_v35, %v5738_v32  ;;  %v8370_v56 = vld [vmem:[#allocation5 + $0xecc] sm:$0xf0] }
  0xa7   :  { %v6948_v4 = vld [vmem:[#allocation5 + $0xcc8] sm:$0xf0]  ;;  %v5610_v60 = vld [vmem:[#allocation5 + $0x210] sm:$0xf] }
  0xa8   :  { %3414 = vmatpush.bf16.msrb.mxu3 %v7143_v37  ;;  %3389 = vmatpush.bf16.msrb.mxu1 %v6055_v46  ;;  %v7897_v6 = vld [vmem:[#allocation5 + $0xc] sm:$0xf]  ;;  %v6951_v13 = vor.u32 %v8297_v3, %v6948_v4  ;;  %v7339_v37 = vor.u32 %v8402_v27, %v7338_v26  ;;  %v6251_v46 = vor.u32 %v8130_v38, %v6250_v36  ;;  %v7970_v61 = vld [vmem:[#allocation5 + $0x24c] sm:$0xf0] }
  0xa9   :  { %v5348_v7 = vld [vmem:[#allocation5 + $0x48] sm:$0xf0]  ;;  %v6122_v62 = vld [vmem:[#allocation5 + $0x610] sm:$0xf] }
  0xaa   :  { %3402 = vmatpush.bf16.msrb.mxu2 %v6567_v47  ;;  %3377 = vmatpush.bf16.msrb.mxu0 %v5479_v57  ;;  %v8025_v10 = vld [vmem:[#allocation5 + $0x40c] sm:$0xf]  ;;  %v5351_v20 = vor.u32 %v7897_v6, %v5348_v7  ;;  %v6763_v47 = vor.u32 %v8258_v40, %v6762_v39  ;;  %v5675_v57 = vor.u32 %v7986_v49, %v5674_v48  ;;  %v8098_v0 = vld [vmem:[#allocation5 + $0x64c] sm:$0xf0] }
  0xab   :  { %v5860_v11 = vld [vmem:[#allocation5 + $0x448] sm:$0xf0]  ;;  %v6634_v1 = vld [vmem:[#allocation5 + $0xa10] sm:$0xf]  ;;  %v6123_v6 = vor.u32 %v8098_v0, %v6122_v62  ;;  %v8266_v62 = vld [vmem:[#allocation5 + $0xb94] sm:$0xf] }
  0xac   :  { %3415 = vmatpush.bf16.msrb.mxu3 %v7079_v51  ;;  %3390 = vmatpush.bf16.msrb.mxu1 %v5991_v58  ;;  %v8153_v12 = vld [vmem:[#allocation5 + $0x80c] sm:$0xf]  ;;  %v5863_v24 = vor.u32 %v8025_v10, %v5860_v11  ;;  %v7275_v51 = vor.u32 %v8386_v44, %v7274_v43  ;;  %v6187_v58 = vor.u32 %v8114_v52, %v6186_v50  ;;  %v8226_v2 = vld [vmem:[#allocation5 + $0xa4c] sm:$0xf0] }
  0xad   :  { %v6372_v14 = vld [vmem:[#allocation5 + $0x848] sm:$0xf0]  ;;  %v7146_v3 = vld [vmem:[#allocation5 + $0xe10] sm:$0xf]  ;;  %v6635_v7 = vor.u32 %v8226_v2, %v6634_v1  ;;  %v8394_v2 = vld [vmem:[#allocation5 + $0xf94] sm:$0xf] }
  0xae   :  { %3403 = vmatpush.bf16.msrb.mxu2 %v6503_v59  ;;  %v8281_v15 = vld [vmem:[#allocation5 + $0xc0c] sm:$0xf]  ;;  %3378 = vmatpush.bf16.msrb.mxu0 %v5415_v5  ;;  %v6375_v25 = vor.u32 %v8153_v12, %v6372_v14  ;;  %v6699_v59 = vor.u32 %v8242_v54, %v6698_v53  ;;  %v8354_v4 = vld [vmem:[#allocation5 + $0xe4c] sm:$0xf0]  ;;  %v5611_v5 = vor.u32 %v7970_v61, %v5610_v60  ;;  %v6316_v61 = vld [vmem:[#allocation5 + $0x7d0] sm:$0xf0] }
  0xaf   :  { %v6884_v16 = vld [vmem:[#allocation5 + $0xc48] sm:$0xf0]  ;;  %v6058_v10 = vld [vmem:[#allocation5 + $0x590] sm:$0xf]  ;;  %v7147_v11 = vor.u32 %v8354_v4, %v7146_v3  ;;  %v7340_v3 = vld [vmem:[#allocation5 + $0xfd0] sm:$0xf0] }
  0xb0   :  { %3416 = vmatpush.bf16.msrb.mxu3 %v7015_v63  ;;  %3391 = vmatpush.bf16.msrb.mxu1 %v5927_v8  ;;  %v6887_v28 = vor.u32 %v8281_v15, %v6884_v16  ;;  %v7211_v63 = vor.u32 %v8370_v56, %v7210_v55  ;;  %v5546_v8 = vld [vmem:[#allocation5 + $0x190] sm:$0xf] }
  0xb1   :  { %v8082_v12 = vld [vmem:[#allocation5 + $0x5cc] sm:$0xf0] }
  0xb2   :  { %3404 = vmatpush.bf16.msrb.mxu2 %v6439_v9  ;;  %3379 = vmatpush.bf16.msrb.mxu0 %v5351_v20  ;;  %v7954_v9 = vld [vmem:[#allocation5 + $0x1cc] sm:$0xf0]  ;;  %v6059_v18 = vor.u32 %v8082_v12, %v6058_v10  ;;  %v8122_v10 = vld [vmem:[#allocation5 + $0x714] sm:$0xf] }
  0xb3   :  { %v8210_v14 = vld [vmem:[#allocation5 + $0x9cc] sm:$0xf0]  ;;  %v5547_v17 = vor.u32 %v7954_v9, %v5546_v8  ;;  %v7994_v8 = vld [vmem:[#allocation5 + $0x314] sm:$0xf] }
  0xb4   :  { %3417 = vmatpush.bf16.msrb.mxu3 %v6951_v13  ;;  %3392 = vmatpush.bf16.msrb.mxu1 %v5863_v24  ;;  %v6570_v13 = vld [vmem:[#allocation5 + $0x990] sm:$0xf]  ;;  %v5740_v9 = vld [vmem:[#allocation5 + $0x350] sm:$0xf0] }
  0xb5   :  { %3380 = vmatmul.bf16.vlgmr.msrb.gmra.mxu0 %v8756_v34  ;;  %v7082_v15 = vld [vmem:[#allocation5 + $0xd90] sm:$0xf]  ;;  %v6571_v19 = vor.u32 %v8210_v14, %v6570_v13  ;;  %v6252_v12 = vld [vmem:[#allocation5 + $0x750] sm:$0xf0] }
  0xb6   :  { %3405 = vmatpush.bf16.msrb.mxu2 %v6375_v25  ;;  %3424 = vmatpush.bf16.msra.mxu0 %v5803_v29  ;;  %v8338_v16 = vld [vmem:[#allocation5 + $0xdcc] sm:$0xf0]  ;;  %v8250_v13 = vld [vmem:[#allocation5 + $0xb14] sm:$0xf] }
  0xb7   :  { %3393 = vmatmul.bf16.vlgmr.msrb.gmra.mxu1 %v8760_v42  ;;  %v5482_v20 = vld [vmem:[#allocation5 + $0x110] sm:$0xf]  ;;  %v7083_v23 = vor.u32 %v8338_v16, %v7082_v15  ;;  %v6764_v14 = vld [vmem:[#allocation5 + $0xb50] sm:$0xf0] }
  0xb8   :  { %3418 = vmatpush.bf16.msrb.mxu3 %v6887_v28  ;;  %3437 = vmatpush.bf16.msra.mxu1 %v6315_v30  ;;  %v7938_v21 = vld [vmem:[#allocation5 + $0x14c] sm:$0xf0]  ;;  %v8378_v15 = vld [vmem:[#allocation5 + $0xf14] sm:$0xf] }
  0xb9   :  { %3406 = vmatmul.bf16.vlgmr.msrb.gmra.mxu2 %v8754_v33  ;;  %v5994_v22 = vld [vmem:[#allocation5 + $0x510] sm:$0xf]  ;;  %v5483_v29 = vor.u32 %v7938_v21, %v5482_v20  ;;  %v7276_v16 = vld [vmem:[#allocation5 + $0xf50] sm:$0xf0] }
  0xba   :  { %3450 = vmatpush.bf16.msra.mxu2 %v6827_v31  ;;  %3425 = vmatpush.bf16.msra.mxu0 %v5739_v45  ;;  %v8066_v24 = vld [vmem:[#allocation5 + $0x54c] sm:$0xf0]  ;;  %v7978_v20 = vld [vmem:[#allocation5 + $0x294] sm:$0xf] }
  0xbb   :  { %3419 = vmatmul.bf16.vlgmr.msrb.gmra.mxu3 %v8758_v41  ;;  %v6506_v25 = vld [vmem:[#allocation5 + $0x910] sm:$0xf]  ;;  %v5995_v30 = vor.u32 %v8066_v24, %v5994_v22  ;;  %v5676_v21 = vld [vmem:[#allocation5 + $0x2d0] sm:$0xf0] }
  0xbc   :  { %3463 = vmatpush.bf16.msra.mxu3 %v7339_v37  ;;  %3438 = vmatpush.bf16.msra.mxu1 %v6251_v46  ;;  %v8194_v26 = vld [vmem:[#allocation5 + $0x94c] sm:$0xf0]  ;;  %v8106_v22 = vld [vmem:[#allocation5 + $0x694] sm:$0xf] }
  0xbd   :  { %v7018_v27 = vld [vmem:[#allocation5 + $0xd10] sm:$0xf]  ;;  %v6507_v31 = vor.u32 %v8194_v26, %v6506_v25  ;;  %v6188_v24 = vld [vmem:[#allocation5 + $0x6d0] sm:$0xf0] }
  0xbe   :  { %3451 = vmatpush.bf16.msra.mxu2 %v6763_v47  ;;  %3426 = vmatpush.bf16.msra.mxu0 %v5675_v57  ;;  %v8322_v28 = vld [vmem:[#allocation5 + $0xd4c] sm:$0xf0]  ;;  %v8010_v57 = vld [vmem:[#allocation5 + $0x394] sm:$0xf] }
  0xbf   :  { %v5418_v32 = vld [vmem:[#allocation5 + $0x90] sm:$0xf]  ;;  %v7019_v37 = vor.u32 %v8322_v28, %v7018_v27  ;;  %v8234_v25 = vld [vmem:[#allocation5 + $0xa94] sm:$0xf] }
  0xc0   :  { %3464 = vmatpush.bf16.msra.mxu3 %v7275_v51  ;;  %3439 = vmatpush.bf16.msra.mxu1 %v6187_v58  ;;  %v7922_v35 = vld [vmem:[#allocation5 + $0xcc] sm:$0xf0]  ;;  %v5804_v58 = vld [vmem:[#allocation5 + $0x3d0] sm:$0xf0] }
  0xc1   :  { %v5930_v36 = vld [vmem:[#allocation5 + $0x490] sm:$0xf]  ;;  %v5419_v45 = vor.u32 %v7922_v35, %v5418_v32  ;;  %v6700_v26 = vld [vmem:[#allocation5 + $0xad0] sm:$0xf0] }
  0xc2   :  { %3452 = vmatpush.bf16.msra.mxu2 %v6699_v59  ;;  %3427 = vmatpush.bf16.msra.mxu0 %v5611_v5  ;;  %v8050_v38 = vld [vmem:[#allocation5 + $0x4cc] sm:$0xf0]  ;;  %v8138_v59 = vld [vmem:[#allocation5 + $0x794] sm:$0xf]  ;;  %v5807_v5 = vor.u32 %v8010_v57, %v5804_v58 }
  0xc3   :  { %v6442_v39 = vld [vmem:[#allocation5 + $0x890] sm:$0xf]  ;;  %v5931_v48 = vor.u32 %v8050_v38, %v5930_v36  ;;  %v8362_v27 = vld [vmem:[#allocation5 + $0xe94] sm:$0xf] }
  0xc4   :  { %3465 = vmatpush.bf16.msra.mxu3 %v7211_v63  ;;  %3440 = vmatpush.bf16.msra.mxu1 %v6123_v6  ;;  %v8178_v40 = vld [vmem:[#allocation5 + $0x8cc] sm:$0xf0]  ;;  %v6828_v63 = vld [vmem:[#allocation5 + $0xbd0] sm:$0xf0]  ;;  %v6319_v6 = vor.u32 %v8138_v59, %v6316_v61 }
  0xc5   :  { %v6954_v43 = vld [vmem:[#allocation5 + $0xc90] sm:$0xf]  ;;  %v6443_v49 = vor.u32 %v8178_v40, %v6442_v39  ;;  %v7212_v28 = vld [vmem:[#allocation5 + $0xed0] sm:$0xf0] }
  0xc6   :  { %3453 = vmatpush.bf16.msra.mxu2 %v6635_v7  ;;  %3428 = vmatpush.bf16.msra.mxu0 %v5547_v17  ;;  %v8306_v44 = vld [vmem:[#allocation5 + $0xccc] sm:$0xf0]  ;;  %v6831_v7 = vor.u32 %v8266_v62, %v6828_v63  ;;  %v5743_v17 = vor.u32 %v7994_v8, %v5740_v9  ;;  %v7962_v32 = vld [vmem:[#allocation5 + $0x214] sm:$0xf] }
  0xc7   :  { %v5354_v46 = vld [vmem:[#allocation5 + $0x10] sm:$0xf]  ;;  %v6955_v53 = vor.u32 %v8306_v44, %v6954_v43  ;;  %v5612_v35 = vld [vmem:[#allocation5 + $0x250] sm:$0xf0] }
  0xc8   :  { %3466 = vmatpush.bf16.msra.mxu3 %v7147_v11  ;;  %3441 = vmatpush.bf16.msra.mxu1 %v6059_v18  ;;  %v7906_v47 = vld [vmem:[#allocation5 + $0x4c] sm:$0xf0]  ;;  %v7343_v11 = vor.u32 %v8394_v2, %v7340_v3  ;;  %v6255_v18 = vor.u32 %v8122_v10, %v6252_v12  ;;  %v8090_v36 = vld [vmem:[#allocation5 + $0x614] sm:$0xf]  ;;  %v8782_v3 = vld [vmem:[#allocation7] sm:$0xff] }
  0xc9   :  { %v5866_v50 = vld [vmem:[#allocation5 + $0x410] sm:$0xf]  ;;  %v5355_v60 = vor.u32 %v7906_v47, %v5354_v46  ;;  %v6124_v38 = vld [vmem:[#allocation5 + $0x650] sm:$0xf0]  ;;  %v624_v12 = vperm.slane %v8782_v3, 0 }
  0xca   :  { %3454 = vmatpush.bf16.msra.mxu2 %v6571_v19  ;;  %3429 = vmatpush.bf16.msra.mxu0 %v5483_v29  ;;  %v8034_v51 = vld [vmem:[#allocation5 + $0x44c] sm:$0xf0]  ;;  %v6767_v19 = vor.u32 %v8250_v13, %v6764_v14  ;;  %v5679_v29 = vor.u32 %v7978_v20, %v5676_v21  ;;  %v8218_v39 = vld [vmem:[#allocation5 + $0xa14] sm:$0xf]  ;;  %v6127_v46 = vor.u32 %v8090_v36, %v6124_v38  ;;  %v8019_v36 = vld [vmem:[#allocation5 + $0x3d4] sm:$0xf0] }
  0xcb   :  { %v6378_v52 = vld [vmem:[#allocation5 + $0x810] sm:$0xf]  ;;  %v5867_v0 = vor.u32 %v8034_v51, %v5866_v50  ;;  %v6636_v40 = vld [vmem:[#allocation5 + $0xa50] sm:$0xf0] }
  0xcc   :  { %3467 = vmatpush.bf16.msra.mxu3 %v7083_v23  ;;  %3442 = vmatpush.bf16.msra.mxu1 %v5995_v30  ;;  %v8162_v54 = vld [vmem:[#allocation5 + $0x84c] sm:$0xf0]  ;;  %v7279_v23 = vor.u32 %v8378_v15, %v7276_v16  ;;  %v6191_v30 = vor.u32 %v8106_v22, %v6188_v24  ;;  %v8346_v43 = vld [vmem:[#allocation5 + $0xe14] sm:$0xf]  ;;  %v6639_v47 = vor.u32 %v8218_v39, %v6636_v40  ;;  %v8147_v40 = vld [vmem:[#allocation5 + $0x7d4] sm:$0xf0] }
  0xcd   :  { %v6890_v55 = vld [vmem:[#allocation5 + $0xc10] sm:$0xf]  ;;  %v6379_v1 = vor.u32 %v8162_v54, %v6378_v52  ;;  %v7148_v44 = vld [vmem:[#allocation5 + $0xe50] sm:$0xf0] }
  0xce   :  { %3455 = vmatpush.bf16.msra.mxu2 %v6507_v31  ;;  %v8290_v56 = vld [vmem:[#allocation5 + $0xc4c] sm:$0xf0]  ;;  %3430 = vmatpush.bf16.msra.mxu0 %v5419_v45  ;;  %v6703_v31 = vor.u32 %v8234_v25, %v6700_v26  ;;  %v5615_v45 = vor.u32 %v7962_v32, %v5612_v35  ;;  %v8074_v50 = vld [vmem:[#allocation5 + $0x594] sm:$0xf]  ;;  %v7151_v51 = vor.u32 %v8346_v43, %v7148_v44  ;;  %v5810_v35 = vld [vmem:[#allocation5 + $0x398] sm:$0xf] }
  0xcf   :  { %v6891_v4 = vor.u32 %v8290_v56, %v6890_v55  ;;  %v6060_v52 = vld [vmem:[#allocation5 + $0x5d0] sm:$0xf0]  ;;  %v6834_v43 = vld [vmem:[#allocation5 + $0xb98] sm:$0xf] }
  0xd0   :  { %3468 = vmatpush.bf16.msra.mxu3 %v7019_v37  ;;  %3443 = vmatpush.bf16.msra.mxu1 %v5931_v48  ;;  %v7215_v37 = vor.u32 %v8362_v27, %v7212_v28  ;;  %v7946_v48 = vld [vmem:[#allocation5 + $0x194] sm:$0xf]  ;;  %v6063_v59 = vor.u32 %v8074_v50, %v6060_v52  ;;  %v8275_v44 = vld [vmem:[#allocation5 + $0xbd4] sm:$0xf0] }
  0xd1   :  { %v6572_v54 = vld [vmem:[#allocation5 + $0x9d0] sm:$0xf0] }
  0xd2   :  { %3456 = vmatpush.bf16.msra.mxu2 %v6443_v49  ;;  %3431 = vmatpush.bf16.msra.mxu0 %v5355_v60  ;;  %v5548_v49 = vld [vmem:[#allocation5 + $0x1d0] sm:$0xf0] }
  0xd3   :  { %v8330_v55 = vld [vmem:[#allocation5 + $0xd94] sm:$0xf]  ;;  %v5551_v57 = vor.u32 %v7946_v48, %v5548_v49  ;;  %v7346_v48 = vld [vmem:[#allocation5 + $0xf98] sm:$0xf] }
  0xd4   :  { %3469 = vmatpush.bf16.msra.mxu3 %v6955_v53  ;;  %3444 = vmatpush.bf16.msra.mxu1 %v5867_v0  ;;  %v8202_v53 = vld [vmem:[#allocation5 + $0x994] sm:$0xf]  ;;  %v8403_v49 = vld [vmem:[#allocation5 + $0xfd4] sm:$0xf0] }
  0xd5   :  { %3432 = vmatmul.bf16.vlgmr.msra.gmra.mxu0 %v8756_v34  ;;  %v7084_v56 = vld [vmem:[#allocation5 + $0xdd0] sm:$0xf0]  ;;  %v6575_v60 = vor.u32 %v8202_v53, %v6572_v54  ;;  %v6835_v54 = vor.u32 %v8275_v44, %v6834_v43  ;;  %v6066_v43 = vld [vmem:[#allocation5 + $0x598] sm:$0xf] }
  0xd6   :  { %3457 = vmatpush.bf16.msra.mxu2 %v6379_v1  ;;  %3476 = vmatpush.bf16.msrb.mxu0 %v5807_v5  ;;  %v7930_v58 = vld [vmem:[#allocation5 + $0x114] sm:$0xf]  ;;  %v7087_v0 = vor.u32 %v8330_v55, %v7084_v56  ;;  %v3225_v22 = vpop.f32.mrf.mxu0  ;;  %v5746_v55 = vld [vmem:[#allocation5 + $0x318] sm:$0xf] }
  0xd7   :  { %3445 = vmatmul.bf16.vlgmr.msra.gmra.mxu1 %v8760_v42  ;;  %v5484_v61 = vld [vmem:[#allocation5 + $0x150] sm:$0xf0]  ;;  %v3226_v28 = vadd.f32 %v3225_v22, %v624_v12  ;;  %v8003_v56 = vld [vmem:[#allocation5 + $0x354] sm:$0xf0] }
  0xd8   :  { %3470 = vmatpush.bf16.msra.mxu3 %v6891_v4  ;;  %3489 = vmatpush.bf16.msrb.mxu1 %v6319_v6  ;;  %v8058_v62 = vld [vmem:[#allocation5 + $0x514] sm:$0xf]  ;;  %v5487_v6 = vor.u32 %v7930_v58, %v5484_v61  ;;  %v8131_v61 = vld [vmem:[#allocation5 + $0x754] sm:$0xf0] }
  0xd9   :  { %3458 = vmatmul.bf16.vlgmr.msra.gmra.mxu2 %v8754_v33  ;;  %v5996_v63 = vld [vmem:[#allocation5 + $0x550] sm:$0xf0] }
  0xda   :  { %3502 = vmatpush.bf16.msrb.mxu2 %v6831_v7  ;;  %3477 = vmatpush.bf16.msrb.mxu0 %v5743_v17  ;;  %v8186_v1 = vld [vmem:[#allocation5 + $0x914] sm:$0xf]  ;;  %v5999_v8 = vor.u32 %v8058_v62, %v5996_v63  ;;  %v3238_v38 = vpop.f32.mrf.mxu1  ;;  %v6770_v62 = vld [vmem:[#allocation5 + $0xb18] sm:$0xf] }
  0xdb   :  { %3471 = vmatmul.bf16.vlgmr.msra.gmra.mxu3 %v8758_v41  ;;  %v6508_v2 = vld [vmem:[#allocation5 + $0x950] sm:$0xf0]  ;;  %v8259_v63 = vld [vmem:[#allocation5 + $0xb54] sm:$0xf0] }
  0xdc   :  { %3515 = vmatpush.bf16.msrb.mxu3 %v7343_v11  ;;  %3490 = vmatpush.bf16.msrb.mxu1 %v6255_v18  ;;  %v8314_v4 = vld [vmem:[#allocation5 + $0xd14] sm:$0xf]  ;;  %v6511_v9 = vor.u32 %v8186_v1, %v6508_v2  ;;  %v7282_v1 = vld [vmem:[#allocation5 + $0xf18] sm:$0xf] }
  0xdd   :  { %v7020_v5 = vld [vmem:[#allocation5 + $0xd50] sm:$0xf0]  ;;  %v8387_v2 = vld [vmem:[#allocation5 + $0xf54] sm:$0xf0] }
  0xde   :  { %3503 = vmatpush.bf16.msrb.mxu2 %v6767_v19  ;;  %3478 = vmatpush.bf16.msrb.mxu0 %v5679_v29  ;;  %v7914_v7 = vld [vmem:[#allocation5 + $0x94] sm:$0xf]  ;;  %v7023_v13 = vor.u32 %v8314_v4, %v7020_v5  ;;  %v3251_v52 = vpop.f32.mrf.mxu2  ;;  %v5747_v5 = vor.u32 %v8003_v56, %v5746_v55  ;;  %v7283_v12 = vor.u32 %v8387_v2, %v7282_v1  ;;  %v5490_v56 = vld [vmem:[#allocation5 + $0x118] sm:$0xf] }
  0xdf   :  { %v5420_v10 = vld [vmem:[#allocation5 + $0xd0] sm:$0xf0]  ;;  %v7026_v2 = vld [vmem:[#allocation5 + $0xd18] sm:$0xf] }
  0xe0   :  { %3516 = vmatpush.bf16.msrb.mxu3 %v7279_v23  ;;  %3491 = vmatpush.bf16.msrb.mxu1 %v6191_v30  ;;  %v8042_v11 = vld [vmem:[#allocation5 + $0x494] sm:$0xf]  ;;  %v5423_v19 = vor.u32 %v7914_v7, %v5420_v10  ;;  %v6771_v7 = vor.u32 %v8259_v63, %v6770_v62  ;;  %v6194_v10 = vld [vmem:[#allocation5 + $0x698] sm:$0xf] }
  0xe1   :  { %v5932_v14 = vld [vmem:[#allocation5 + $0x4d0] sm:$0xf0]  ;;  %v6514_v62 = vld [vmem:[#allocation5 + $0x918] sm:$0xf] }
  0xe2   :  { %3504 = vmatpush.bf16.msrb.mxu2 %v6703_v31  ;;  %3479 = vmatpush.bf16.msrb.mxu0 %v5615_v45  ;;  %v8170_v15 = vld [vmem:[#allocation5 + $0x894] sm:$0xf]  ;;  %v5935_v23 = vor.u32 %v8042_v11, %v5932_v14  ;;  %v3239_v45 = vadd.f32 %v3238_v38, %v3226_v28  ;;  %v3240_v11 = vpop.f32.mrf.mxu1  ;;  %v6706_v14 = vld [vmem:[#allocation5 + $0xa98] sm:$0xf] }
  0xe3   :  { %v6444_v16 = vld [vmem:[#allocation5 + $0x8d0] sm:$0xf0]  ;;  %v8099_v28 = vld [vmem:[#allocation5 + $0x654] sm:$0xf0] }
  0xe4   :  { %3517 = vmatpush.bf16.msrb.mxu3 %v7215_v37  ;;  %3492 = vmatpush.bf16.msrb.mxu1 %v6127_v46  ;;  %v8298_v17 = vld [vmem:[#allocation5 + $0xc94] sm:$0xf]  ;;  %v6447_v24 = vor.u32 %v8170_v15, %v6444_v16  ;;  %v6322_v37 = vld [vmem:[#allocation5 + $0x798] sm:$0xf]  ;;  %v3252_v58 = vadd.f32 %v3251_v52, %v3239_v45 }
  0xe5   :  { %v6956_v18 = vld [vmem:[#allocation5 + $0xcd0] sm:$0xf0]  ;;  %v6323_v53 = vor.u32 %v8147_v40, %v6322_v37  ;;  %v8243_v15 = vld [vmem:[#allocation5 + $0xad4] sm:$0xf0] }
  0xe6   :  { %3505 = vmatpush.bf16.msrb.mxu2 %v6639_v47  ;;  %3480 = vmatpush.bf16.msrb.mxu0 %v5551_v57  ;;  %v7898_v20 = vld [vmem:[#allocation5 + $0x14] sm:$0xf]  ;;  %v6959_v29 = vor.u32 %v8298_v17, %v6956_v18  ;;  %v6258_v57 = vld [vmem:[#allocation5 + $0x718] sm:$0xf]  ;;  %v6707_v22 = vor.u32 %v8243_v15, %v6706_v14 }
  0xe7   :  { %v5356_v21 = vld [vmem:[#allocation5 + $0x50] sm:$0xf0]  ;;  %v7218_v16 = vld [vmem:[#allocation5 + $0xe98] sm:$0xf] }
  0xe8   :  { %3518 = vmatpush.bf16.msrb.mxu3 %v7151_v51  ;;  %3493 = vmatpush.bf16.msrb.mxu1 %v6063_v59  ;;  %v8026_v25 = vld [vmem:[#allocation5 + $0x414] sm:$0xf]  ;;  %v5359_v39 = vor.u32 %v7898_v20, %v5356_v21  ;;  %v5811_v51 = vor.u32 %v8019_v36, %v5810_v35  ;;  %v3264_v59 = vpop.f32.mrf.mxu3  ;;  %v8371_v17 = vld [vmem:[#allocation5 + $0xed4] sm:$0xf0]  ;;  %v3253_v20 = vpop.f32.mrf.mxu2 }
  0xe9   :  { %v5868_v26 = vld [vmem:[#allocation5 + $0x450] sm:$0xf0]  ;;  %v8785_v4 = vadd.f32 %v3264_v59, %v3252_v58  ;;  %v7955_v40 = vld [vmem:[#allocation5 + $0x1d4] sm:$0xf0] }
  0xea   :  { %3506 = vmatpush.bf16.msrb.mxu2 %v6575_v60  ;;  %3481 = vmatpush.bf16.msrb.mxu0 %v5487_v6  ;;  %v8154_v27 = vld [vmem:[#allocation5 + $0x814] sm:$0xf]  ;;  %v5871_v46 = vor.u32 %v8026_v25, %v5868_v26  ;;  %v7347_v60 = vor.u32 %v8403_v49, %v7346_v48  ;;  %v6259_v6 = vor.u32 %v8131_v61, %v6258_v57  ;;  %v625_v26 = vperm.slane %v8782_v3, 1  ;;  %v6578_v48 = vld [vmem:[#allocation5 + $0x998] sm:$0xf] }
  0xeb   :  { %v6380_v30 = vld [vmem:[#allocation5 + $0x850] sm:$0xf0]  ;;  %v8211_v49 = vld [vmem:[#allocation5 + $0x9d4] sm:$0xf0] }
  0xec   :  { %3519 = vmatpush.bf16.msrb.mxu3 %v7087_v0  ;;  %3494 = vmatpush.bf16.msrb.mxu1 %v5999_v8  ;;  %v8282_v31 = vld [vmem:[#allocation5 + $0xc14] sm:$0xf]  ;;  %v6383_v47 = vor.u32 %v8154_v27, %v6380_v30  ;;  %v3227_v0 = vpop.f32.mrf.mxu0  ;;  %v5682_v8 = vld [vmem:[#allocation5 + $0x298] sm:$0xf]  ;;  %v7219_v27 = vor.u32 %v8371_v17, %v7218_v16  ;;  %v6579_v55 = vor.u32 %v8211_v49, %v6578_v48  ;;  %v8395_v48 = vld [vmem:[#allocation5 + $0xf9c] sm:$0xf] }
  0xed   :  { %v6892_v32 = vld [vmem:[#allocation5 + $0xc50] sm:$0xf0]  ;;  %v8227_v30 = vld [vmem:[#allocation5 + $0xa54] sm:$0xf0]  ;;  %v7348_v49 = vld [vmem:[#allocation5 + $0xfd8] sm:$0xf0] }
  0xee   :  { %3507 = vmatpush.bf16.msrb.mxu2 %v6511_v9  ;;  %3482 = vmatpush.bf16.msrb.mxu0 %v5423_v19  ;;  %v6895_v50 = vor.u32 %v8282_v31, %v6892_v32  ;;  %v7987_v9 = vld [vmem:[#allocation5 + $0x2d4] sm:$0xf0] }
  0xef   :  { %v5683_v18 = vor.u32 %v7987_v9, %v5682_v8  ;;  %v5618_v19 = vld [vmem:[#allocation5 + $0x218] sm:$0xf] }
  0xf0   :  { %3520 = vmatpush.bf16.msrb.mxu3 %v7023_v13  ;;  %3495 = vmatpush.bf16.msrb.mxu1 %v5935_v23  ;;  %v8115_v13 = vld [vmem:[#allocation5 + $0x6d4] sm:$0xf0]  ;;  %v3266_v25 = vpop.f32.mrf.mxu3 }
  0xf1   :  { %v6195_v21 = vor.u32 %v8115_v13, %v6194_v10  ;;  %v7971_v23 = vld [vmem:[#allocation5 + $0x254] sm:$0xf0] }
  0xf2   :  { %3508 = vmatpush.bf16.msrb.mxu2 %v6447_v24  ;;  %3483 = vmatpush.bf16.msrb.mxu0 %v5359_v39  ;;  %v6130_v24 = vld [vmem:[#allocation5 + $0x618] sm:$0xf]  ;;  %v5619_v35 = vor.u32 %v7971_v23, %v5618_v19 }
  0xf3   :  { %v7154_v31 = vld [vmem:[#allocation5 + $0xe18] sm:$0xf]  ;;  %v6131_v37 = vor.u32 %v8099_v28, %v6130_v24 }
  0xf4   :  { %3521 = vmatpush.bf16.msrb.mxu3 %v6959_v29  ;;  %3496 = vmatpush.bf16.msrb.mxu1 %v5871_v46  ;;  %v6642_v29 = vld [vmem:[#allocation5 + $0xa18] sm:$0xf]  ;;  %v3277_v36 = vpop.f32.mrf.mxu0  ;;  %v3290_v45 = vpop.f32.mrf.mxu1 }
  0xf5   :  { %3484 = vmatmul.bf16.vlgmr.msrb.gmra.mxu0 %v8756_v34  ;;  %v8355_v32 = vld [vmem:[#allocation5 + $0xe54] sm:$0xf0]  ;;  %v6643_v38 = vor.u32 %v8227_v30, %v6642_v29  ;;  %v3278_v44 = vadd.f32 %v3277_v36, %v625_v26 }
  0xf6   :  { %3509 = vmatpush.bf16.msrb.mxu2 %v6383_v47  ;;  %3528 = vmatpush.bf16.msra.mxu0 %v5811_v51  ;;  %v5554_v39 = vld [vmem:[#allocation5 + $0x198] sm:$0xf]  ;;  %v7155_v46 = vor.u32 %v8355_v32, %v7154_v31 }
  0xf7   :  { %3497 = vmatmul.bf16.vlgmr.msrb.gmra.mxu1 %v8760_v42  ;;  %v8083_v47 = vld [vmem:[#allocation5 + $0x5d4] sm:$0xf0]  ;;  %v3291_v52 = vadd.f32 %v3290_v45, %v3278_v44  ;;  %v8267_v44 = vld [vmem:[#allocation5 + $0xb9c] sm:$0xf] }
  0xf8   :  { %3522 = vmatpush.bf16.msrb.mxu3 %v6895_v50  ;;  %3541 = vmatpush.bf16.msra.mxu1 %v6323_v53  ;;  %v7090_v50 = vld [vmem:[#allocation5 + $0xd98] sm:$0xf]  ;;  %v5555_v53 = vor.u32 %v7955_v40, %v5554_v39  ;;  %v8139_v39 = vld [vmem:[#allocation5 + $0x79c] sm:$0xf] }
  0xf9   :  { %3510 = vmatmul.bf16.vlgmr.msrb.gmra.mxu2 %v8754_v33  ;;  %v8339_v51 = vld [vmem:[#allocation5 + $0xdd4] sm:$0xf0]  ;;  %v6836_v45 = vld [vmem:[#allocation5 + $0xbd8] sm:$0xf0] }
  0xfa   :  { %3554 = vmatpush.bf16.msra.mxu2 %v6835_v54  ;;  %3529 = vmatpush.bf16.msra.mxu0 %v5747_v5  ;;  %v6067_v54 = vor.u32 %v8083_v47, %v6066_v43  ;;  %v7939_v57 = vld [vmem:[#allocation5 + $0x154] sm:$0xf0]  ;;  %v6324_v43 = vld [vmem:[#allocation5 + $0x7d8] sm:$0xf0] }
  0xfb   :  { %3523 = vmatmul.bf16.vlgmr.msrb.gmra.mxu3 %v8758_v41  ;;  %v6002_v58 = vld [vmem:[#allocation5 + $0x518] sm:$0xf] }
  0xfc   :  { %3567 = vmatpush.bf16.msra.mxu3 %v7347_v60  ;;  %3542 = vmatpush.bf16.msra.mxu1 %v6259_v6  ;;  %v3303_v59 = vpop.f32.mrf.mxu2  ;;  %v7091_v60 = vor.u32 %v8339_v51, %v7090_v50  ;;  %v8067_v61 = vld [vmem:[#allocation5 + $0x554] sm:$0xf0]  ;;  %v5491_v6 = vor.u32 %v7939_v57, %v5490_v56  ;;  %v3279_v8 = vpop.f32.mrf.mxu0  ;;  %v8123_v56 = vld [vmem:[#allocation5 + $0x71c] sm:$0xf]  ;;  %v7351_v57 = vor.u32 %v8395_v48, %v7348_v49 }
  0xfd   :  { %v8195_v63 = vld [vmem:[#allocation5 + $0x954] sm:$0xf0]  ;;  %v3304_v0 = vadd.f32 %v3303_v59, %v3291_v52  ;;  %v6003_v9 = vor.u32 %v8067_v61, %v6002_v58  ;;  %v3292_v14 = vpop.f32.mrf.mxu1  ;;  %v6327_v52 = vor.u32 %v8139_v39, %v6324_v43  ;;  %v6260_v58 = vld [vmem:[#allocation5 + $0x758] sm:$0xf0] }
  0xfe   :  { %3555 = vmatpush.bf16.msra.mxu2 %v6771_v7  ;;  %3530 = vmatpush.bf16.msra.mxu0 %v5683_v18  ;;  %v3316_v1 = vpop.f32.mrf.mxu3  ;;  %v8323_v5 = vld [vmem:[#allocation5 + $0xd54] sm:$0xf0]  ;;  %v6515_v10 = vor.u32 %v8195_v63, %v6514_v62  ;;  %v8251_v59 = vld [vmem:[#allocation5 + $0xb1c] sm:$0xf] }
  0xff   :  { %v8792_v7 = vadd.f32 %v3316_v1, %v3304_v0  ;;  %v5426_v11 = vld [vmem:[#allocation5 + $0x98] sm:$0xf]  ;;  %v7027_v15 = vor.u32 %v8323_v5, %v7026_v2  ;;  %v8379_v61 = vld [vmem:[#allocation5 + $0xf1c] sm:$0xf]  ;;  %v6263_v0 = vor.u32 %v8123_v56, %v6260_v58 }
 0x100   :  { %3568 = vmatpush.bf16.msra.mxu3 %v7283_v12  ;;  %3543 = vmatpush.bf16.msra.mxu1 %v6195_v21  ;;  %v7923_v12 = vld [vmem:[#allocation5 + $0xd4] sm:$0xf0]  ;;  %v7284_v62 = vld [vmem:[#allocation5 + $0xf58] sm:$0xf0] }
 0x101   :  { %v5938_v13 = vld [vmem:[#allocation5 + $0x498] sm:$0xf]  ;;  %v5427_v21 = vor.u32 %v7923_v12, %v5426_v11  ;;  %v7979_v2 = vld [vmem:[#allocation5 + $0x29c] sm:$0xf]  ;;  %v7287_v8 = vor.u32 %v8379_v61, %v7284_v62 }
 0x102   :  { %3556 = vmatpush.bf16.msra.mxu2 %v6707_v22  ;;  %3531 = vmatpush.bf16.msra.mxu0 %v5619_v35  ;;  %v8051_v16 = vld [vmem:[#allocation5 + $0x4d4] sm:$0xf0]  ;;  %v5684_v5 = vld [vmem:[#allocation5 + $0x2d8] sm:$0xf0] }
 0x103   :  { %v6450_v17 = vld [vmem:[#allocation5 + $0x898] sm:$0xf]  ;;  %v5939_v24 = vor.u32 %v8051_v16, %v5938_v13  ;;  %v6708_v11 = vld [vmem:[#allocation5 + $0xad8] sm:$0xf0]  ;;  %v5687_v14 = vor.u32 %v7979_v2, %v5684_v5 }
 0x104   :  { %3569 = vmatpush.bf16.msra.mxu3 %v7219_v27  ;;  %3544 = vmatpush.bf16.msra.mxu1 %v6131_v37  ;;  %v8179_v18 = vld [vmem:[#allocation5 + $0x8d4] sm:$0xf0]  ;;  %v3305_v29 = vpop.f32.mrf.mxu2  ;;  %v8011_v37 = vld [vmem:[#allocation5 + $0x39c] sm:$0xf] }
 0x105   :  { %v6962_v19 = vld [vmem:[#allocation5 + $0xc98] sm:$0xf]  ;;  %v6451_v25 = vor.u32 %v8179_v18, %v6450_v17  ;;  %v8363_v12 = vld [vmem:[#allocation5 + $0xe9c] sm:$0xf] }
 0x106   :  { %3557 = vmatpush.bf16.msra.mxu2 %v6643_v38  ;;  %3532 = vmatpush.bf16.msra.mxu0 %v5555_v53  ;;  %v8307_v20 = vld [vmem:[#allocation5 + $0xcd4] sm:$0xf0]  ;;  %v3318_v36 = vpop.f32.mrf.mxu3  ;;  %v5812_v38 = vld [vmem:[#allocation5 + $0x3d8] sm:$0xf0]  ;;  %v6839_v53 = vor.u32 %v8267_v44, %v6836_v45 }
 0x107   :  { %v5362_v22 = vld [vmem:[#allocation5 + $0x18] sm:$0xf]  ;;  %v6963_v30 = vor.u32 %v8307_v20, %v6962_v19  ;;  %v5815_v51 = vor.u32 %v8011_v37, %v5812_v38  ;;  %v7220_v13 = vld [vmem:[#allocation5 + $0xed8] sm:$0xf0]  ;;  %v626_v20 = vperm.slane %v8782_v3, 2 }
 0x108   :  { %3570 = vmatpush.bf16.msra.mxu3 %v7155_v46  ;;  %3545 = vmatpush.bf16.msra.mxu1 %v6067_v54  ;;  %v7907_v23 = vld [vmem:[#allocation5 + $0x54] sm:$0xf0]  ;;  %v7995_v54 = vld [vmem:[#allocation5 + $0x31c] sm:$0xf] }
 0x109   :  { %v5874_v26 = vld [vmem:[#allocation5 + $0x418] sm:$0xf]  ;;  %v5363_v40 = vor.u32 %v7907_v23, %v5362_v22  ;;  %v5620_v18 = vld [vmem:[#allocation5 + $0x258] sm:$0xf0] }
 0x10a   :  { %3558 = vmatpush.bf16.msra.mxu2 %v6579_v55  ;;  %3533 = vmatpush.bf16.msra.mxu0 %v5491_v6  ;;  %v8035_v27 = vld [vmem:[#allocation5 + $0x454] sm:$0xf0]  ;;  %v5748_v55 = vld [vmem:[#allocation5 + $0x358] sm:$0xf0] }
 0x10b   :  { %v6386_v28 = vld [vmem:[#allocation5 + $0x818] sm:$0xf]  ;;  %v5875_v46 = vor.u32 %v8035_v27, %v5874_v26  ;;  %v5751_v63 = vor.u32 %v7995_v54, %v5748_v55  ;;  %v8107_v6 = vld [vmem:[#allocation5 + $0x69c] sm:$0xf] }
 0x10c   :  { %3571 = vmatpush.bf16.msra.mxu3 %v7091_v60  ;;  %3546 = vmatpush.bf16.msra.mxu1 %v6003_v9  ;;  %v8163_v31 = vld [vmem:[#allocation5 + $0x854] sm:$0xf0]  ;;  %v6772_v60 = vld [vmem:[#allocation5 + $0xb58] sm:$0xf0] }
 0x10d   :  { %v6898_v32 = vld [vmem:[#allocation5 + $0xc18] sm:$0xf]  ;;  %v6387_v47 = vor.u32 %v8163_v31, %v6386_v28  ;;  %v6775_v1 = vor.u32 %v8251_v59, %v6772_v60  ;;  %v6196_v9 = vld [vmem:[#allocation5 + $0x6d8] sm:$0xf0] }
 0x10e   :  { %3559 = vmatpush.bf16.msra.mxu2 %v6515_v10  ;;  %v8291_v35 = vld [vmem:[#allocation5 + $0xc54] sm:$0xf0]  ;;  %3534 = vmatpush.bf16.msra.mxu0 %v5427_v21  ;;  %v8235_v10 = vld [vmem:[#allocation5 + $0xa9c] sm:$0xf]  ;;  %v6199_v16 = vor.u32 %v8107_v6, %v6196_v9  ;;  %v7223_v21 = vor.u32 %v8363_v12, %v7220_v13 }
 0x10f   :  { %v6899_v50 = vor.u32 %v8291_v35, %v6898_v32  ;;  %v6711_v17 = vor.u32 %v8235_v10, %v6708_v11  ;;  %v8091_v19 = vld [vmem:[#allocation5 + $0x61c] sm:$0xf] }
 0x110   :  { %3572 = vmatpush.bf16.msra.mxu3 %v7027_v15  ;;  %3547 = vmatpush.bf16.msra.mxu1 %v5939_v24  ;;  %v7963_v15 = vld [vmem:[#allocation5 + $0x21c] sm:$0xf] }
 0x111   :  { %v6132_v22 = vld [vmem:[#allocation5 + $0x658] sm:$0xf0]  ;;  %v5623_v27 = vor.u32 %v7963_v15, %v5620_v18 }
 0x112   :  { %3560 = vmatpush.bf16.msra.mxu2 %v6451_v25  ;;  %3535 = vmatpush.bf16.msra.mxu0 %v5363_v40  ;;  %v8219_v23 = vld [vmem:[#allocation5 + $0xa1c] sm:$0xf]  ;;  %v3329_v28 = vpop.f32.mrf.mxu0  ;;  %v6135_v29 = vor.u32 %v8091_v19, %v6132_v22 }
 0x113   :  { %v6644_v24 = vld [vmem:[#allocation5 + $0xa58] sm:$0xf0]  ;;  %v3330_v36 = vadd.f32 %v3329_v28, %v626_v20 }
 0x114   :  { %3573 = vmatpush.bf16.msra.mxu3 %v6963_v30  ;;  %3548 = vmatpush.bf16.msra.mxu1 %v5875_v46  ;;  %v8347_v25 = vld [vmem:[#allocation5 + $0xe1c] sm:$0xf]  ;;  %v6647_v30 = vor.u32 %v8219_v23, %v6644_v24  ;;  %v3342_v37 = vpop.f32.mrf.mxu1 }
 0x115   :  { %3536 = vmatmul.bf16.vlgmr.msra.gmra.mxu0 %v8756_v34  ;;  %v7156_v26 = vld [vmem:[#allocation5 + $0xe58] sm:$0xf0]  ;;  %v3343_v46 = vadd.f32 %v3342_v37, %v3330_v36  ;;  %v8148_v36 = vld [vmem:[#allocation5 + $0x7dc] sm:$0xf0] }
 0x116   :  { %3561 = vmatpush.bf16.msra.mxu2 %v6387_v47  ;;  %3580 = vmatpush.bf16.msrb.mxu0 %v5815_v51  ;;  %v7947_v31 = vld [vmem:[#allocation5 + $0x19c] sm:$0xf]  ;;  %v7159_v38 = vor.u32 %v8347_v25, %v7156_v26  ;;  %v6842_v37 = vld [vmem:[#allocation5 + $0xba0] sm:$0xf] }
 0x117   :  { %3549 = vmatmul.bf16.vlgmr.msra.gmra.mxu1 %v8760_v42  ;;  %v5556_v32 = vld [vmem:[#allocation5 + $0x1d8] sm:$0xf0] }
 0x118   :  { %3574 = vmatpush.bf16.msra.mxu3 %v6899_v50  ;;  %3593 = vmatpush.bf16.msrb.mxu1 %v6327_v52  ;;  %v8075_v35 = vld [vmem:[#allocation5 + $0x59c] sm:$0xf]  ;;  %v5559_v47 = vor.u32 %v7947_v31, %v5556_v32  ;;  %v8020_v31 = vld [vmem:[#allocation5 + $0x3dc] sm:$0xf0] }
 0x119   :  { %3562 = vmatmul.bf16.vlgmr.msra.gmra.mxu2 %v8754_v33  ;;  %v6068_v39 = vld [vmem:[#allocation5 + $0x5d8] sm:$0xf0]  ;;  %v6330_v32 = vld [vmem:[#allocation5 + $0x7a0] sm:$0xf] }
 0x11a   :  { %3606 = vmatpush.bf16.msrb.mxu2 %v6839_v53  ;;  %3581 = vmatpush.bf16.msrb.mxu0 %v5751_v63  ;;  %v8203_v40 = vld [vmem:[#allocation5 + $0x99c] sm:$0xf]  ;;  %v6071_v48 = vor.u32 %v8075_v35, %v6068_v39 }
 0x11b   :  { %3575 = vmatmul.bf16.vlgmr.msra.gmra.mxu3 %v8758_v41  ;;  %v6580_v43 = vld [vmem:[#allocation5 + $0x9d8] sm:$0xf0] }
 0x11c   :  { %3619 = vmatpush.bf16.msrb.mxu3 %v7351_v57  ;;  %3594 = vmatpush.bf16.msrb.mxu1 %v6263_v0  ;;  %v8331_v44 = vld [vmem:[#allocation5 + $0xd9c] sm:$0xf]  ;;  %v6583_v49 = vor.u32 %v8203_v40, %v6580_v43  ;;  %v3355_v53 = vpop.f32.mrf.mxu2  ;;  %v3331_v0 = vpop.f32.mrf.mxu0  ;;  %v7354_v43 = vld [vmem:[#allocation5 + $0xfa0] sm:$0xf] }
 0x11d   :  { %v7092_v45 = vld [vmem:[#allocation5 + $0xdd8] sm:$0xf0]  ;;  %v3356_v58 = vadd.f32 %v3355_v53, %v3343_v46  ;;  %v3344_v9 = vpop.f32.mrf.mxu1  ;;  %v8132_v53 = vld [vmem:[#allocation5 + $0x75c] sm:$0xf0] }
 0x11e   :  { %3607 = vmatpush.bf16.msrb.mxu2 %v6775_v1  ;;  %3582 = vmatpush.bf16.msrb.mxu0 %v5687_v14  ;;  %v7931_v50 = vld [vmem:[#allocation5 + $0x11c] sm:$0xf]  ;;  %v7095_v54 = vor.u32 %v8331_v44, %v7092_v45  ;;  %v3368_v59 = vpop.f32.mrf.mxu3  ;;  %v8404_v44 = vld [vmem:[#allocation5 + $0xfdc] sm:$0xf0] }
 0x11f   :  { %v5492_v51 = vld [vmem:[#allocation5 + $0x158] sm:$0xf0]  ;;  %v8799_v63 = vadd.f32 %v3368_v59, %v3356_v58  ;;  %v6202_v0 = vld [vmem:[#allocation5 + $0x6a0] sm:$0xf] }
 0x120   :  { %3620 = vmatpush.bf16.msrb.mxu3 %v7287_v8  ;;  %3595 = vmatpush.bf16.msrb.mxu1 %v6199_v16  ;;  %v8059_v52 = vld [vmem:[#allocation5 + $0x51c] sm:$0xf]  ;;  %v5495_v62 = vor.u32 %v7931_v50, %v5492_v51  ;;  %v8004_v50 = vld [vmem:[#allocation5 + $0x35c] sm:$0xf0] }
 0x121   :  { %v6004_v55 = vld [vmem:[#allocation5 + $0x558] sm:$0xf0]  ;;  %v6266_v51 = vld [vmem:[#allocation5 + $0x720] sm:$0xf] }
 0x122   :  { %3608 = vmatpush.bf16.msrb.mxu2 %v6711_v17  ;;  %3583 = vmatpush.bf16.msrb.mxu0 %v5623_v27  ;;  %v8187_v56 = vld [vmem:[#allocation5 + $0x91c] sm:$0xf]  ;;  %v6007_v1 = vor.u32 %v8059_v52, %v6004_v55  ;;  %v7355_v52 = vor.u32 %v8404_v44, %v7354_v43  ;;  %v8260_v55 = vld [vmem:[#allocation5 + $0xb5c] sm:$0xf0]  ;;  %v6267_v59 = vor.u32 %v8132_v53, %v6266_v51 }
 0x123   :  { %v6516_v57 = vld [vmem:[#allocation5 + $0x958] sm:$0xf0]  ;;  %v8372_v9 = vld [vmem:[#allocation5 + $0xedc] sm:$0xf0] }
 0x124   :  { %3621 = vmatpush.bf16.msrb.mxu3 %v7223_v21  ;;  %3596 = vmatpush.bf16.msrb.mxu1 %v6135_v29  ;;  %v8315_v60 = vld [vmem:[#allocation5 + $0xd1c] sm:$0xf]  ;;  %v6519_v2 = vor.u32 %v8187_v56, %v6516_v57  ;;  %v3357_v24 = vpop.f32.mrf.mxu2  ;;  %v7290_v56 = vld [vmem:[#allocation5 + $0xf20] sm:$0xf] }
 0x125   :  { %v7028_v61 = vld [vmem:[#allocation5 + $0xd58] sm:$0xf0]  ;;  %v8388_v57 = vld [vmem:[#allocation5 + $0xf5c] sm:$0xf0] }
 0x126   :  { %3609 = vmatpush.bf16.msrb.mxu2 %v6647_v30  ;;  %3584 = vmatpush.bf16.msrb.mxu0 %v5559_v47  ;;  %v7915_v5 = vld [vmem:[#allocation5 + $0x9c] sm:$0xf]  ;;  %v7031_v10 = vor.u32 %v8315_v60, %v7028_v61  ;;  %v3370_v29 = vpop.f32.mrf.mxu3  ;;  %v5818_v30 = vld [vmem:[#allocation5 + $0x3a0] sm:$0xf]  ;;  %v6331_v47 = vor.u32 %v8148_v36, %v6330_v32 }
 0x127   :  { %v5428_v6 = vld [vmem:[#allocation5 + $0xd8] sm:$0xf0]  ;;  %v5819_v46 = vor.u32 %v8020_v31, %v5818_v30  ;;  %v5690_v61 = vld [vmem:[#allocation5 + $0x2a0] sm:$0xf] }
 0x128   :  { %3622 = vmatpush.bf16.msrb.mxu3 %v7159_v38  ;;  %3597 = vmatpush.bf16.msrb.mxu1 %v6071_v48  ;;  %v8043_v8 = vld [vmem:[#allocation5 + $0x49c] sm:$0xf]  ;;  %v5431_v16 = vor.u32 %v7915_v5, %v5428_v6  ;;  %v8276_v38 = vld [vmem:[#allocation5 + $0xbdc] sm:$0xf0] }
 0x129   :  { %v5940_v11 = vld [vmem:[#allocation5 + $0x4d8] sm:$0xf0]  ;;  %v6843_v48 = vor.u32 %v8276_v38, %v6842_v37  ;;  %v6714_v5 = vld [vmem:[#allocation5 + $0xaa0] sm:$0xf] }
 0x12a   :  { %3610 = vmatpush.bf16.msrb.mxu2 %v6583_v49  ;;  %v8171_v12 = vld [vmem:[#allocation5 + $0x89c] sm:$0xf]  ;;  %3585 = vmatpush.bf16.msrb.mxu0 %v5495_v62  ;;  %v5943_v19 = vor.u32 %v8043_v8, %v5940_v11  ;;  %v5754_v49 = vld [vmem:[#allocation5 + $0x320] sm:$0xf] }
 0x12b   :  { %v6452_v13 = vld [vmem:[#allocation5 + $0x8d8] sm:$0xf0]  ;;  %v5755_v58 = vor.u32 %v8004_v50, %v5754_v49  ;;  %v7988_v62 = vld [vmem:[#allocation5 + $0x2dc] sm:$0xf0] }
 0x12c   :  { %3623 = vmatpush.bf16.msrb.mxu3 %v7095_v54  ;;  %v8299_v14 = vld [vmem:[#allocation5 + $0xc9c] sm:$0xf]  ;;  %3598 = vmatpush.bf16.msrb.mxu1 %v6007_v1  ;;  %v6455_v20 = vor.u32 %v8171_v12, %v6452_v13  ;;  %v6778_v54 = vld [vmem:[#allocation5 + $0xb20] sm:$0xf]  ;;  %v7291_v1 = vor.u32 %v8388_v57, %v7290_v56 }
 0x12d   :  { %v6964_v15 = vld [vmem:[#allocation5 + $0xcd8] sm:$0xf0]  ;;  %v6779_v60 = vor.u32 %v8260_v55, %v6778_v54  ;;  %v8244_v6 = vld [vmem:[#allocation5 + $0xadc] sm:$0xf0] }
 0x12e   :  { %v7899_v17 = vld [vmem:[#allocation5 + $0x1c] sm:$0xf]  ;;  %3611 = vmatpush.bf16.msrb.mxu2 %v6519_v2  ;;  %v6967_v25 = vor.u32 %v8299_v14, %v6964_v15  ;;  %3586 = vmatpush.bf16.msrb.mxu0 %v5431_v16  ;;  %v8116_v2 = vld [vmem:[#allocation5 + $0x6dc] sm:$0xf0]  ;;  %v6715_v13 = vor.u32 %v8244_v6, %v6714_v5  ;;  %v627_v16 = vperm.slane %v8782_v3, 3 }
 0x12f   :  { %v5364_v18 = vld [vmem:[#allocation5 + $0x58] sm:$0xf0]  ;;  %v7226_v8 = vld [vmem:[#allocation5 + $0xea0] sm:$0xf]  ;;  %v6203_v12 = vor.u32 %v8116_v2, %v6202_v0 }
 0x130   :  { %v8027_v21 = vld [vmem:[#allocation5 + $0x41c] sm:$0xf]  ;;  %3624 = vmatpush.bf16.msrb.mxu3 %v7031_v10  ;;  %v5367_v35 = vor.u32 %v7899_v17, %v5364_v18  ;;  %3599 = vmatpush.bf16.msrb.mxu1 %v5943_v19  ;;  %v5691_v10 = vor.u32 %v7988_v62, %v5690_v61  ;;  %v5626_v11 = vld [vmem:[#allocation5 + $0x220] sm:$0xf]  ;;  %v7227_v17 = vor.u32 %v8372_v9, %v7226_v8 }
 0x131   :  { %v5876_v22 = vld [vmem:[#allocation5 + $0x458] sm:$0xf0]  ;;  %v7972_v14 = vld [vmem:[#allocation5 + $0x25c] sm:$0xf0] }
 0x132   :  { %v8155_v23 = vld [vmem:[#allocation5 + $0x81c] sm:$0xf]  ;;  %3612 = vmatpush.bf16.msrb.mxu2 %v6455_v20  ;;  %v5879_v39 = vor.u32 %v8027_v21, %v5876_v22  ;;  %3587 = vmatpush.bf16.msrb.mxu0 %v5367_v35  ;;  %v6138_v15 = vld [vmem:[#allocation5 + $0x620] sm:$0xf]  ;;  %v3381_v24 = vpop.f32.mrf.mxu0 }
 0x133   :  { %v6388_v26 = vld [vmem:[#allocation5 + $0x858] sm:$0xf0]  ;;  %v8100_v18 = vld [vmem:[#allocation5 + $0x65c] sm:$0xf0]  ;;  %v3382_v30 = vadd.f32 %v3381_v24, %v627_v16 }
 0x134   :  { %v8283_v27 = vld [vmem:[#allocation5 + $0xc1c] sm:$0xf]  ;;  %v6391_v40 = vor.u32 %v8155_v23, %v6388_v26  ;;  %3625 = vmatpush.bf16.msrb.mxu3 %v6967_v25  ;;  %3600 = vmatpush.bf16.msrb.mxu1 %v5879_v39  ;;  %v6650_v19 = vld [vmem:[#allocation5 + $0xa20] sm:$0xf]  ;;  %v5627_v23 = vor.u32 %v7972_v14, %v5626_v11  ;;  %v6139_v25 = vor.u32 %v8100_v18, %v6138_v15  ;;  %v3394_v31 = vpop.f32.mrf.mxu1 }
 0x135   :  { %v6900_v28 = vld [vmem:[#allocation5 + $0xc58] sm:$0xf0]  ;;  %3588 = vmatmul.bf16.vlgmr.msrb.gmra.mxu0 %v8756_v34  ;;  %v8228_v20 = vld [vmem:[#allocation5 + $0xa5c] sm:$0xf0]  ;;  %v3395_v39 = vadd.f32 %v3394_v31, %v3382_v30  ;;  %v6332_v30 = vld [vmem:[#allocation5 + $0x7e0] sm:$0xf0] }
 0x136   :  { %v6903_v45 = vor.u32 %v8283_v27, %v6900_v28  ;;  %3613 = vmatpush.bf16.msrb.mxu2 %v6391_v40  ;;  %3632 = vmatpush.bf16.msra.mxu0 %v5819_v46  ;;  %v7162_v21 = vld [vmem:[#allocation5 + $0xe20] sm:$0xf]  ;;  %v6651_v26 = vor.u32 %v8228_v20, %v6650_v19  ;;  %v8268_v31 = vld [vmem:[#allocation5 + $0xba4] sm:$0xf] }
 0x137   :  { %3601 = vmatmul.bf16.vlgmr.msrb.gmra.mxu1 %v8760_v42  ;;  %v8356_v22 = vld [vmem:[#allocation5 + $0xe5c] sm:$0xf0] }
 0x138   :  { %3626 = vmatpush.bf16.msrb.mxu3 %v6903_v45  ;;  %3645 = vmatpush.bf16.msra.mxu1 %v6331_v47  ;;  %v5562_v27 = vld [vmem:[#allocation5 + $0x1a0] sm:$0xf]  ;;  %v7163_v3 = vor.u32 %v8356_v22, %v7162_v21 }
 0x139   :  { %3614 = vmatmul.bf16.vlgmr.msrb.gmra.mxu2 %v8754_v33  ;;  %v7956_v28 = vld [vmem:[#allocation5 + $0x1dc] sm:$0xf0] }
 0x13a   :  { %3658 = vmatpush.bf16.msra.mxu2 %v6843_v48  ;;  %3633 = vmatpush.bf16.msra.mxu0 %v5755_v58  ;;  %v6074_v29 = vld [vmem:[#allocation5 + $0x5a0] sm:$0xf]  ;;  %v5563_v40 = vor.u32 %v7956_v28, %v5562_v27  ;;  %v5820_v27 = vld [vmem:[#allocation5 + $0x3e0] sm:$0xf0] }
 0x13b   :  { %3627 = vmatmul.bf16.vlgmr.msrb.gmra.mxu3 %v8758_v41  ;;  %v8084_v32 = vld [vmem:[#allocation5 + $0x5dc] sm:$0xf0]  ;;  %v8140_v28 = vld [vmem:[#allocation5 + $0x7a4] sm:$0xf] }
 0x13c   :  { %3671 = vmatpush.bf16.msra.mxu3 %v7355_v52  ;;  %3646 = vmatpush.bf16.msra.mxu1 %v6267_v59  ;;  %v6586_v35 = vld [vmem:[#allocation5 + $0x9a0] sm:$0xf]  ;;  %v6075_v43 = vor.u32 %v8084_v32, %v6074_v29  ;;  %v3407_v48 = vpop.f32.mrf.mxu2  ;;  %v3383_v59 = vpop.f32.mrf.mxu0 }
 0x13d   :  { %v8212_v36 = vld [vmem:[#allocation5 + $0x9dc] sm:$0xf0]  ;;  %v3408_v53 = vadd.f32 %v3407_v48, %v3395_v39  ;;  %v3396_v2 = vpop.f32.mrf.mxu1  ;;  %v6268_v48 = vld [vmem:[#allocation5 + $0x760] sm:$0xf0] }
 0x13e   :  { %3659 = vmatpush.bf16.msra.mxu2 %v6779_v60  ;;  %3634 = vmatpush.bf16.msra.mxu0 %v5691_v10  ;;  %v7098_v37 = vld [vmem:[#allocation5 + $0xda0] sm:$0xf]  ;;  %v6587_v44 = vor.u32 %v8212_v36, %v6586_v35  ;;  %v3420_v54 = vpop.f32.mrf.mxu3  ;;  %v8396_v36 = vld [vmem:[#allocation5 + $0xfa4] sm:$0xf] }
 0x13f   :  { %v8340_v38 = vld [vmem:[#allocation5 + $0xddc] sm:$0xf0]  ;;  %v8806_v58 = vadd.f32 %v3420_v54, %v3408_v53  ;;  %v8108_v59 = vld [vmem:[#allocation5 + $0x6a4] sm:$0xf] }
 0x140   :  { %3672 = vmatpush.bf16.msra.mxu3 %v7291_v1  ;;  %3647 = vmatpush.bf16.msra.mxu1 %v6203_v12  ;;  %v5498_v45 = vld [vmem:[#allocation5 + $0x120] sm:$0xf]  ;;  %v7099_v49 = vor.u32 %v8340_v38, %v7098_v37  ;;  %v7356_v37 = vld [vmem:[#allocation5 + $0xfe0] sm:$0xf0] }
 0x141   :  { %v7940_v46 = vld [vmem:[#allocation5 + $0x15c] sm:$0xf0]  ;;  %v7228_v2 = vld [vmem:[#allocation5 + $0xee0] sm:$0xf0] }
 0x142   :  { %3660 = vmatpush.bf16.msra.mxu2 %v6715_v13  ;;  %3635 = vmatpush.bf16.msra.mxu0 %v5627_v23  ;;  %v6010_v47 = vld [vmem:[#allocation5 + $0x520] sm:$0xf]  ;;  %v5499_v57 = vor.u32 %v7940_v46, %v5498_v45  ;;  %v5756_v45 = vld [vmem:[#allocation5 + $0x360] sm:$0xf0] }
 0x143   :  { %v8068_v50 = vld [vmem:[#allocation5 + $0x55c] sm:$0xf0]  ;;  %v8124_v46 = vld [vmem:[#allocation5 + $0x724] sm:$0xf] }
 0x144   :  { %3673 = vmatpush.bf16.msra.mxu3 %v7227_v17  ;;  %3648 = vmatpush.bf16.msra.mxu1 %v6139_v25  ;;  %v6522_v51 = vld [vmem:[#allocation5 + $0x920] sm:$0xf]  ;;  %v6011_v60 = vor.u32 %v8068_v50, %v6010_v47  ;;  %v3409_v20 = vpop.f32.mrf.mxu2  ;;  %v7359_v47 = vor.u32 %v8396_v36, %v7356_v37  ;;  %v6780_v50 = vld [vmem:[#allocation5 + $0xb60] sm:$0xf0]  ;;  %v6271_v54 = vor.u32 %v8124_v46, %v6268_v48 }
 0x145   :  { %v8196_v52 = vld [vmem:[#allocation5 + $0x95c] sm:$0xf0]  ;;  %v8188_v48 = vld [vmem:[#allocation5 + $0x924] sm:$0xf] }
 0x146   :  { %3661 = vmatpush.bf16.msra.mxu2 %v6651_v26  ;;  %v7034_v55 = vld [vmem:[#allocation5 + $0xd20] sm:$0xf]  ;;  %3636 = vmatpush.bf16.msra.mxu0 %v5563_v40  ;;  %v6523_v61 = vor.u32 %v8196_v52, %v6522_v51  ;;  %v3422_v25 = vpop.f32.mrf.mxu3  ;;  %v8012_v26 = vld [vmem:[#allocation5 + $0x3a4] sm:$0xf]  ;;  %v6335_v40 = vor.u32 %v8140_v28, %v6332_v30 }
 0x147   :  { %v8324_v56 = vld [vmem:[#allocation5 + $0xd5c] sm:$0xf0]  ;;  %v5823_v39 = vor.u32 %v8012_v26, %v5820_v27  ;;  %v8380_v51 = vld [vmem:[#allocation5 + $0xf24] sm:$0xf] }
 0x148   :  { %3674 = vmatpush.bf16.msra.mxu3 %v7163_v3  ;;  %3649 = vmatpush.bf16.msra.mxu1 %v6075_v43  ;;  %v5434_v62 = vld [vmem:[#allocation5 + $0xa0] sm:$0xf]  ;;  %v7035_v5 = vor.u32 %v8324_v56, %v7034_v55  ;;  %v6844_v3 = vld [vmem:[#allocation5 + $0xbe0] sm:$0xf0] }
 0x149   :  { %v7924_v0 = vld [vmem:[#allocation5 + $0xdc] sm:$0xf0]  ;;  %v6847_v43 = vor.u32 %v8268_v31, %v6844_v3  ;;  %v7292_v52 = vld [vmem:[#allocation5 + $0xf60] sm:$0xf0] }
 0x14a   :  { %3662 = vmatpush.bf16.msra.mxu2 %v6587_v44  ;;  %v5946_v1 = vld [vmem:[#allocation5 + $0x4a0] sm:$0xf]  ;;  %3637 = vmatpush.bf16.msra.mxu0 %v5499_v57  ;;  %v5435_v12 = vor.u32 %v7924_v0, %v5434_v62  ;;  %v7996_v44 = vld [vmem:[#allocation5 + $0x324] sm:$0xf] }
 0x14b   :  { %v8052_v6 = vld [vmem:[#allocation5 + $0x4dc] sm:$0xf0]  ;;  %v5759_v53 = vor.u32 %v7996_v44, %v5756_v45  ;;  %v7980_v56 = vld [vmem:[#allocation5 + $0x2a4] sm:$0xf] }
 0x14c   :  { %3675 = vmatpush.bf16.msra.mxu3 %v7099_v49  ;;  %v6458_v8 = vld [vmem:[#allocation5 + $0x8a0] sm:$0xf]  ;;  %3650 = vmatpush.bf16.msra.mxu1 %v6011_v60  ;;  %v5947_v15 = vor.u32 %v8052_v6, %v5946_v1  ;;  %v8252_v49 = vld [vmem:[#allocation5 + $0xb24] sm:$0xf]  ;;  %v7295_v60 = vor.u32 %v8380_v51, %v7292_v52 }
 0x14d   :  { %v8180_v9 = vld [vmem:[#allocation5 + $0x8dc] sm:$0xf0]  ;;  %v6783_v55 = vor.u32 %v8252_v49, %v6780_v50  ;;  %v5692_v57 = vld [vmem:[#allocation5 + $0x2e0] sm:$0xf0] }
 0x14e   :  { %v6970_v10 = vld [vmem:[#allocation5 + $0xca0] sm:$0xf]  ;;  %3663 = vmatpush.bf16.msra.mxu2 %v6523_v61  ;;  %v6459_v16 = vor.u32 %v8180_v9, %v6458_v8  ;;  %3638 = vmatpush.bf16.msra.mxu0 %v5435_v12  ;;  %v6204_v61 = vld [vmem:[#allocation5 + $0x6e0] sm:$0xf0] }
 0x14f   :  { %v8308_v11 = vld [vmem:[#allocation5 + $0xcdc] sm:$0xf0]  ;;  %v8236_v62 = vld [vmem:[#allocation5 + $0xaa4] sm:$0xf]  ;;  %v6207_v8 = vor.u32 %v8108_v59, %v6204_v61 }
 0x150   :  { %v5370_v13 = vld [vmem:[#allocation5 + $0x20] sm:$0xf]  ;;  %3676 = vmatpush.bf16.msra.mxu3 %v7035_v5  ;;  %v6971_v21 = vor.u32 %v8308_v11, %v6970_v10  ;;  %3651 = vmatpush.bf16.msra.mxu1 %v5947_v15  ;;  %v6716_v0 = vld [vmem:[#allocation5 + $0xae0] sm:$0xf0]  ;;  %v5695_v5 = vor.u32 %v7980_v56, %v5692_v57 }
 0x151   :  { %v7908_v14 = vld [vmem:[#allocation5 + $0x5c] sm:$0xf0]  ;;  %v8364_v1 = vld [vmem:[#allocation5 + $0xea4] sm:$0xf]  ;;  %v6719_v9 = vor.u32 %v8236_v62, %v6716_v0 }
 0x152   :  { %v5882_v17 = vld [vmem:[#allocation5 + $0x420] sm:$0xf]  ;;  %v5371_v29 = vor.u32 %v7908_v14, %v5370_v13  ;;  %3664 = vmatpush.bf16.msra.mxu2 %v6459_v16  ;;  %v7964_v6 = vld [vmem:[#allocation5 + $0x224] sm:$0xf]  ;;  %v7231_v14 = vor.u32 %v8364_v1, %v7228_v2 }
 0x153   :  { %v8036_v18 = vld [vmem:[#allocation5 + $0x45c] sm:$0xf0]  ;;  %v5628_v10 = vld [vmem:[#allocation5 + $0x260] sm:$0xf0] }
 0x154   :  { %v6394_v19 = vld [vmem:[#allocation5 + $0x820] sm:$0xf]  ;;  %v5883_v32 = vor.u32 %v8036_v18, %v5882_v17  ;;  %3677 = vmatpush.bf16.msra.mxu3 %v6971_v21  ;;  %3639 = vmatpush.bf16.msra.mxu0 %v5371_v29  ;;  %v8092_v11 = vld [vmem:[#allocation5 + $0x624] sm:$0xf]  ;;  %v5631_v20 = vor.u32 %v7964_v6, %v5628_v10  ;;  %v3433_v21 = vpop.f32.mrf.mxu0  ;;  %v3446_v28 = vpop.f32.mrf.mxu1 }
 0x155   :  { %v8164_v22 = vld [vmem:[#allocation5 + $0x85c] sm:$0xf0]  ;;  %v6140_v15 = vld [vmem:[#allocation5 + $0x660] sm:$0xf0] }
 0x156   :  { %v6906_v23 = vld [vmem:[#allocation5 + $0xc20] sm:$0xf]  ;;  %v6395_v35 = vor.u32 %v8164_v22, %v6394_v19  ;;  %3652 = vmatpush.bf16.msra.mxu1 %v5883_v32  ;;  %v8220_v16 = vld [vmem:[#allocation5 + $0xa24] sm:$0xf]  ;;  %v6143_v22 = vor.u32 %v8092_v11, %v6140_v15 }
 0x157   :  { %v8292_v24 = vld [vmem:[#allocation5 + $0xc5c] sm:$0xf0]  ;;  %3640 = vmatmul.bf16.vlgmr.msra.gmra.mxu0 %v8756_v34  ;;  %v6652_v17 = vld [vmem:[#allocation5 + $0xa60] sm:$0xf0] }
 0x158   :  { %v6907_v38 = vor.u32 %v8292_v24, %v6906_v23  ;;  %3665 = vmatpush.bf16.msra.mxu2 %v6395_v35  ;;  %3684 = vmatpush.bf16.msrb.mxu0 %v5823_v39  ;;  %v8812_v12 = vld [vmem:[#allocation7] sm:$0xff]  ;;  %v6655_v23 = vor.u32 %v8220_v16, %v6652_v17 }
 0x159   :  { %3653 = vmatmul.bf16.vlgmr.msra.gmra.mxu1 %v8760_v42  ;;  %v628_v13 = vperm.slane %v8812_v12, 4  ;;  %v8348_v18 = vld [vmem:[#allocation5 + $0xe24] sm:$0xf] }
 0x15a   :  { %3678 = vmatpush.bf16.msra.mxu3 %v6907_v38  ;;  %3697 = vmatpush.bf16.msrb.mxu1 %v6335_v40  ;;  %v7164_v19 = vld [vmem:[#allocation5 + $0xe60] sm:$0xf0] }
 0x15b   :  { %3666 = vmatmul.bf16.vlgmr.msra.gmra.mxu2 %v8754_v33  ;;  %v7948_v24 = vld [vmem:[#allocation5 + $0x1a4] sm:$0xf]  ;;  %v3434_v27 = vadd.f32 %v3433_v21, %v628_v13  ;;  %v7167_v29 = vor.u32 %v8348_v18, %v7164_v19 }
 0x15c   :  { %3710 = vmatpush.bf16.msrb.mxu2 %v6847_v43  ;;  %3685 = vmatpush.bf16.msrb.mxu0 %v5759_v53  ;;  %v5564_v25 = vld [vmem:[#allocation5 + $0x1e0] sm:$0xf0]  ;;  %v3459_v45 = vpop.f32.mrf.mxu2  ;;  %v3435_v56 = vpop.f32.mrf.mxu0 }
 0x15d   :  { %3679 = vmatmul.bf16.vlgmr.msra.gmra.mxu3 %v8758_v41  ;;  %v8076_v26 = vld [vmem:[#allocation5 + $0x5a4] sm:$0xf]  ;;  %v3447_v36 = vadd.f32 %v3446_v28, %v3434_v27  ;;  %v5567_v37 = vor.u32 %v7948_v24, %v5564_v25  ;;  %v3448_v0 = vpop.f32.mrf.mxu1  ;;  %v5826_v25 = vld [vmem:[#allocation5 + $0x3a8] sm:$0xf] }
 0x15e   :  { %3723 = vmatpush.bf16.msrb.mxu3 %v7359_v47  ;;  %3698 = vmatpush.bf16.msrb.mxu1 %v6271_v54  ;;  %v6076_v30 = vld [vmem:[#allocation5 + $0x5e0] sm:$0xf0]  ;;  %v3472_v51 = vpop.f32.mrf.mxu3  ;;  %v6338_v27 = vld [vmem:[#allocation5 + $0x7a8] sm:$0xf] }
 0x15f   :  { %v8204_v31 = vld [vmem:[#allocation5 + $0x9a4] sm:$0xf]  ;;  %v6079_v38 = vor.u32 %v8076_v26, %v6076_v30  ;;  %v3460_v50 = vadd.f32 %v3459_v45, %v3447_v36  ;;  %v8021_v26 = vld [vmem:[#allocation5 + $0x3e4] sm:$0xf0] }
 0x160   :  { %3711 = vmatpush.bf16.msrb.mxu2 %v6783_v55  ;;  %3686 = vmatpush.bf16.msrb.mxu0 %v5695_v5  ;;  %v6588_v3 = vld [vmem:[#allocation5 + $0x9e0] sm:$0xf0]  ;;  %v6850_v30 = vld [vmem:[#allocation5 + $0xba8] sm:$0xf] }
 0x161   :  { %v8332_v32 = vld [vmem:[#allocation5 + $0xda4] sm:$0xf]  ;;  %v6591_v39 = vor.u32 %v8204_v31, %v6588_v3  ;;  %v8815_v55 = vadd.f32 %v3472_v51, %v3460_v50  ;;  %v8277_v31 = vld [vmem:[#allocation5 + $0xbe4] sm:$0xf0] }
 0x162   :  { %3724 = vmatpush.bf16.msrb.mxu3 %v7295_v60  ;;  %3699 = vmatpush.bf16.msrb.mxu1 %v6207_v8  ;;  %v7100_v35 = vld [vmem:[#allocation5 + $0xde0] sm:$0xf0]  ;;  %v8405_v36 = vld [vmem:[#allocation5 + $0xfe4] sm:$0xf0] }
 0x163   :  { %v7932_v40 = vld [vmem:[#allocation5 + $0x124] sm:$0xf]  ;;  %v7103_v46 = vor.u32 %v8332_v32, %v7100_v35  ;;  %v7362_v35 = vld [vmem:[#allocation5 + $0xfa8] sm:$0xf] }
 0x164   :  { %3712 = vmatpush.bf16.msrb.mxu2 %v6719_v9  ;;  %3687 = vmatpush.bf16.msrb.mxu0 %v5631_v20  ;;  %v5500_v43 = vld [vmem:[#allocation5 + $0x160] sm:$0xf0]  ;;  %v3461_v19 = vpop.f32.mrf.mxu2  ;;  %v6274_v45 = vld [vmem:[#allocation5 + $0x728] sm:$0xf] }
 0x165   :  { %v8060_v44 = vld [vmem:[#allocation5 + $0x524] sm:$0xf]  ;;  %v5503_v54 = vor.u32 %v7932_v40, %v5500_v43  ;;  %v6851_v40 = vor.u32 %v8277_v31, %v6850_v30  ;;  %v5762_v43 = vld [vmem:[#allocation5 + $0x328] sm:$0xf] }
 0x166   :  { %3725 = vmatpush.bf16.msrb.mxu3 %v7231_v14  ;;  %3700 = vmatpush.bf16.msrb.mxu1 %v6143_v22  ;;  %v6012_v47 = vld [vmem:[#allocation5 + $0x560] sm:$0xf0]  ;;  %v3474_v24 = vpop.f32.mrf.mxu3  ;;  %v7298_v50 = vld [vmem:[#allocation5 + $0xf28] sm:$0xf] }
 0x167   :  { %v6524_v49 = vld [vmem:[#allocation5 + $0x960] sm:$0xf0]  ;;  %v6015_v57 = vor.u32 %v8060_v44, %v6012_v47  ;;  %v8005_v44 = vld [vmem:[#allocation5 + $0x364] sm:$0xf0] }
 0x168   :  { %3713 = vmatpush.bf16.msrb.mxu2 %v6655_v23  ;;  %v8316_v52 = vld [vmem:[#allocation5 + $0xd24] sm:$0xf]  ;;  %3688 = vmatpush.bf16.msrb.mxu0 %v5567_v37  ;;  %v6527_v59 = vor.u32 %v8188_v48, %v6524_v49  ;;  %v8133_v47 = vld [vmem:[#allocation5 + $0x764] sm:$0xf0] }
 0x169   :  { %v7036_v53 = vld [vmem:[#allocation5 + $0xd60] sm:$0xf0]  ;;  %v6786_v48 = vld [vmem:[#allocation5 + $0xb28] sm:$0xf] }
 0x16a   :  { %3726 = vmatpush.bf16.msrb.mxu3 %v7167_v29  ;;  %3701 = vmatpush.bf16.msrb.mxu1 %v6079_v38  ;;  %v7916_v60 = vld [vmem:[#allocation5 + $0xa4] sm:$0xf]  ;;  %v7039_v1 = vor.u32 %v8316_v52, %v7036_v53  ;;  %v8149_v29 = vld [vmem:[#allocation5 + $0x7e4] sm:$0xf0]  ;;  %v5827_v38 = vor.u32 %v8021_v26, %v5826_v25  ;;  %v5763_v52 = vor.u32 %v8005_v44, %v5762_v43 }
 0x16b   :  { %v5436_v61 = vld [vmem:[#allocation5 + $0xe0] sm:$0xf0]  ;;  %v8261_v49 = vld [vmem:[#allocation5 + $0xb64] sm:$0xf0]  ;;  %v6275_v53 = vor.u32 %v8133_v47, %v6274_v45 }
 0x16c   :  { %3714 = vmatpush.bf16.msrb.mxu2 %v6591_v39  ;;  %v8044_v62 = vld [vmem:[#allocation5 + $0x4a4] sm:$0xf]  ;;  %3689 = vmatpush.bf16.msrb.mxu0 %v5503_v54  ;;  %v5439_v10 = vor.u32 %v7916_v60, %v5436_v61  ;;  %v6339_v39 = vor.u32 %v8149_v29, %v6338_v27  ;;  %v8389_v51 = vld [vmem:[#allocation5 + $0xf64] sm:$0xf0]  ;;  %v6787_v54 = vor.u32 %v8261_v49, %v6786_v48 }
 0x16d   :  { %v5948_v2 = vld [vmem:[#allocation5 + $0x4e0] sm:$0xf0]  ;;  %v5698_v56 = vld [vmem:[#allocation5 + $0x2a8] sm:$0xf]  ;;  %v7299_v60 = vor.u32 %v8389_v51, %v7298_v50 }
 0x16e   :  { %3727 = vmatpush.bf16.msrb.mxu3 %v7103_v46  ;;  %v8172_v5 = vld [vmem:[#allocation5 + $0x8a4] sm:$0xf]  ;;  %3702 = vmatpush.bf16.msrb.mxu1 %v6015_v57  ;;  %v5951_v14 = vor.u32 %v8044_v62, %v5948_v2  ;;  %v7363_v46 = vor.u32 %v8405_v36, %v7362_v35  ;;  %v7989_v57 = vld [vmem:[#allocation5 + $0x2e4] sm:$0xf0] }
 0x16f   :  { %v6460_v6 = vld [vmem:[#allocation5 + $0x8e0] sm:$0xf0]  ;;  %v8117_v61 = vld [vmem:[#allocation5 + $0x6e4] sm:$0xf0] }
 0x170   :  { %v8300_v8 = vld [vmem:[#allocation5 + $0xca4] sm:$0xf]  ;;  %3715 = vmatpush.bf16.msrb.mxu2 %v6527_v59  ;;  %v6463_v15 = vor.u32 %v8172_v5, %v6460_v6  ;;  %3690 = vmatpush.bf16.msrb.mxu0 %v5439_v10  ;;  %v6210_v59 = vld [vmem:[#allocation5 + $0x6a8] sm:$0xf]  ;;  %v5699_v5 = vor.u32 %v7989_v57, %v5698_v56 }
 0x171   :  { %v6972_v9 = vld [vmem:[#allocation5 + $0xce0] sm:$0xf0]  ;;  %v6722_v62 = vld [vmem:[#allocation5 + $0xaa8] sm:$0xf] }
 0x172   :  { %v7900_v11 = vld [vmem:[#allocation5 + $0x24] sm:$0xf]  ;;  %3728 = vmatpush.bf16.msrb.mxu3 %v7039_v1  ;;  %v6975_v20 = vor.u32 %v8300_v8, %v6972_v9  ;;  %3703 = vmatpush.bf16.msrb.mxu1 %v5951_v14  ;;  %v8245_v0 = vld [vmem:[#allocation5 + $0xae4] sm:$0xf0]  ;;  %v6211_v8 = vor.u32 %v8117_v61, %v6210_v59 }
 0x173   :  { %v5372_v13 = vld [vmem:[#allocation5 + $0x60] sm:$0xf0]  ;;  %v7234_v1 = vld [vmem:[#allocation5 + $0xea8] sm:$0xf]  ;;  %v6723_v9 = vor.u32 %v8245_v0, %v6722_v62 }
 0x174   :  { %v8028_v16 = vld [vmem:[#allocation5 + $0x424] sm:$0xf]  ;;  %v5375_v28 = vor.u32 %v7900_v11, %v5372_v13  ;;  %3716 = vmatpush.bf16.msrb.mxu2 %v6463_v15  ;;  %v8373_v2 = vld [vmem:[#allocation5 + $0xee4] sm:$0xf0]  ;;  %v629_v13 = vperm.slane %v8812_v12, 5 }
 0x175   :  { %v5884_v17 = vld [vmem:[#allocation5 + $0x460] sm:$0xf0]  ;;  %v5634_v6 = vld [vmem:[#allocation5 + $0x228] sm:$0xf]  ;;  %v7235_v14 = vor.u32 %v8373_v2, %v7234_v1 }
 0x176   :  { %v8156_v18 = vld [vmem:[#allocation5 + $0x824] sm:$0xf]  ;;  %v5887_v3 = vor.u32 %v8028_v16, %v5884_v17  ;;  %3729 = vmatpush.bf16.msrb.mxu3 %v6975_v20  ;;  %3691 = vmatpush.bf16.msrb.mxu0 %v5375_v28  ;;  %v7973_v10 = vld [vmem:[#allocation5 + $0x264] sm:$0xf0]  ;;  %v3498_v28 = vpop.f32.mrf.mxu1 }
 0x177   :  { %v6396_v21 = vld [vmem:[#allocation5 + $0x860] sm:$0xf0]  ;;  %v6146_v11 = vld [vmem:[#allocation5 + $0x628] sm:$0xf]  ;;  %v5635_v20 = vor.u32 %v7973_v10, %v5634_v6 }
 0x178   :  { %v8284_v22 = vld [vmem:[#allocation5 + $0xc24] sm:$0xf]  ;;  %v6399_v32 = vor.u32 %v8156_v18, %v6396_v21  ;;  %3704 = vmatpush.bf16.msrb.mxu1 %v5887_v3  ;;  %v8101_v15 = vld [vmem:[#allocation5 + $0x664] sm:$0xf0]  ;;  %v3485_v21 = vpop.f32.mrf.mxu0 }
 0x179   :  { %v6908_v23 = vld [vmem:[#allocation5 + $0xc60] sm:$0xf0]  ;;  %3692 = vmatmul.bf16.vlgmr.msrb.gmra.mxu0 %v8756_v34  ;;  %v6658_v16 = vld [vmem:[#allocation5 + $0xa28] sm:$0xf]  ;;  %v3486_v27 = vadd.f32 %v3485_v21, %v629_v13 }
 0x17a   :  { %v6911_v37 = vor.u32 %v8284_v22, %v6908_v23  ;;  %3717 = vmatpush.bf16.msrb.mxu2 %v6399_v32  ;;  %3736 = vmatpush.bf16.msra.mxu0 %v5827_v38  ;;  %v8229_v17 = vld [vmem:[#allocation5 + $0xa64] sm:$0xf0]  ;;  %v6147_v22 = vor.u32 %v8101_v15, %v6146_v11 }
 0x17b   :  { %3705 = vmatmul.bf16.vlgmr.msrb.gmra.mxu1 %v8760_v42  ;;  %v7170_v18 = vld [vmem:[#allocation5 + $0xe28] sm:$0xf]  ;;  %v6659_v23 = vor.u32 %v8229_v17, %v6658_v16  ;;  %v3499_v36 = vadd.f32 %v3498_v28, %v3486_v27  ;;  %v5828_v27 = vld [vmem:[#allocation5 + $0x3e8] sm:$0xf0] }
 0x17c   :  { %3730 = vmatpush.bf16.msrb.mxu3 %v6911_v37  ;;  %3749 = vmatpush.bf16.msra.mxu1 %v6339_v39  ;;  %v8357_v19 = vld [vmem:[#allocation5 + $0xe64] sm:$0xf0]  ;;  %v3511_v45 = vpop.f32.mrf.mxu2  ;;  %v8141_v28 = vld [vmem:[#allocation5 + $0x7ac] sm:$0xf] }
 0x17d   :  { %3718 = vmatmul.bf16.vlgmr.msrb.gmra.mxu2 %v8754_v33  ;;  %v5570_v24 = vld [vmem:[#allocation5 + $0x1a8] sm:$0xf]  ;;  %v7171_v29 = vor.u32 %v8357_v19, %v7170_v18  ;;  %v3512_v50 = vadd.f32 %v3511_v45, %v3499_v36  ;;  %v8397_v36 = vld [vmem:[#allocation5 + $0xfac] sm:$0xf] }
 0x17e   :  { %3762 = vmatpush.bf16.msra.mxu2 %v6851_v40  ;;  %3737 = vmatpush.bf16.msra.mxu0 %v5763_v52  ;;  %v7957_v25 = vld [vmem:[#allocation5 + $0x1e4] sm:$0xf0]  ;;  %v3524_v51 = vpop.f32.mrf.mxu3  ;;  %v3500_v1 = vpop.f32.mrf.mxu1  ;;  %v5764_v45 = vld [vmem:[#allocation5 + $0x368] sm:$0xf0] }
 0x17f   :  { %3731 = vmatmul.bf16.vlgmr.msrb.gmra.mxu3 %v8758_v41  ;;  %v6082_v26 = vld [vmem:[#allocation5 + $0x5a8] sm:$0xf]  ;;  %v5571_v37 = vor.u32 %v7957_v25, %v5570_v24  ;;  %v8822_v56 = vadd.f32 %v3524_v51, %v3512_v50  ;;  %v6788_v50 = vld [vmem:[#allocation5 + $0xb68] sm:$0xf0] }
 0x180   :  { %3775 = vmatpush.bf16.msra.mxu3 %v7363_v46  ;;  %3750 = vmatpush.bf16.msra.mxu1 %v6275_v53  ;;  %v8085_v30 = vld [vmem:[#allocation5 + $0x5e4] sm:$0xf0]  ;;  %v3487_v57 = vpop.f32.mrf.mxu0  ;;  %v8381_v51 = vld [vmem:[#allocation5 + $0xf2c] sm:$0xf] }
 0x181   :  { %v6594_v31 = vld [vmem:[#allocation5 + $0x9a8] sm:$0xf]  ;;  %v6083_v38 = vor.u32 %v8085_v30, %v6082_v26  ;;  %v8013_v26 = vld [vmem:[#allocation5 + $0x3ac] sm:$0xf] }
 0x182   :  { %3763 = vmatpush.bf16.msra.mxu2 %v6787_v54  ;;  %3738 = vmatpush.bf16.msra.mxu0 %v5699_v5  ;;  %v8213_v3 = vld [vmem:[#allocation5 + $0x9e4] sm:$0xf0]  ;;  %v6340_v30 = vld [vmem:[#allocation5 + $0x7e8] sm:$0xf0] }
 0x183   :  { %v7106_v32 = vld [vmem:[#allocation5 + $0xda8] sm:$0xf]  ;;  %v6595_v39 = vor.u32 %v8213_v3, %v6594_v31  ;;  %v8269_v31 = vld [vmem:[#allocation5 + $0xbac] sm:$0xf] }
 0x184   :  { %3776 = vmatpush.bf16.msra.mxu3 %v7299_v60  ;;  %3751 = vmatpush.bf16.msra.mxu1 %v6211_v8  ;;  %v8341_v35 = vld [vmem:[#allocation5 + $0xde4] sm:$0xf0]  ;;  %v6852_v3 = vld [vmem:[#allocation5 + $0xbe8] sm:$0xf0] }
 0x185   :  { %v5506_v40 = vld [vmem:[#allocation5 + $0x128] sm:$0xf]  ;;  %v7107_v46 = vor.u32 %v8341_v35, %v7106_v32  ;;  %v8237_v1 = vld [vmem:[#allocation5 + $0xaac] sm:$0xf] }
 0x186   :  { %3764 = vmatpush.bf16.msra.mxu2 %v6723_v9  ;;  %3739 = vmatpush.bf16.msra.mxu0 %v5635_v20  ;;  %v7941_v43 = vld [vmem:[#allocation5 + $0x164] sm:$0xf0]  ;;  %v3513_v20 = vpop.f32.mrf.mxu2  ;;  %v3526_v25 = vpop.f32.mrf.mxu3 }
 0x187   :  { %v6018_v44 = vld [vmem:[#allocation5 + $0x528] sm:$0xf]  ;;  %v5507_v54 = vor.u32 %v7941_v43, %v5506_v40  ;;  %v6343_v40 = vor.u32 %v8141_v28, %v6340_v30  ;;  %v6855_v43 = vor.u32 %v8269_v31, %v6852_v3  ;;  %v8349_v20 = vld [vmem:[#allocation5 + $0xe2c] sm:$0xf] }
 0x188   :  { %3777 = vmatpush.bf16.msra.mxu3 %v7235_v14  ;;  %3752 = vmatpush.bf16.msra.mxu1 %v6147_v22  ;;  %v8069_v47 = vld [vmem:[#allocation5 + $0x564] sm:$0xf0]  ;;  %v8077_v28 = vld [vmem:[#allocation5 + $0x5ac] sm:$0xf] }
 0x189   :  { %v6530_v48 = vld [vmem:[#allocation5 + $0x928] sm:$0xf]  ;;  %v6019_v59 = vor.u32 %v8069_v47, %v6018_v44  ;;  %v7997_v44 = vld [vmem:[#allocation5 + $0x32c] sm:$0xf] }
 0x18a   :  { %3765 = vmatpush.bf16.msra.mxu2 %v6659_v23  ;;  %v8197_v49 = vld [vmem:[#allocation5 + $0x964] sm:$0xf0]  ;;  %3740 = vmatpush.bf16.msra.mxu0 %v5571_v37  ;;  %v7364_v37 = vld [vmem:[#allocation5 + $0xfe8] sm:$0xf0] }
 0x18b   :  { %v7042_v52 = vld [vmem:[#allocation5 + $0xd28] sm:$0xf]  ;;  %v6531_v60 = vor.u32 %v8197_v49, %v6530_v48  ;;  %v7367_v47 = vor.u32 %v8397_v36, %v7364_v37  ;;  %v6276_v48 = vld [vmem:[#allocation5 + $0x768] sm:$0xf0] }
 0x18c   :  { %3778 = vmatpush.bf16.msra.mxu3 %v7171_v29  ;;  %v8325_v53 = vld [vmem:[#allocation5 + $0xd64] sm:$0xf0]  ;;  %3753 = vmatpush.bf16.msra.mxu1 %v6083_v38  ;;  %v8253_v49 = vld [vmem:[#allocation5 + $0xb2c] sm:$0xf] }
 0x18d   :  { %v5442_v61 = vld [vmem:[#allocation5 + $0xa8] sm:$0xf]  ;;  %v7043_v2 = vor.u32 %v8325_v53, %v7042_v52  ;;  %v7300_v52 = vld [vmem:[#allocation5 + $0xf68] sm:$0xf0]  ;;  %v5767_v53 = vor.u32 %v7997_v44, %v5764_v45  ;;  %v6791_v57 = vor.u32 %v8253_v49, %v6788_v50 }
 0x18e   :  { %3766 = vmatpush.bf16.msra.mxu2 %v6595_v39  ;;  %v7925_v62 = vld [vmem:[#allocation5 + $0xe4] sm:$0xf0]  ;;  %3741 = vmatpush.bf16.msra.mxu0 %v5507_v54  ;;  %v5831_v39 = vor.u32 %v8013_v26, %v5828_v27  ;;  %v7949_v26 = vld [vmem:[#allocation5 + $0x1ac] sm:$0xf] }
 0x18f   :  { %v5954_v0 = vld [vmem:[#allocation5 + $0x4a8] sm:$0xf]  ;;  %v5443_v11 = vor.u32 %v7925_v62, %v5442_v61  ;;  %v8109_v61 = vld [vmem:[#allocation5 + $0x6ac] sm:$0xf]  ;;  %v7303_v62 = vor.u32 %v8381_v51, %v7300_v52 }
 0x190   :  { %3779 = vmatpush.bf16.msra.mxu3 %v7107_v46  ;;  %v8053_v5 = vld [vmem:[#allocation5 + $0x4e4] sm:$0xf0]  ;;  %3754 = vmatpush.bf16.msra.mxu1 %v6019_v59  ;;  %v8125_v46 = vld [vmem:[#allocation5 + $0x72c] sm:$0xf] }
 0x191   :  { %v6466_v6 = vld [vmem:[#allocation5 + $0x8a8] sm:$0xf]  ;;  %v5955_v15 = vor.u32 %v8053_v5, %v5954_v0  ;;  %v6279_v54 = vor.u32 %v8125_v46, %v6276_v48  ;;  %v7981_v59 = vld [vmem:[#allocation5 + $0x2ac] sm:$0xf] }
 0x192   :  { %v8181_v8 = vld [vmem:[#allocation5 + $0x8e4] sm:$0xf0]  ;;  %3767 = vmatpush.bf16.msra.mxu2 %v6531_v60  ;;  %3742 = vmatpush.bf16.msra.mxu0 %v5443_v11  ;;  %v5700_v60 = vld [vmem:[#allocation5 + $0x2e8] sm:$0xf0] }
 0x193   :  { %v6978_v9 = vld [vmem:[#allocation5 + $0xca8] sm:$0xf]  ;;  %v6467_v16 = vor.u32 %v8181_v8, %v6466_v6  ;;  %v6212_v0 = vld [vmem:[#allocation5 + $0x6e8] sm:$0xf0]  ;;  %v5703_v8 = vor.u32 %v7981_v59, %v5700_v60 }
 0x194   :  { %v8309_v10 = vld [vmem:[#allocation5 + $0xce4] sm:$0xf0]  ;;  %3780 = vmatpush.bf16.msra.mxu3 %v7043_v2  ;;  %3755 = vmatpush.bf16.msra.mxu1 %v5955_v15  ;;  %v6724_v2 = vld [vmem:[#allocation5 + $0xae8] sm:$0xf0]  ;;  %v630_v15 = vperm.slane %v8812_v12, 6  ;;  %v3550_v30 = vpop.f32.mrf.mxu1 }
 0x195   :  { %v5378_v13 = vld [vmem:[#allocation5 + $0x28] sm:$0xf]  ;;  %v6979_v21 = vor.u32 %v8309_v10, %v6978_v9  ;;  %v8365_v5 = vld [vmem:[#allocation5 + $0xeac] sm:$0xf]  ;;  %v6215_v10 = vor.u32 %v8109_v61, %v6212_v0  ;;  %v6727_v11 = vor.u32 %v8237_v1, %v6724_v2 }
 0x196   :  { %v7909_v14 = vld [vmem:[#allocation5 + $0x64] sm:$0xf0]  ;;  %3768 = vmatpush.bf16.msra.mxu2 %v6467_v16  ;;  %v7236_v6 = vld [vmem:[#allocation5 + $0xee8] sm:$0xf0] }
 0x197   :  { %v5890_v17 = vld [vmem:[#allocation5 + $0x428] sm:$0xf]  ;;  %v5379_v29 = vor.u32 %v7909_v14, %v5378_v13  ;;  %v7965_v9 = vld [vmem:[#allocation5 + $0x22c] sm:$0xf]  ;;  %v7239_v16 = vor.u32 %v8365_v5, %v7236_v6 }
 0x198   :  { %v8037_v18 = vld [vmem:[#allocation5 + $0x464] sm:$0xf0]  ;;  %3781 = vmatpush.bf16.msra.mxu3 %v6979_v21  ;;  %v5636_v13 = vld [vmem:[#allocation5 + $0x268] sm:$0xf0] }
 0x199   :  { %v6402_v19 = vld [vmem:[#allocation5 + $0x828] sm:$0xf]  ;;  %v5891_v32 = vor.u32 %v8037_v18, %v5890_v17  ;;  %3743 = vmatpush.bf16.msra.mxu0 %v5379_v29  ;;  %v8093_v14 = vld [vmem:[#allocation5 + $0x62c] sm:$0xf] }
 0x19a   :  { %v8165_v22 = vld [vmem:[#allocation5 + $0x864] sm:$0xf0]  ;;  %v6148_v17 = vld [vmem:[#allocation5 + $0x668] sm:$0xf0] }
 0x19b   :  { %v6914_v23 = vld [vmem:[#allocation5 + $0xc28] sm:$0xf]  ;;  %v6403_v35 = vor.u32 %v8165_v22, %v6402_v19  ;;  %3756 = vmatpush.bf16.msra.mxu1 %v5891_v32  ;;  %v8221_v18 = vld [vmem:[#allocation5 + $0xa2c] sm:$0xf]  ;;  %v5639_v22 = vor.u32 %v7965_v9, %v5636_v13 }
 0x19c   :  { %v8293_v24 = vld [vmem:[#allocation5 + $0xc64] sm:$0xf0]  ;;  %3744 = vmatmul.bf16.vlgmr.msra.gmra.mxu0 %v8756_v34  ;;  %v6660_v19 = vld [vmem:[#allocation5 + $0xa68] sm:$0xf0]  ;;  %v3552_v6 = vpop.f32.mrf.mxu1 }
 0x19d   :  { %v6915_v38 = vor.u32 %v8293_v24, %v6914_v23  ;;  %3769 = vmatpush.bf16.msra.mxu2 %v6403_v35  ;;  %3788 = vmatpush.bf16.msrb.mxu0 %v5831_v39  ;;  %v7172_v21 = vld [vmem:[#allocation5 + $0xe68] sm:$0xf0]  ;;  %v3537_v23 = vpop.f32.mrf.mxu0  ;;  %v6151_v24 = vor.u32 %v8093_v14, %v6148_v17  ;;  %v6663_v25 = vor.u32 %v8221_v18, %v6660_v19  ;;  %v8118_v6 = vld [vmem:[#allocation5 + $0x6ec] sm:$0xf0] }
 0x19e   :  { %3757 = vmatmul.bf16.vlgmr.msra.gmra.mxu1 %v8760_v42  ;;  %v5572_v27 = vld [vmem:[#allocation5 + $0x1e8] sm:$0xf0]  ;;  %v3538_v29 = vadd.f32 %v3537_v23, %v630_v15  ;;  %v7175_v31 = vor.u32 %v8349_v20, %v7172_v21 }
 0x19f   :  { %3782 = vmatpush.bf16.msra.mxu3 %v6915_v38  ;;  %3801 = vmatpush.bf16.msrb.mxu1 %v6343_v40  ;;  %v6084_v3 = vld [vmem:[#allocation5 + $0x5e8] sm:$0xf0]  ;;  %v5575_v39 = vor.u32 %v7949_v26, %v5572_v27 }
 0x1a0   :  { %3770 = vmatmul.bf16.vlgmr.msra.gmra.mxu2 %v8754_v33  ;;  %v8205_v32 = vld [vmem:[#allocation5 + $0x9ac] sm:$0xf]  ;;  %v3551_v38 = vadd.f32 %v3550_v30, %v3538_v29  ;;  %v6087_v40 = vor.u32 %v8077_v28, %v6084_v3  ;;  %v5834_v29 = vld [vmem:[#allocation5 + $0x3b0] sm:$0xf] }
 0x1a1   :  { %3814 = vmatpush.bf16.msrb.mxu2 %v6855_v43  ;;  %3789 = vmatpush.bf16.msrb.mxu0 %v5767_v53  ;;  %v6596_v35 = vld [vmem:[#allocation5 + $0x9e8] sm:$0xf0]  ;;  %v3576_v53 = vpop.f32.mrf.mxu3  ;;  %v8022_v30 = vld [vmem:[#allocation5 + $0x3ec] sm:$0xf0] }
 0x1a2   :  { %3783 = vmatmul.bf16.vlgmr.msra.gmra.mxu3 %v8758_v41  ;;  %v8333_v36 = vld [vmem:[#allocation5 + $0xdac] sm:$0xf]  ;;  %v6599_v43 = vor.u32 %v8205_v32, %v6596_v35  ;;  %v8150_v32 = vld [vmem:[#allocation5 + $0x7ec] sm:$0xf0] }
 0x1a3   :  { %3827 = vmatpush.bf16.msrb.mxu3 %v7367_v47  ;;  %3802 = vmatpush.bf16.msrb.mxu1 %v6279_v54  ;;  %v7108_v37 = vld [vmem:[#allocation5 + $0xde8] sm:$0xf0]  ;;  %v3563_v47 = vpop.f32.mrf.mxu2  ;;  %v6858_v35 = vld [vmem:[#allocation5 + $0xbb0] sm:$0xf] }
 0x1a4   :  { %v7933_v44 = vld [vmem:[#allocation5 + $0x12c] sm:$0xf]  ;;  %v7111_v48 = vor.u32 %v8333_v36, %v7108_v37  ;;  %v3564_v52 = vadd.f32 %v3563_v47, %v3551_v38  ;;  %v8278_v36 = vld [vmem:[#allocation5 + $0xbec] sm:$0xf0] }
 0x1a5   :  { %3815 = vmatpush.bf16.msrb.mxu2 %v6791_v57  ;;  %3790 = vmatpush.bf16.msrb.mxu0 %v5703_v8  ;;  %v5508_v45 = vld [vmem:[#allocation5 + $0x168] sm:$0xf0]  ;;  %v3539_v61 = vpop.f32.mrf.mxu0  ;;  %v5770_v47 = vld [vmem:[#allocation5 + $0x330] sm:$0xf] }
 0x1a6   :  { %v8061_v46 = vld [vmem:[#allocation5 + $0x52c] sm:$0xf]  ;;  %v5511_v59 = vor.u32 %v7933_v44, %v5508_v45  ;;  %v8829_v60 = vadd.f32 %v3576_v53, %v3564_v52  ;;  %v5835_v44 = vor.u32 %v8022_v30, %v5834_v29  ;;  %v6794_v52 = vld [vmem:[#allocation5 + $0xb30] sm:$0xf] }
 0x1a7   :  { %3828 = vmatpush.bf16.msrb.mxu3 %v7303_v62  ;;  %3803 = vmatpush.bf16.msrb.mxu1 %v6215_v10  ;;  %v6020_v49 = vld [vmem:[#allocation5 + $0x568] sm:$0xf0]  ;;  %v8262_v53 = vld [vmem:[#allocation5 + $0xb6c] sm:$0xf0] }
 0x1a8   :  { %v8189_v50 = vld [vmem:[#allocation5 + $0x92c] sm:$0xf]  ;;  %v6023_v62 = vor.u32 %v8061_v46, %v6020_v49  ;;  %v6859_v46 = vor.u32 %v8278_v36, %v6858_v35  ;;  %v6282_v49 = vld [vmem:[#allocation5 + $0x730] sm:$0xf] }
 0x1a9   :  { %3816 = vmatpush.bf16.msrb.mxu2 %v6727_v11  ;;  %3791 = vmatpush.bf16.msrb.mxu0 %v5639_v22  ;;  %v6532_v51 = vld [vmem:[#allocation5 + $0x968] sm:$0xf0]  ;;  %v3578_v28 = vpop.f32.mrf.mxu3  ;;  %v5578_v30 = vld [vmem:[#allocation5 + $0x1b0] sm:$0xf] }
 0x1aa   :  { %v8317_v54 = vld [vmem:[#allocation5 + $0xd2c] sm:$0xf]  ;;  %v6535_v0 = vor.u32 %v8189_v50, %v6532_v51  ;;  %v8134_v51 = vld [vmem:[#allocation5 + $0x76c] sm:$0xf0] }
 0x1ab   :  { %3829 = vmatpush.bf16.msrb.mxu3 %v7239_v16  ;;  %3804 = vmatpush.bf16.msrb.mxu1 %v6151_v24  ;;  %v7044_v57 = vld [vmem:[#allocation5 + $0xd68] sm:$0xf0]  ;;  %v3565_v23 = vpop.f32.mrf.mxu2  ;;  %v6283_v61 = vor.u32 %v8134_v51, %v6282_v49  ;;  %v8086_v36 = vld [vmem:[#allocation5 + $0x5ec] sm:$0xf0] }
 0x1ac   :  { %v7917_v1 = vld [vmem:[#allocation5 + $0xac] sm:$0xf]  ;;  %v7047_v8 = vor.u32 %v8317_v54, %v7044_v57  ;;  %v7306_v54 = vld [vmem:[#allocation5 + $0xf30] sm:$0xf] }
 0x1ad   :  { %3817 = vmatpush.bf16.msrb.mxu2 %v6663_v25  ;;  %3792 = vmatpush.bf16.msrb.mxu0 %v5575_v39  ;;  %v5444_v2 = vld [vmem:[#allocation5 + $0xe8] sm:$0xf0]  ;;  %v7370_v39 = vld [vmem:[#allocation5 + $0xfb0] sm:$0xf] }
 0x1ae   :  { %v8045_v5 = vld [vmem:[#allocation5 + $0x4ac] sm:$0xf]  ;;  %v5447_v15 = vor.u32 %v7917_v1, %v5444_v2  ;;  %v8390_v57 = vld [vmem:[#allocation5 + $0xf6c] sm:$0xf0] }
 0x1af   :  { %3830 = vmatpush.bf16.msrb.mxu3 %v7175_v31  ;;  %3805 = vmatpush.bf16.msrb.mxu1 %v6087_v40  ;;  %v5956_v9 = vld [vmem:[#allocation5 + $0x4e8] sm:$0xf0]  ;;  %v6346_v31 = vld [vmem:[#allocation5 + $0x7b0] sm:$0xf] }
 0x1b0   :  { %v8173_v10 = vld [vmem:[#allocation5 + $0x8ac] sm:$0xf]  ;;  %v5959_v18 = vor.u32 %v8045_v5, %v5956_v9  ;;  %v8406_v40 = vld [vmem:[#allocation5 + $0xfec] sm:$0xf0]  ;;  %v6347_v45 = vor.u32 %v8150_v32, %v6346_v31  ;;  %v7307_v5 = vor.u32 %v8390_v57, %v7306_v54 }
 0x1b1   :  { %3818 = vmatpush.bf16.msrb.mxu2 %v6599_v43  ;;  %v6468_v11 = vld [vmem:[#allocation5 + $0x8e8] sm:$0xf0]  ;;  %3793 = vmatpush.bf16.msrb.mxu0 %v5511_v59  ;;  %v7371_v50 = vor.u32 %v8406_v40, %v7370_v39  ;;  %v7990_v1 = vld [vmem:[#allocation5 + $0x2ec] sm:$0xf0] }
 0x1b2   :  { %v8301_v13 = vld [vmem:[#allocation5 + $0xcac] sm:$0xf]  ;;  %v6471_v19 = vor.u32 %v8173_v10, %v6468_v11  ;;  %v6218_v2 = vld [vmem:[#allocation5 + $0x6b0] sm:$0xf] }
 0x1b3   :  { %3831 = vmatpush.bf16.msrb.mxu3 %v7111_v48  ;;  %v6980_v14 = vld [vmem:[#allocation5 + $0xce8] sm:$0xf0]  ;;  %3806 = vmatpush.bf16.msrb.mxu1 %v6023_v62  ;;  %v8006_v48 = vld [vmem:[#allocation5 + $0x36c] sm:$0xf0]  ;;  %v6795_v62 = vor.u32 %v8262_v53, %v6794_v52 }
 0x1b4   :  { %v7901_v16 = vld [vmem:[#allocation5 + $0x2c] sm:$0xf]  ;;  %v6983_v24 = vor.u32 %v8301_v13, %v6980_v14  ;;  %v5771_v59 = vor.u32 %v8006_v48, %v5770_v47  ;;  %v8246_v9 = vld [vmem:[#allocation5 + $0xaec] sm:$0xf0]  ;;  %v3602_v35 = vpop.f32.mrf.mxu1 }
 0x1b5   :  { %v5380_v17 = vld [vmem:[#allocation5 + $0x68] sm:$0xf0]  ;;  %3819 = vmatpush.bf16.msrb.mxu2 %v6535_v0  ;;  %3794 = vmatpush.bf16.msrb.mxu0 %v5447_v15  ;;  %v5706_v0 = vld [vmem:[#allocation5 + $0x2b0] sm:$0xf]  ;;  %v6219_v15 = vor.u32 %v8118_v6, %v6218_v2 }
 0x1b6   :  { %v8029_v20 = vld [vmem:[#allocation5 + $0x42c] sm:$0xf]  ;;  %v5383_v3 = vor.u32 %v7901_v16, %v5380_v17  ;;  %v7242_v10 = vld [vmem:[#allocation5 + $0xeb0] sm:$0xf]  ;;  %v5707_v13 = vor.u32 %v7990_v1, %v5706_v0 }
 0x1b7   :  { %v5892_v21 = vld [vmem:[#allocation5 + $0x468] sm:$0xf0]  ;;  %3832 = vmatpush.bf16.msrb.mxu3 %v7047_v8  ;;  %3807 = vmatpush.bf16.msrb.mxu1 %v5959_v18  ;;  %v6730_v8 = vld [vmem:[#allocation5 + $0xab0] sm:$0xf] }
 0x1b8   :  { %v8157_v22 = vld [vmem:[#allocation5 + $0x82c] sm:$0xf]  ;;  %v5895_v37 = vor.u32 %v8029_v20, %v5892_v21  ;;  %v8374_v11 = vld [vmem:[#allocation5 + $0xeec] sm:$0xf0]  ;;  %v6731_v16 = vor.u32 %v8246_v9, %v6730_v8 }
 0x1b9   :  { %v6404_v25 = vld [vmem:[#allocation5 + $0x868] sm:$0xf0]  ;;  %3820 = vmatpush.bf16.msrb.mxu2 %v6471_v19  ;;  %3795 = vmatpush.bf16.msrb.mxu0 %v5383_v3  ;;  %v5642_v14 = vld [vmem:[#allocation5 + $0x230] sm:$0xf]  ;;  %v631_v19 = vperm.slane %v8812_v12, 7  ;;  %v7243_v20 = vor.u32 %v8374_v11, %v7242_v10 }
 0x1ba   :  { %v8285_v26 = vld [vmem:[#allocation5 + $0xc2c] sm:$0xf]  ;;  %v6407_v38 = vor.u32 %v8157_v22, %v6404_v25  ;;  %v7974_v17 = vld [vmem:[#allocation5 + $0x26c] sm:$0xf0] }
 0x1bb   :  { %v6916_v27 = vld [vmem:[#allocation5 + $0xc68] sm:$0xf0]  ;;  %3833 = vmatpush.bf16.msrb.mxu3 %v6983_v24  ;;  %3808 = vmatpush.bf16.msrb.mxu1 %v5895_v37  ;;  %v6154_v18 = vld [vmem:[#allocation5 + $0x630] sm:$0xf] }
 0x1bc   :  { %v6919_v43 = vor.u32 %v8285_v26, %v6916_v27  ;;  %3796 = vmatmul.bf16.vlgmr.msrb.gmra.mxu0 %v8756_v34  ;;  %v8102_v21 = vld [vmem:[#allocation5 + $0x66c] sm:$0xf0]  ;;  %v5643_v26 = vor.u32 %v7974_v17, %v5642_v14  ;;  %v3589_v27 = vpop.f32.mrf.mxu0  ;;  %v3604_v11 = vpop.f32.mrf.mxu1 }
 0x1bd   :  { %3821 = vmatpush.bf16.msrb.mxu2 %v6407_v38  ;;  %3840 = vmatpush.bf16.msra.mxu0 %v5835_v44  ;;  %v6666_v22 = vld [vmem:[#allocation5 + $0xa30] sm:$0xf]  ;;  %v6155_v28 = vor.u32 %v8102_v21, %v6154_v18  ;;  %v3590_v32 = vadd.f32 %v3589_v27, %v631_v19 }
 0x1be   :  { %3809 = vmatmul.bf16.vlgmr.msrb.gmra.mxu1 %v8760_v42  ;;  %v8230_v23 = vld [vmem:[#allocation5 + $0xa6c] sm:$0xf0] }
 0x1bf   :  { %3834 = vmatpush.bf16.msrb.mxu3 %v6919_v43  ;;  %3853 = vmatpush.bf16.msra.mxu1 %v6347_v45  ;;  %v7178_v24 = vld [vmem:[#allocation5 + $0xe30] sm:$0xf]  ;;  %v6667_v29 = vor.u32 %v8230_v23, %v6666_v22  ;;  %v3603_v43 = vadd.f32 %v3602_v35, %v3590_v32  ;;  %v8014_v32 = vld [vmem:[#allocation5 + $0x3b4] sm:$0xf] }
 0x1c0   :  { %3822 = vmatmul.bf16.vlgmr.msrb.gmra.mxu2 %v8754_v33  ;;  %v8358_v25 = vld [vmem:[#allocation5 + $0xe6c] sm:$0xf0]  ;;  %v5836_v35 = vld [vmem:[#allocation5 + $0x3f0] sm:$0xf0] }
 0x1c1   :  { %3866 = vmatpush.bf16.msra.mxu2 %v6859_v46  ;;  %3841 = vmatpush.bf16.msra.mxu0 %v5771_v59  ;;  %v7958_v31 = vld [vmem:[#allocation5 + $0x1ec] sm:$0xf0]  ;;  %v7179_v12 = vor.u32 %v8358_v25, %v7178_v24  ;;  %v3628_v59 = vpop.f32.mrf.mxu3 }
 0x1c2   :  { %3835 = vmatmul.bf16.vlgmr.msrb.gmra.mxu3 %v8758_v41  ;;  %v6090_v3 = vld [vmem:[#allocation5 + $0x5b0] sm:$0xf]  ;;  %v5579_v44 = vor.u32 %v7958_v31, %v5578_v30 }
 0x1c3   :  { %3879 = vmatpush.bf16.msra.mxu3 %v7371_v50  ;;  %3854 = vmatpush.bf16.msra.mxu1 %v6283_v61  ;;  %v6602_v37 = vld [vmem:[#allocation5 + $0x9b0] sm:$0xf]  ;;  %v6091_v45 = vor.u32 %v8086_v36, %v6090_v3  ;;  %v3615_v50 = vpop.f32.mrf.mxu2 }
 0x1c4   :  { %v8214_v38 = vld [vmem:[#allocation5 + $0x9ec] sm:$0xf0]  ;;  %v3616_v57 = vadd.f32 %v3615_v50, %v3603_v43  ;;  %v3591_v2 = vpop.f32.mrf.mxu0  ;;  %v7998_v50 = vld [vmem:[#allocation5 + $0x334] sm:$0xf] }
 0x1c5   :  { %3867 = vmatpush.bf16.msra.mxu2 %v6795_v62  ;;  %3842 = vmatpush.bf16.msra.mxu0 %v5707_v13  ;;  %v7114_v39 = vld [vmem:[#allocation5 + $0xdb0] sm:$0xf]  ;;  %v6603_v46 = vor.u32 %v8214_v38, %v6602_v37  ;;  %v6348_v37 = vld [vmem:[#allocation5 + $0x7f0] sm:$0xf0] }
 0x1c6   :  { %v8342_v40 = vld [vmem:[#allocation5 + $0xdec] sm:$0xf0]  ;;  %v8836_v1 = vadd.f32 %v3628_v59, %v3616_v57  ;;  %v8270_v38 = vld [vmem:[#allocation5 + $0xbb4] sm:$0xf] }
 0x1c7   :  { %3880 = vmatpush.bf16.msra.mxu3 %v7307_v5  ;;  %3855 = vmatpush.bf16.msra.mxu1 %v6219_v15  ;;  %v5514_v47 = vld [vmem:[#allocation5 + $0x130] sm:$0xf]  ;;  %v7115_v51 = vor.u32 %v8342_v40, %v7114_v39  ;;  %v6860_v39 = vld [vmem:[#allocation5 + $0xbf0] sm:$0xf0] }
 0x1c8   :  { %v7942_v48 = vld [vmem:[#allocation5 + $0x16c] sm:$0xf0]  ;;  %v8254_v57 = vld [vmem:[#allocation5 + $0xb34] sm:$0xf] }
 0x1c9   :  { %3868 = vmatpush.bf16.msra.mxu2 %v6731_v16  ;;  %3843 = vmatpush.bf16.msra.mxu0 %v5643_v26  ;;  %v6026_v49 = vld [vmem:[#allocation5 + $0x530] sm:$0xf]  ;;  %v5515_v0 = vor.u32 %v7942_v48, %v5514_v47  ;;  %v3630_v3 = vpop.f32.mrf.mxu3  ;;  %v5839_v47 = vor.u32 %v8014_v32, %v5836_v35  ;;  %v6796_v59 = vld [vmem:[#allocation5 + $0xb70] sm:$0xf0] }
 0x1ca   :  { %v8070_v52 = vld [vmem:[#allocation5 + $0x56c] sm:$0xf0]  ;;  %v7982_v2 = vld [vmem:[#allocation5 + $0x2b4] sm:$0xf] }
 0x1cb   :  { %3881 = vmatpush.bf16.msra.mxu3 %v7243_v20  ;;  %3856 = vmatpush.bf16.msra.mxu1 %v6155_v28  ;;  %v6538_v53 = vld [vmem:[#allocation5 + $0x930] sm:$0xf]  ;;  %v6027_v5 = vor.u32 %v8070_v52, %v6026_v49  ;;  %v3617_v27 = vpop.f32.mrf.mxu2  ;;  %v6863_v49 = vor.u32 %v8270_v38, %v6860_v39  ;;  %v8126_v52 = vld [vmem:[#allocation5 + $0x734] sm:$0xf] }
 0x1cc   :  { %v8198_v54 = vld [vmem:[#allocation5 + $0x96c] sm:$0xf0]  ;;  %v8222_v27 = vld [vmem:[#allocation5 + $0xa34] sm:$0xf] }
 0x1cd   :  { %3869 = vmatpush.bf16.msra.mxu2 %v6667_v29  ;;  %v7050_v61 = vld [vmem:[#allocation5 + $0xd30] sm:$0xf]  ;;  %3844 = vmatpush.bf16.msra.mxu0 %v5579_v44  ;;  %v6539_v6 = vor.u32 %v8198_v54, %v6538_v53  ;;  %v8398_v44 = vld [vmem:[#allocation5 + $0xfb4] sm:$0xf] }
 0x1ce   :  { %v8326_v62 = vld [vmem:[#allocation5 + $0xd6c] sm:$0xf0]  ;;  %v6284_v54 = vld [vmem:[#allocation5 + $0x770] sm:$0xf0] }
 0x1cf   :  { %3882 = vmatpush.bf16.msra.mxu3 %v7179_v12  ;;  %3857 = vmatpush.bf16.msra.mxu1 %v6091_v45  ;;  %v5450_v8 = vld [vmem:[#allocation5 + $0xb0] sm:$0xf]  ;;  %v7051_v13 = vor.u32 %v8326_v62, %v7050_v61  ;;  %v8142_v12 = vld [vmem:[#allocation5 + $0x7b4] sm:$0xf] }
 0x1d0   :  { %v7926_v9 = vld [vmem:[#allocation5 + $0xec] sm:$0xf0]  ;;  %v7372_v45 = vld [vmem:[#allocation5 + $0xff0] sm:$0xf0]  ;;  %v6351_v48 = vor.u32 %v8142_v12, %v6348_v37 }
 0x1d1   :  { %3870 = vmatpush.bf16.msra.mxu2 %v6603_v46  ;;  %v5962_v10 = vld [vmem:[#allocation5 + $0x4b0] sm:$0xf]  ;;  %3845 = vmatpush.bf16.msra.mxu0 %v5515_v0  ;;  %v5451_v19 = vor.u32 %v7926_v9, %v5450_v8  ;;  %v7375_v53 = vor.u32 %v8398_v44, %v7372_v45  ;;  %v8382_v61 = vld [vmem:[#allocation5 + $0xf34] sm:$0xf] }
 0x1d2   :  { %v8054_v14 = vld [vmem:[#allocation5 + $0x4ec] sm:$0xf0]  ;;  %v7308_v62 = vld [vmem:[#allocation5 + $0xf70] sm:$0xf0] }
 0x1d3   :  { %3883 = vmatpush.bf16.msra.mxu3 %v7115_v51  ;;  %v6474_v15 = vld [vmem:[#allocation5 + $0x8b0] sm:$0xf]  ;;  %3858 = vmatpush.bf16.msra.mxu1 %v6027_v5  ;;  %v5963_v22 = vor.u32 %v8054_v14, %v5962_v10  ;;  %v5772_v51 = vld [vmem:[#allocation5 + $0x370] sm:$0xf0]  ;;  %v6287_v5 = vor.u32 %v8126_v52, %v6284_v54  ;;  %v7311_v11 = vor.u32 %v8382_v61, %v7308_v62 }
 0x1d4   :  { %v8182_v16 = vld [vmem:[#allocation5 + $0x8ec] sm:$0xf0]  ;;  %v5775_v0 = vor.u32 %v7998_v50, %v5772_v51  ;;  %v5708_v8 = vld [vmem:[#allocation5 + $0x2f0] sm:$0xf0]  ;;  %v3641_v3 = vpop.f32.mrf.mxu0 }
 0x1d5   :  { %v6986_v17 = vld [vmem:[#allocation5 + $0xcb0] sm:$0xf]  ;;  %3871 = vmatpush.bf16.msra.mxu2 %v6539_v6  ;;  %v6475_v23 = vor.u32 %v8182_v16, %v6474_v15  ;;  %3846 = vmatpush.bf16.msra.mxu0 %v5451_v19  ;;  %v6799_v6 = vor.u32 %v8254_v57, %v6796_v59  ;;  %v8110_v9 = vld [vmem:[#allocation5 + $0x6b4] sm:$0xf]  ;;  %v8839_v15 = vld [vmem:[#allocation7 + $0x8] sm:$0xff] }
 0x1d6   :  { %v8310_v18 = vld [vmem:[#allocation5 + $0xcec] sm:$0xf0]  ;;  %v6220_v10 = vld [vmem:[#allocation5 + $0x6f0] sm:$0xf0]  ;;  %v3654_v39 = vpop.f32.mrf.mxu1 }
 0x1d7   :  { %v5386_v20 = vld [vmem:[#allocation5 + $0x30] sm:$0xf]  ;;  %3884 = vmatpush.bf16.msra.mxu3 %v7051_v13  ;;  %v6987_v28 = vor.u32 %v8310_v18, %v6986_v17  ;;  %3859 = vmatpush.bf16.msra.mxu1 %v5963_v22  ;;  %v8238_v13 = vld [vmem:[#allocation5 + $0xab4] sm:$0xf]  ;;  %v5711_v18 = vor.u32 %v7982_v2, %v5708_v8 }
 0x1d8   :  { %v7910_v21 = vld [vmem:[#allocation5 + $0x6c] sm:$0xf0]  ;;  %v6732_v14 = vld [vmem:[#allocation5 + $0xaf0] sm:$0xf0] }
 0x1d9   :  { %v5898_v24 = vld [vmem:[#allocation5 + $0x430] sm:$0xf]  ;;  %v5387_v36 = vor.u32 %v7910_v21, %v5386_v20  ;;  %3872 = vmatpush.bf16.msra.mxu2 %v6475_v23  ;;  %v8366_v16 = vld [vmem:[#allocation5 + $0xeb4] sm:$0xf]  ;;  %v6223_v20 = vor.u32 %v8110_v9, %v6220_v10  ;;  %v6735_v21 = vor.u32 %v8238_v13, %v6732_v14 }
 0x1da   :  { %v8038_v25 = vld [vmem:[#allocation5 + $0x46c] sm:$0xf0]  ;;  %v7244_v17 = vld [vmem:[#allocation5 + $0xef0] sm:$0xf0] }
 0x1db   :  { %v6410_v26 = vld [vmem:[#allocation5 + $0x830] sm:$0xf]  ;;  %v5899_v40 = vor.u32 %v8038_v25, %v5898_v24  ;;  %3885 = vmatpush.bf16.msra.mxu3 %v6987_v28  ;;  %3847 = vmatpush.bf16.msra.mxu0 %v5387_v36  ;;  %v7966_v19 = vld [vmem:[#allocation5 + $0x234] sm:$0xf]  ;;  %v632_v24 = vperm.slane %v8839_v15, 0  ;;  %v7247_v25 = vor.u32 %v8366_v16, %v7244_v17 }
 0x1dc   :  { %v8166_v29 = vld [vmem:[#allocation5 + $0x86c] sm:$0xf0]  ;;  %v5644_v22 = vld [vmem:[#allocation5 + $0x270] sm:$0xf0] }
 0x1dd   :  { %v6922_v30 = vld [vmem:[#allocation5 + $0xc30] sm:$0xf]  ;;  %v6411_v43 = vor.u32 %v8166_v29, %v6410_v26  ;;  %3860 = vmatpush.bf16.msra.mxu1 %v5899_v40  ;;  %v8094_v23 = vld [vmem:[#allocation5 + $0x634] sm:$0xf]  ;;  %v3642_v38 = vadd.f32 %v3641_v3, %v632_v24 }
 0x1de   :  { %v8294_v31 = vld [vmem:[#allocation5 + $0xc6c] sm:$0xf0]  ;;  %3848 = vmatmul.bf16.vlgmr.msra.gmra.mxu0 %v8756_v34  ;;  %v6156_v26 = vld [vmem:[#allocation5 + $0x670] sm:$0xf0]  ;;  %v3667_v57 = vpop.f32.mrf.mxu2 }
 0x1df   :  { %v6923_v46 = vor.u32 %v8294_v31, %v6922_v30  ;;  %3873 = vmatpush.bf16.msra.mxu2 %v6411_v43  ;;  %3892 = vmatpush.bf16.msrb.mxu0 %v5839_v47  ;;  %v6668_v28 = vld [vmem:[#allocation5 + $0xa70] sm:$0xf0]  ;;  %v5647_v31 = vor.u32 %v7966_v19, %v5644_v22  ;;  %v6159_v32 = vor.u32 %v8094_v23, %v6156_v26  ;;  %v3656_v19 = vpop.f32.mrf.mxu1 }
 0x1e0   :  { %3861 = vmatmul.bf16.vlgmr.msra.gmra.mxu1 %v8760_v42  ;;  %v8350_v29 = vld [vmem:[#allocation5 + $0xe34] sm:$0xf]  ;;  %v6671_v35 = vor.u32 %v8222_v27, %v6668_v28  ;;  %v6226_v19 = vld [vmem:[#allocation5 + $0x6b8] sm:$0xf] }
 0x1e1   :  { %3886 = vmatpush.bf16.msra.mxu3 %v6923_v46  ;;  %3905 = vmatpush.bf16.msrb.mxu1 %v6351_v48  ;;  %v7180_v30 = vld [vmem:[#allocation5 + $0xe70] sm:$0xf0]  ;;  %v3655_v48 = vadd.f32 %v3654_v39, %v3642_v38 }
 0x1e2   :  { %3874 = vmatmul.bf16.vlgmr.msra.gmra.mxu2 %v8754_v33  ;;  %v7950_v12 = vld [vmem:[#allocation5 + $0x1b4] sm:$0xf]  ;;  %v7183_v40 = vor.u32 %v8350_v29, %v7180_v30 }
 0x1e3   :  { %3918 = vmatpush.bf16.msrb.mxu2 %v6863_v49  ;;  %3893 = vmatpush.bf16.msrb.mxu0 %v5775_v0  ;;  %v5580_v36 = vld [vmem:[#allocation5 + $0x1f0] sm:$0xf0]  ;;  %v3668_v2 = vadd.f32 %v3667_v57, %v3655_v48  ;;  %v8279_v48 = vld [vmem:[#allocation5 + $0xbf4] sm:$0xf0] }
 0x1e4   :  { %3887 = vmatmul.bf16.vlgmr.msra.gmra.mxu3 %v8758_v41  ;;  %v8078_v37 = vld [vmem:[#allocation5 + $0x5b4] sm:$0xf]  ;;  %v5583_v49 = vor.u32 %v7950_v12, %v5580_v36 }
 0x1e5   :  { %3931 = vmatpush.bf16.msrb.mxu3 %v7375_v53  ;;  %3906 = vmatpush.bf16.msrb.mxu1 %v6287_v5  ;;  %v6092_v43 = vld [vmem:[#allocation5 + $0x5f0] sm:$0xf0]  ;;  %v3680_v5 = vpop.f32.mrf.mxu3 }
 0x1e6   :  { %v8206_v44 = vld [vmem:[#allocation5 + $0x9b4] sm:$0xf]  ;;  %v6095_v50 = vor.u32 %v8078_v37, %v6092_v43  ;;  %v8845_v10 = vadd.f32 %v3680_v5, %v3668_v2  ;;  %v8023_v43 = vld [vmem:[#allocation5 + $0x3f4] sm:$0xf0] }
 0x1e7   :  { %3919 = vmatpush.bf16.msrb.mxu2 %v6799_v6  ;;  %3894 = vmatpush.bf16.msrb.mxu0 %v5711_v18  ;;  %v6604_v45 = vld [vmem:[#allocation5 + $0x9f0] sm:$0xf0]  ;;  %v8135_v5 = vld [vmem:[#allocation5 + $0x774] sm:$0xf0] }
 0x1e8   :  { %v8334_v46 = vld [vmem:[#allocation5 + $0xdb4] sm:$0xf]  ;;  %v6607_v51 = vor.u32 %v8206_v44, %v6604_v45  ;;  %v6354_v44 = vld [vmem:[#allocation5 + $0x7b8] sm:$0xf] }
 0x1e9   :  { %3932 = vmatpush.bf16.msrb.mxu3 %v7311_v11  ;;  %3907 = vmatpush.bf16.msrb.mxu1 %v6223_v20  ;;  %v7116_v47 = vld [vmem:[#allocation5 + $0xdf0] sm:$0xf0]  ;;  %v3643_v11 = vpop.f32.mrf.mxu0 }
 0x1ea   :  { %v7934_v52 = vld [vmem:[#allocation5 + $0x134] sm:$0xf]  ;;  %v7119_v59 = vor.u32 %v8334_v46, %v7116_v47  ;;  %v8151_v46 = vld [vmem:[#allocation5 + $0x7f4] sm:$0xf0] }
 0x1eb   :  { %3920 = vmatpush.bf16.msrb.mxu2 %v6735_v21  ;;  %3895 = vmatpush.bf16.msrb.mxu0 %v5647_v31  ;;  %v5516_v53 = vld [vmem:[#allocation5 + $0x170] sm:$0xf0]  ;;  %v6866_v47 = vld [vmem:[#allocation5 + $0xbb8] sm:$0xf]  ;;  %v6355_v57 = vor.u32 %v8151_v46, %v6354_v44 }
 0x1ec   :  { %v8062_v54 = vld [vmem:[#allocation5 + $0x534] sm:$0xf]  ;;  %v5519_v9 = vor.u32 %v7934_v52, %v5516_v53  ;;  %v8407_v52 = vld [vmem:[#allocation5 + $0xff4] sm:$0xf0] }
 0x1ed   :  { %3933 = vmatpush.bf16.msrb.mxu3 %v7247_v25  ;;  %3908 = vmatpush.bf16.msrb.mxu1 %v6159_v32  ;;  %v6028_v61 = vld [vmem:[#allocation5 + $0x570] sm:$0xf0]  ;;  %v3682_v39 = vpop.f32.mrf.mxu3  ;;  %v8391_v11 = vld [vmem:[#allocation5 + $0xf74] sm:$0xf0] }
 0x1ee   :  { %v8190_v62 = vld [vmem:[#allocation5 + $0x934] sm:$0xf]  ;;  %v6031_v13 = vor.u32 %v8062_v54, %v6028_v61  ;;  %v5778_v61 = vld [vmem:[#allocation5 + $0x338] sm:$0xf] }
 0x1ef   :  { %3921 = vmatpush.bf16.msrb.mxu2 %v6671_v35  ;;  %v6540_v0 = vld [vmem:[#allocation5 + $0x970] sm:$0xf0]  ;;  %3896 = vmatpush.bf16.msrb.mxu0 %v5583_v49  ;;  %v3669_v35 = vpop.f32.mrf.mxu2  ;;  %v7959_v46 = vld [vmem:[#allocation5 + $0x1f4] sm:$0xf0] }
 0x1f0   :  { %v8318_v6 = vld [vmem:[#allocation5 + $0xd34] sm:$0xf]  ;;  %v6543_v14 = vor.u32 %v8190_v62, %v6540_v0  ;;  %v8007_v62 = vld [vmem:[#allocation5 + $0x374] sm:$0xf0] }
 0x1f1   :  { %3934 = vmatpush.bf16.msrb.mxu3 %v7183_v40  ;;  %v7052_v8 = vld [vmem:[#allocation5 + $0xd70] sm:$0xf0]  ;;  %3909 = vmatpush.bf16.msrb.mxu1 %v6095_v50  ;;  %v5842_v40 = vld [vmem:[#allocation5 + $0x3b8] sm:$0xf] }
 0x1f2   :  { %v7918_v16 = vld [vmem:[#allocation5 + $0xb4] sm:$0xf]  ;;  %v7055_v20 = vor.u32 %v8318_v6, %v7052_v8  ;;  %v5843_v54 = vor.u32 %v8023_v43, %v5842_v40  ;;  %v6290_v0 = vld [vmem:[#allocation5 + $0x738] sm:$0xf] }
 0x1f3   :  { %3922 = vmatpush.bf16.msrb.mxu2 %v6607_v51  ;;  %v5452_v17 = vld [vmem:[#allocation5 + $0xf0] sm:$0xf0]  ;;  %3897 = vmatpush.bf16.msrb.mxu0 %v5519_v9  ;;  %v7378_v51 = vld [vmem:[#allocation5 + $0xfb8] sm:$0xf] }
 0x1f4   :  { %v8046_v18 = vld [vmem:[#allocation5 + $0x4b4] sm:$0xf]  ;;  %v5455_v26 = vor.u32 %v7918_v16, %v5452_v17  ;;  %v7379_v2 = vor.u32 %v8407_v52, %v7378_v51  ;;  %v6802_v6 = vld [vmem:[#allocation5 + $0xb38] sm:$0xf] }
 0x1f5   :  { %3935 = vmatpush.bf16.msrb.mxu3 %v7119_v59  ;;  %v5964_v21 = vld [vmem:[#allocation5 + $0x4f0] sm:$0xf0]  ;;  %3910 = vmatpush.bf16.msrb.mxu1 %v6031_v13  ;;  %v6867_v59 = vor.u32 %v8279_v48, %v6866_v47  ;;  %v8263_v8 = vld [vmem:[#allocation5 + $0xb74] sm:$0xf0]  ;;  %v5779_v13 = vor.u32 %v8007_v62, %v5778_v61 }
 0x1f6   :  { %v8174_v22 = vld [vmem:[#allocation5 + $0x8b4] sm:$0xf]  ;;  %v5967_v29 = vor.u32 %v8046_v18, %v5964_v21  ;;  %v7314_v9 = vld [vmem:[#allocation5 + $0xf38] sm:$0xf]  ;;  %v6803_v16 = vor.u32 %v8263_v8, %v6802_v6  ;;  %v3693_v40 = vpop.f32.mrf.mxu0 }
 0x1f7   :  { %v6476_v23 = vld [vmem:[#allocation5 + $0x8f0] sm:$0xf0]  ;;  %3923 = vmatpush.bf16.msrb.mxu2 %v6543_v14  ;;  %3898 = vmatpush.bf16.msrb.mxu0 %v5455_v26  ;;  %v6291_v14 = vor.u32 %v8135_v5, %v6290_v0  ;;  %v5714_v17 = vld [vmem:[#allocation5 + $0x2b8] sm:$0xf] }
 0x1f8   :  { %v8302_v24 = vld [vmem:[#allocation5 + $0xcb4] sm:$0xf]  ;;  %v6479_v30 = vor.u32 %v8174_v22, %v6476_v23  ;;  %v7991_v18 = vld [vmem:[#allocation5 + $0x2f4] sm:$0xf0] }
 0x1f9   :  { %v6988_v25 = vld [vmem:[#allocation5 + $0xcf0] sm:$0xf0]  ;;  %3936 = vmatpush.bf16.msrb.mxu3 %v7055_v20  ;;  %3911 = vmatpush.bf16.msrb.mxu1 %v5967_v29  ;;  %v7315_v20 = vor.u32 %v8391_v11, %v7314_v9  ;;  %v8119_v21 = vld [vmem:[#allocation5 + $0x6f4] sm:$0xf0]  ;;  %v5715_v26 = vor.u32 %v7991_v18, %v5714_v17 }
 0x1fa   :  { %v7902_v27 = vld [vmem:[#allocation5 + $0x34] sm:$0xf]  ;;  %v6991_v12 = vor.u32 %v8302_v24, %v6988_v25  ;;  %v6738_v22 = vld [vmem:[#allocation5 + $0xab8] sm:$0xf] }
 0x1fb   :  { %v5388_v28 = vld [vmem:[#allocation5 + $0x70] sm:$0xf0]  ;;  %3924 = vmatpush.bf16.msrb.mxu2 %v6479_v30  ;;  %v8247_v23 = vld [vmem:[#allocation5 + $0xaf4] sm:$0xf0] }
 0x1fc   :  { %v8030_v31 = vld [vmem:[#allocation5 + $0x434] sm:$0xf]  ;;  %v5391_v45 = vor.u32 %v7902_v27, %v5388_v28  ;;  %v7250_v24 = vld [vmem:[#allocation5 + $0xeb8] sm:$0xf]  ;;  %v6227_v28 = vor.u32 %v8119_v21, %v6226_v19  ;;  %v6739_v29 = vor.u32 %v8247_v23, %v6738_v22 }
 0x1fd   :  { %v5900_v3 = vld [vmem:[#allocation5 + $0x470] sm:$0xf0]  ;;  %3937 = vmatpush.bf16.msrb.mxu3 %v6991_v12  ;;  %v8375_v25 = vld [vmem:[#allocation5 + $0xef4] sm:$0xf0] }
 0x1fe   :  { %v8158_v32 = vld [vmem:[#allocation5 + $0x834] sm:$0xf]  ;;  %v5903_v49 = vor.u32 %v8030_v31, %v5900_v3  ;;  %3899 = vmatpush.bf16.msrb.mxu0 %v5391_v45  ;;  %v5650_v27 = vld [vmem:[#allocation5 + $0x238] sm:$0xf]  ;;  %v633_v3 = vperm.slane %v8839_v15, 1  ;;  %v3695_v22 = vpop.f32.mrf.mxu0 }
 0x1ff   :  { %v6412_v36 = vld [vmem:[#allocation5 + $0x870] sm:$0xf0]  ;;  %v7975_v30 = vld [vmem:[#allocation5 + $0x274] sm:$0xf0]  ;;  %v8383_v22 = vld [vmem:[#allocation5 + $0xf3c] sm:$0xf] }
 0x200   :  { %v8286_v37 = vld [vmem:[#allocation5 + $0xc34] sm:$0xf]  ;;  %v6415_v50 = vor.u32 %v8158_v32, %v6412_v36  ;;  %3912 = vmatpush.bf16.msrb.mxu1 %v5903_v49  ;;  %v6162_v31 = vld [vmem:[#allocation5 + $0x638] sm:$0xf]  ;;  %v7251_v32 = vor.u32 %v8375_v25, %v7250_v24  ;;  %v5651_v39 = vor.u32 %v7975_v30, %v5650_v27  ;;  %v3694_v48 = vadd.f32 %v3693_v40, %v633_v3  ;;  %v3706_v49 = vpop.f32.mrf.mxu1  ;;  %v3719_v8 = vpop.f32.mrf.mxu2 }
 0x201   :  { %v6924_v38 = vld [vmem:[#allocation5 + $0xc70] sm:$0xf0]  ;;  %3900 = vmatmul.bf16.vlgmr.msrb.gmra.mxu0 %v8756_v34  ;;  %v8103_v35 = vld [vmem:[#allocation5 + $0x674] sm:$0xf0] }
 0x202   :  { %v6927_v53 = vor.u32 %v8286_v37, %v6924_v38  ;;  %3925 = vmatpush.bf16.msrb.mxu2 %v6415_v50  ;;  %3944 = vmatpush.bf16.msra.mxu0 %v5843_v54  ;;  %v6674_v12 = vld [vmem:[#allocation5 + $0xa38] sm:$0xf]  ;;  %v6163_v43 = vor.u32 %v8103_v35, %v6162_v31  ;;  %v3732_v17 = vpop.f32.mrf.mxu3 }
 0x203   :  { %3913 = vmatmul.bf16.vlgmr.msrb.gmra.mxu1 %v8760_v42  ;;  %v8231_v36 = vld [vmem:[#allocation5 + $0xa74] sm:$0xf0] }
 0x204   :  { %3938 = vmatpush.bf16.msrb.mxu3 %v6927_v53  ;;  %3957 = vmatpush.bf16.msra.mxu1 %v6355_v57  ;;  %v7186_v37 = vld [vmem:[#allocation5 + $0xe38] sm:$0xf]  ;;  %v6675_v44 = vor.u32 %v8231_v36, %v6674_v12 }
 0x205   :  { %3926 = vmatmul.bf16.vlgmr.msrb.gmra.mxu2 %v8754_v33  ;;  %v8359_v38 = vld [vmem:[#allocation5 + $0xe74] sm:$0xf0] }
 0x206   :  { %3970 = vmatpush.bf16.msra.mxu2 %v6867_v59  ;;  %3945 = vmatpush.bf16.msra.mxu0 %v5779_v13  ;;  %v5586_v45 = vld [vmem:[#allocation5 + $0x1b8] sm:$0xf]  ;;  %v7187_v50 = vor.u32 %v8359_v38, %v7186_v37  ;;  %v3707_v59 = vadd.f32 %v3706_v49, %v3694_v48 }
 0x207   :  { %3939 = vmatmul.bf16.vlgmr.msrb.gmra.mxu3 %v8758_v41  ;;  %v6098_v47 = vld [vmem:[#allocation5 + $0x5b8] sm:$0xf]  ;;  %v5587_v61 = vor.u32 %v7959_v46, %v5586_v45 }
 0x208   :  { %3983 = vmatpush.bf16.msra.mxu3 %v7379_v2  ;;  %3958 = vmatpush.bf16.msra.mxu1 %v6291_v14  ;;  %v8087_v51 = vld [vmem:[#allocation5 + $0x5f4] sm:$0xf0]  ;;  %v3721_v45 = vpop.f32.mrf.mxu2 }
 0x209   :  { %v6610_v52 = vld [vmem:[#allocation5 + $0x9b8] sm:$0xf]  ;;  %v6099_v62 = vor.u32 %v8087_v51, %v6098_v47  ;;  %v8015_v51 = vld [vmem:[#allocation5 + $0x3bc] sm:$0xf] }
 0x20a   :  { %3971 = vmatpush.bf16.msra.mxu2 %v6803_v16  ;;  %3946 = vmatpush.bf16.msra.mxu0 %v5715_v26  ;;  %v8215_v53 = vld [vmem:[#allocation5 + $0x9f4] sm:$0xf0]  ;;  %v3720_v16 = vadd.f32 %v3719_v8, %v3707_v59  ;;  %v8271_v59 = vld [vmem:[#allocation5 + $0xbbc] sm:$0xf] }
 0x20b   :  { %v7122_v54 = vld [vmem:[#allocation5 + $0xdb8] sm:$0xf]  ;;  %v6611_v0 = vor.u32 %v8215_v53, %v6610_v52  ;;  %v5844_v52 = vld [vmem:[#allocation5 + $0x3f8] sm:$0xf0] }
 0x20c   :  { %3984 = vmatpush.bf16.msra.mxu3 %v7315_v20  ;;  %3959 = vmatpush.bf16.msra.mxu1 %v6227_v28  ;;  %v8343_v57 = vld [vmem:[#allocation5 + $0xdf4] sm:$0xf0]  ;;  %v8852_v21 = vadd.f32 %v3732_v17, %v3720_v16  ;;  %v3708_v28 = vpop.f32.mrf.mxu1  ;;  %v8143_v53 = vld [vmem:[#allocation5 + $0x7bc] sm:$0xf]  ;;  %v5847_v8 = vor.u32 %v8015_v51, %v5844_v52 }
 0x20d   :  { %v5522_v2 = vld [vmem:[#allocation5 + $0x138] sm:$0xf]  ;;  %v7123_v9 = vor.u32 %v8343_v57, %v7122_v54  ;;  %v6356_v57 = vld [vmem:[#allocation5 + $0x7f8] sm:$0xf0] }
 0x20e   :  { %3972 = vmatpush.bf16.msra.mxu2 %v6739_v29  ;;  %3947 = vmatpush.bf16.msra.mxu0 %v5651_v39  ;;  %v7943_v5 = vld [vmem:[#allocation5 + $0x174] sm:$0xf0]  ;;  %v8127_v16 = vld [vmem:[#allocation5 + $0x73c] sm:$0xf] }
 0x20f   :  { %v6034_v6 = vld [vmem:[#allocation5 + $0x538] sm:$0xf]  ;;  %v5523_v20 = vor.u32 %v7943_v5, %v5522_v2  ;;  %v8399_v2 = vld [vmem:[#allocation5 + $0xfbc] sm:$0xf] }
 0x210   :  { %3985 = vmatpush.bf16.msra.mxu3 %v7251_v32  ;;  %3960 = vmatpush.bf16.msra.mxu1 %v6163_v43  ;;  %v8071_v11 = vld [vmem:[#allocation5 + $0x574] sm:$0xf0]  ;;  %v7380_v5 = vld [vmem:[#allocation5 + $0xff8] sm:$0xf0] }
 0x211   :  { %v6546_v13 = vld [vmem:[#allocation5 + $0x938] sm:$0xf]  ;;  %v6035_v23 = vor.u32 %v8071_v11, %v6034_v6  ;;  %v7383_v17 = vor.u32 %v8399_v2, %v7380_v5  ;;  %v5716_v28 = vld [vmem:[#allocation5 + $0x2f8] sm:$0xf0] }
 0x212   :  { %3973 = vmatpush.bf16.msra.mxu2 %v6675_v44  ;;  %v8199_v14 = vld [vmem:[#allocation5 + $0x974] sm:$0xf0]  ;;  %3948 = vmatpush.bf16.msra.mxu0 %v5587_v61  ;;  %v6868_v61 = vld [vmem:[#allocation5 + $0xbf8] sm:$0xf0] }
 0x213   :  { %v7058_v18 = vld [vmem:[#allocation5 + $0xd38] sm:$0xf]  ;;  %v6547_v24 = vor.u32 %v8199_v14, %v6546_v13  ;;  %v6871_v11 = vor.u32 %v8271_v59, %v6868_v61  ;;  %v7999_v13 = vld [vmem:[#allocation5 + $0x33c] sm:$0xf] }
 0x214   :  { %3986 = vmatpush.bf16.msra.mxu3 %v7187_v50  ;;  %v8327_v19 = vld [vmem:[#allocation5 + $0xd74] sm:$0xf0]  ;;  %3961 = vmatpush.bf16.msra.mxu1 %v6099_v62  ;;  %v3734_v50 = vpop.f32.mrf.mxu3  ;;  %v5780_v14 = vld [vmem:[#allocation5 + $0x378] sm:$0xf0] }
 0x215   :  { %v5458_v25 = vld [vmem:[#allocation5 + $0xb8] sm:$0xf]  ;;  %v7059_v29 = vor.u32 %v8327_v19, %v7058_v18  ;;  %v6292_v18 = vld [vmem:[#allocation5 + $0x778] sm:$0xf0] }
 0x216   :  { %3974 = vmatpush.bf16.msra.mxu2 %v6611_v0  ;;  %v7927_v26 = vld [vmem:[#allocation5 + $0xf4] sm:$0xf0]  ;;  %3949 = vmatpush.bf16.msra.mxu0 %v5523_v20  ;;  %v8255_v19 = vld [vmem:[#allocation5 + $0xb3c] sm:$0xf] }
 0x217   :  { %v5970_v27 = vld [vmem:[#allocation5 + $0x4b8] sm:$0xf]  ;;  %v5459_v12 = vor.u32 %v7927_v26, %v5458_v25  ;;  %v6804_v20 = vld [vmem:[#allocation5 + $0xb78] sm:$0xf0]  ;;  %v6295_v25 = vor.u32 %v8127_v16, %v6292_v18 }
 0x218   :  { %3987 = vmatpush.bf16.msra.mxu3 %v7123_v9  ;;  %v8055_v30 = vld [vmem:[#allocation5 + $0x4f4] sm:$0xf0]  ;;  %3962 = vmatpush.bf16.msra.mxu1 %v6035_v23  ;;  %v6359_v9 = vor.u32 %v8143_v53, %v6356_v57  ;;  %v7316_v23 = vld [vmem:[#allocation5 + $0xf78] sm:$0xf0]  ;;  %v6807_v26 = vor.u32 %v8255_v19, %v6804_v20 }
 0x219   :  { %v6482_v31 = vld [vmem:[#allocation5 + $0x8b8] sm:$0xf]  ;;  %v5971_v38 = vor.u32 %v8055_v30, %v5970_v27  ;;  %v7983_v27 = vld [vmem:[#allocation5 + $0x2bc] sm:$0xf]  ;;  %v7319_v30 = vor.u32 %v8383_v22, %v7316_v23  ;;  %v3745_v52 = vpop.f32.mrf.mxu0 }
 0x21a   :  { %v8183_v3 = vld [vmem:[#allocation5 + $0x8f4] sm:$0xf0]  ;;  %3975 = vmatpush.bf16.msra.mxu2 %v6547_v24  ;;  %3950 = vmatpush.bf16.msra.mxu0 %v5459_v12  ;;  %v5783_v24 = vor.u32 %v7999_v13, %v5780_v14  ;;  %v7252_v12 = vld [vmem:[#allocation5 + $0xef8] sm:$0xf0] }
 0x21b   :  { %v6994_v32 = vld [vmem:[#allocation5 + $0xcb8] sm:$0xf]  ;;  %v6483_v39 = vor.u32 %v8183_v3, %v6482_v31  ;;  %v6228_v31 = vld [vmem:[#allocation5 + $0x6f8] sm:$0xf0] }
 0x21c   :  { %v8311_v35 = vld [vmem:[#allocation5 + $0xcf4] sm:$0xf0]  ;;  %3988 = vmatpush.bf16.msra.mxu3 %v7059_v29  ;;  %3963 = vmatpush.bf16.msra.mxu1 %v5971_v38  ;;  %v8111_v29 = vld [vmem:[#allocation5 + $0x6bc] sm:$0xf] }
 0x21d   :  { %v5394_v36 = vld [vmem:[#allocation5 + $0x38] sm:$0xf]  ;;  %v6995_v46 = vor.u32 %v8311_v35, %v6994_v32  ;;  %v8239_v3 = vld [vmem:[#allocation5 + $0xabc] sm:$0xf]  ;;  %v6231_v38 = vor.u32 %v8111_v29, %v6228_v31 }
 0x21e   :  { %v7911_v37 = vld [vmem:[#allocation5 + $0x74] sm:$0xf0]  ;;  %3976 = vmatpush.bf16.msra.mxu2 %v6483_v39  ;;  %v6740_v32 = vld [vmem:[#allocation5 + $0xaf8] sm:$0xf0] }
 0x21f   :  { %v5906_v40 = vld [vmem:[#allocation5 + $0x438] sm:$0xf]  ;;  %v5395_v54 = vor.u32 %v7911_v37, %v5394_v36  ;;  %v8367_v35 = vld [vmem:[#allocation5 + $0xebc] sm:$0xf]  ;;  %v5719_v36 = vor.u32 %v7983_v27, %v5716_v28  ;;  %v6743_v39 = vor.u32 %v8239_v3, %v6740_v32 }
 0x220   :  { %v8039_v43 = vld [vmem:[#allocation5 + $0x474] sm:$0xf0]  ;;  %3989 = vmatpush.bf16.msra.mxu3 %v6995_v46  ;;  %v7967_v37 = vld [vmem:[#allocation5 + $0x23c] sm:$0xf]  ;;  %v7255_v45 = vor.u32 %v8367_v35, %v7252_v12 }
 0x221   :  { %v6418_v44 = vld [vmem:[#allocation5 + $0x838] sm:$0xf]  ;;  %v5907_v62 = vor.u32 %v8039_v43, %v5906_v40  ;;  %3951 = vmatpush.bf16.msra.mxu0 %v5395_v54  ;;  %v5652_v40 = vld [vmem:[#allocation5 + $0x278] sm:$0xf0]  ;;  %v3747_v32 = vpop.f32.mrf.mxu0 }
 0x222   :  { %v8167_v47 = vld [vmem:[#allocation5 + $0x874] sm:$0xf0]  ;;  %v8095_v43 = vld [vmem:[#allocation5 + $0x63c] sm:$0xf]  ;;  %v5655_v51 = vor.u32 %v7967_v37, %v5652_v40  ;;  %v8411_v32 = vld [vmem:[#allocation8 + $0x18] sm:$0xff] }
 0x223   :  { %v6930_v48 = vld [vmem:[#allocation5 + $0xc38] sm:$0xf]  ;;  %v6419_v0 = vor.u32 %v8167_v47, %v6418_v44  ;;  %3964 = vmatpush.bf16.msra.mxu1 %v5907_v62  ;;  %v634_v44 = vperm.slane %v8839_v15, 2  ;;  %v6164_v46 = vld [vmem:[#allocation5 + $0x678] sm:$0xf0]  ;;  %v3771_v22 = vpop.f32.mrf.mxu2 }
 0x224   :  { %v8295_v49 = vld [vmem:[#allocation5 + $0xc74] sm:$0xf0]  ;;  %3952 = vmatmul.bf16.vlgmr.msra.gmra.mxu0 %v8756_v34  ;;  %v8223_v47 = vld [vmem:[#allocation5 + $0xa3c] sm:$0xf]  ;;  %v6167_v53 = vor.u32 %v8095_v43, %v6164_v46 }
 0x225   :  { %v6931_v6 = vor.u32 %v8295_v49, %v6930_v48  ;;  %3977 = vmatpush.bf16.msra.mxu2 %v6419_v0  ;;  %3996 = vmatpush.bf16.msrb.mxu0 %v5847_v8  ;;  %v6676_v48 = vld [vmem:[#allocation5 + $0xa78] sm:$0xf0]  ;;  %v3746_v62 = vadd.f32 %v3745_v52, %v634_v44  ;;  %v3758_v0 = vpop.f32.mrf.mxu1  ;;  %v3784_v28 = vpop.f32.mrf.mxu3 }
 0x226   :  { %3965 = vmatmul.bf16.vlgmr.msra.gmra.mxu1 %v8760_v42  ;;  %v8351_v49 = vld [vmem:[#allocation5 + $0xe3c] sm:$0xf]  ;;  %v6679_v54 = vor.u32 %v8223_v47, %v6676_v48 }
 0x227   :  { %3990 = vmatpush.bf16.msra.mxu3 %v6931_v6  ;;  %4009 = vmatpush.bf16.msrb.mxu1 %v6359_v9  ;;  %v7188_v50 = vld [vmem:[#allocation5 + $0xe78] sm:$0xf0]  ;;  %v3759_v13 = vadd.f32 %v3758_v0, %v3746_v62 }
 0x228   :  { %3978 = vmatmul.bf16.vlgmr.msra.gmra.mxu2 %v8754_v33  ;;  %v7951_v57 = vld [vmem:[#allocation5 + $0x1bc] sm:$0xf]  ;;  %v7191_v2 = vor.u32 %v8351_v49, %v7188_v50 }
 0x229   :  { %4022 = vmatpush.bf16.msrb.mxu2 %v6871_v11  ;;  %3997 = vmatpush.bf16.msrb.mxu0 %v5783_v24  ;;  %v5588_v59 = vld [vmem:[#allocation5 + $0x1f8] sm:$0xf0]  ;;  %v3772_v27 = vadd.f32 %v3771_v22, %v3759_v13  ;;  %v8415_v13 = vld [vmem:[#allocation8 + $0x38] sm:$0xff]  ;;  %v8438_v22 = vld [vmem:[#allocation8 + $0xf0] sm:$0xff] }
 0x22a   :  { %3991 = vmatmul.bf16.vlgmr.msra.gmra.mxu3 %v8758_v41  ;;  %v8079_v61 = vld [vmem:[#allocation5 + $0x5bc] sm:$0xf]  ;;  %v5591_v14 = vor.u32 %v7951_v57, %v5588_v59 }
 0x22b   :  { %4035 = vmatpush.bf16.msrb.mxu3 %v7383_v17  ;;  %4010 = vmatpush.bf16.msrb.mxu1 %v6295_v25  ;;  %v6100_v5 = vld [vmem:[#allocation5 + $0x5f8] sm:$0xf0]  ;;  %v8859_v3 = vadd.f32 %v3784_v28, %v3772_v27  ;;  %v8412_v28 = vld [vmem:[#allocation8 + $0x20] sm:$0xff] }
 0x22c   :  { %v8207_v6 = vld [vmem:[#allocation5 + $0x9bc] sm:$0xf]  ;;  %v6103_v16 = vor.u32 %v8079_v61, %v6100_v5 }
 0x22d   :  { %4023 = vmatpush.bf16.msrb.mxu2 %v6807_v26  ;;  %3998 = vmatpush.bf16.msrb.mxu0 %v5719_v36  ;;  %v6612_v8 = vld [vmem:[#allocation5 + $0x9f8] sm:$0xf0]  ;;  %v3786_v0 = vpop.f32.mrf.mxu3 }
 0x22e   :  { %v8335_v9 = vld [vmem:[#allocation5 + $0xdbc] sm:$0xf]  ;;  %v6615_v17 = vor.u32 %v8207_v6, %v6612_v8  ;;  %v8447_v0 = vld [vmem:[#allocation8 + $0x138] sm:$0xff] }
 0x22f   :  { %4036 = vmatpush.bf16.msrb.mxu3 %v7319_v30  ;;  %4011 = vmatpush.bf16.msrb.mxu1 %v6231_v38  ;;  %v7124_v11 = vld [vmem:[#allocation5 + $0xdf8] sm:$0xf0] }
 0x230   :  { %v7935_v18 = vld [vmem:[#allocation5 + $0x13c] sm:$0xf]  ;;  %v7127_v23 = vor.u32 %v8335_v9, %v7124_v11 }
 0x231   :  { %4024 = vmatpush.bf16.msrb.mxu2 %v6743_v39  ;;  %3999 = vmatpush.bf16.msrb.mxu0 %v5655_v51  ;;  %v5524_v19 = vld [vmem:[#allocation5 + $0x178] sm:$0xf0]  ;;  %v3760_v39 = vpop.f32.mrf.mxu1 }
 0x232   :  { %v8063_v20 = vld [vmem:[#allocation5 + $0x53c] sm:$0xf]  ;;  %v5527_v31 = vor.u32 %v7935_v18, %v5524_v19  ;;  %v8414_v18 = vld [vmem:[#allocation8 + $0x30] sm:$0xff] }
 0x233   :  { %4037 = vmatpush.bf16.msrb.mxu3 %v7255_v45  ;;  %4012 = vmatpush.bf16.msrb.mxu1 %v6167_v53  ;;  %v6036_v24 = vld [vmem:[#allocation5 + $0x578] sm:$0xf0]  ;;  %v8422_v19 = vld [vmem:[#allocation8 + $0x70] sm:$0xff] }
 0x234   :  { %v8191_v25 = vld [vmem:[#allocation5 + $0x93c] sm:$0xf]  ;;  %v6039_v35 = vor.u32 %v8063_v20, %v6036_v24  ;;  %v8430_v20 = vld [vmem:[#allocation8 + $0xb0] sm:$0xff] }
 0x235   :  { %4025 = vmatpush.bf16.msrb.mxu2 %v6679_v54  ;;  %v6548_v26 = vld [vmem:[#allocation5 + $0x978] sm:$0xf0]  ;;  %4000 = vmatpush.bf16.msrb.mxu0 %v5591_v14  ;;  %v3773_v54 = vpop.f32.mrf.mxu2  ;;  %v8423_v14 = vld [vmem:[#allocation8 + $0x78] sm:$0xff]  ;;  %v8410_v39 = vld [vmem:[#allocation8 + $0x10] sm:$0xff] }
 0x236   :  { %v8319_v29 = vld [vmem:[#allocation5 + $0xd3c] sm:$0xf]  ;;  %v6551_v12 = vor.u32 %v8191_v25, %v6548_v26  ;;  %v635_v26 = vperm.slane %v8839_v15, 3  ;;  %v8427_v15 = vld [vmem:[#allocation8 + $0x98] sm:$0xff]  ;;  %v8408_v54 = vld [vmem:[#allocation8] sm:$0xff] }
 0x237   :  { %4038 = vmatpush.bf16.msrb.mxu3 %v7191_v2  ;;  %v7060_v30 = vld [vmem:[#allocation5 + $0xd78] sm:$0xf0]  ;;  %4013 = vmatpush.bf16.msrb.mxu1 %v6103_v16  ;;  %v8431_v16 = vld [vmem:[#allocation8 + $0xb8] sm:$0xff] }
 0x238   :  { %v7919_v36 = vld [vmem:[#allocation5 + $0xbc] sm:$0xf]  ;;  %v7063_v40 = vor.u32 %v8319_v29, %v7060_v30  ;;  %v8428_v29 = vld [vmem:[#allocation8 + $0xa0] sm:$0xff] }
 0x239   :  { %4026 = vmatpush.bf16.msrb.mxu2 %v6615_v17  ;;  %v5460_v37 = vld [vmem:[#allocation5 + $0xf8] sm:$0xf0]  ;;  %4001 = vmatpush.bf16.msrb.mxu0 %v5527_v31  ;;  %v8439_v17 = vld [vmem:[#allocation8 + $0xf8] sm:$0xff] }
 0x23a   :  { %v8047_v38 = vld [vmem:[#allocation5 + $0x4bc] sm:$0xf]  ;;  %v5463_v48 = vor.u32 %v7919_v36, %v5460_v37  ;;  %v8435_v36 = vld [vmem:[#allocation8 + $0xd8] sm:$0xff] }
 0x23b   :  { %4039 = vmatpush.bf16.msrb.mxu3 %v7127_v23  ;;  %v5972_v43 = vld [vmem:[#allocation5 + $0x4f8] sm:$0xf0]  ;;  %4014 = vmatpush.bf16.msrb.mxu1 %v6039_v35  ;;  %v3810_v30 = vpop.f32.mrf.mxu1  ;;  %v8419_v35 = vld [vmem:[#allocation8 + $0x58] sm:$0xff] }
 0x23c   :  { %v8175_v44 = vld [vmem:[#allocation5 + $0x8bc] sm:$0xf]  ;;  %v5975_v49 = vor.u32 %v8047_v38, %v5972_v43 }
 0x23d   :  { %v6484_v45 = vld [vmem:[#allocation5 + $0x8f8] sm:$0xf0]  ;;  %4027 = vmatpush.bf16.msrb.mxu2 %v6551_v12  ;;  %4002 = vmatpush.bf16.msrb.mxu0 %v5463_v48 }
 0x23e   :  { %v8303_v46 = vld [vmem:[#allocation5 + $0xcbc] sm:$0xf]  ;;  %v6487_v50 = vor.u32 %v8175_v44, %v6484_v45  ;;  %v8418_v44 = vld [vmem:[#allocation8 + $0x50] sm:$0xff] }
 0x23f   :  { %v6996_v47 = vld [vmem:[#allocation5 + $0xcf8] sm:$0xf0]  ;;  %4040 = vmatpush.bf16.msrb.mxu3 %v7063_v40  ;;  %4015 = vmatpush.bf16.msrb.mxu1 %v5975_v49  ;;  %v8426_v45 = vld [vmem:[#allocation8 + $0x90] sm:$0xff] }
 0x240   :  { %v7903_v51 = vld [vmem:[#allocation5 + $0x3c] sm:$0xf]  ;;  %v6999_v57 = vor.u32 %v8303_v46, %v6996_v47  ;;  %v8434_v47 = vld [vmem:[#allocation8 + $0xd0] sm:$0xff] }
 0x241   :  { %v5396_v52 = vld [vmem:[#allocation5 + $0x78] sm:$0xf0]  ;;  %4028 = vmatpush.bf16.msrb.mxu2 %v6487_v50 }
 0x242   :  { %v8031_v53 = vld [vmem:[#allocation5 + $0x43c] sm:$0xf]  ;;  %v5399_v6 = vor.u32 %v7903_v51, %v5396_v52 }
 0x243   :  { %v5908_v59 = vld [vmem:[#allocation5 + $0x478] sm:$0xf0]  ;;  %4041 = vmatpush.bf16.msrb.mxu3 %v6999_v57  ;;  %v3823_v12 = vpop.f32.mrf.mxu2  ;;  %v3812_v46 = vpop.f32.mrf.mxu1  ;;  %v8416_v57 = vld [vmem:[#allocation8 + $0x40] sm:$0xff] }
 0x244   :  { %v8159_v61 = vld [vmem:[#allocation5 + $0x83c] sm:$0xf]  ;;  %v5911_v8 = vor.u32 %v8031_v53, %v5908_v59  ;;  %4003 = vmatpush.bf16.msrb.mxu0 %v5399_v6  ;;  %v8424_v59 = vld [vmem:[#allocation8 + $0x80] sm:$0xff]  ;;  %v8455_v6 = vld [vmem:[#allocation8 + $0x178] sm:$0xff] }
 0x245   :  { %v6420_v62 = vld [vmem:[#allocation5 + $0x878] sm:$0xf0]  ;;  %v3836_v38 = vpop.f32.mrf.mxu3 }
 0x246   :  { %v8287_v2 = vld [vmem:[#allocation5 + $0xc3c] sm:$0xf]  ;;  %v6423_v9 = vor.u32 %v8159_v61, %v6420_v62  ;;  %4016 = vmatpush.bf16.msrb.mxu1 %v5911_v8  ;;  %v4048_v61 = vmax.f32 %v8785_v4, 0.0  ;;  %v8432_v62 = vld [vmem:[#allocation8 + $0xc0] sm:$0xff]  ;;  %v8463_v8 = vld [vmem:[#allocation8 + $0x1b8] sm:$0xff] }
 0x247   :  { %v6932_v5 = vld [vmem:[#allocation5 + $0xc78] sm:$0xf0]  ;;  %4004 = vmatmul.bf16.vlgmr.msrb.gmra.mxu0 %v8756_v34  ;;  %v3797_v34 = vpop.f32.mrf.mxu0 }
 0x248   :  { %v6935_v11 = vor.u32 %v8287_v2, %v6932_v5  ;;  %4029 = vmatpush.bf16.msrb.mxu2 %v6423_v9  ;;  %5108 = vmatpush.bf16.msra.mxu0 %v8415_v13  ;;  %v8413_v23 = vld [vmem:[#allocation8 + $0x28] sm:$0xff]  ;;  %v4049_v2 = vmax.f32 %v8792_v7, 0.0  ;;  %v4050_v5 = vmax.f32 %v8799_v63, 0.0  ;;  %v4051_v9 = vmax.f32 %v8806_v58, 0.0  ;;  %v8462_v7 = vld [vmem:[#allocation8 + $0x1b0] sm:$0xff] }
 0x249   :  { %4017 = vmatmul.bf16.vlgmr.msrb.gmra.mxu1 %v8760_v42  ;;  %v8421_v24 = vld [vmem:[#allocation8 + $0x68] sm:$0xff]  ;;  %v8420_v42 = vld [vmem:[#allocation8 + $0x60] sm:$0xff]  ;;  %v4064_v13 = vpack.c.bf16 %v4048_v61, %v4048_v61  ;;  %v8470_v63 = vld [vmem:[#allocation8 + $0x1f0] sm:$0xff] }
 0x24a   :  { %4042 = vmatpush.bf16.msrb.mxu3 %v6935_v11  ;;  %5121 = vmatpush.bf16.msra.mxu1 %v8423_v14  ;;  %v8429_v25 = vld [vmem:[#allocation8 + $0xa8] sm:$0xff]  ;;  %v8471_v11 = vld [vmem:[#allocation8 + $0x1f8] sm:$0xff]  ;;  %v8446_v14 = vld [vmem:[#allocation8 + $0x130] sm:$0xff]  ;;  %v4065_v4 = vpack.c.bf16 %v4049_v2, %v4049_v2 }
 0x24b   :  { %4030 = vmatmul.bf16.vlgmr.msrb.gmra.mxu2 %v8754_v33  ;;  %v8437_v27 = vld [vmem:[#allocation8 + $0xe8] sm:$0xff]  ;;  %v3798_v33 = vadd.f32 %v3797_v34, %v635_v26  ;;  %v3825_v51 = vpop.f32.mrf.mxu2  ;;  %v8479_v61 = vld [vmem:[#allocation8 + $0x238] sm:$0xff] }
 0x24c   :  { %5134 = vmatpush.bf16.msra.mxu2 %v8431_v16  ;;  %5109 = vmatpush.bf16.msra.mxu0 %v8414_v18  ;;  %v8409_v48 = vld [vmem:[#allocation8 + $0x8] sm:$0xff]  ;;  %v4066_v16 = vpack.c.bf16 %v4050_v5, %v4050_v5  ;;  %v4067_v18 = vpack.c.bf16 %v4051_v9, %v4051_v9  ;;  %v8487_v2 = vld [vmem:[#allocation8 + $0x278] sm:$0xff] }
 0x24d   :  { %4043 = vmatmul.bf16.vlgmr.msrb.gmra.mxu3 %v8758_v41  ;;  %v8436_v41 = vld [vmem:[#allocation8 + $0xe0] sm:$0xff]  ;;  %v3811_v31 = vadd.f32 %v3810_v30, %v3798_v33  ;;  %v8417_v49 = vld [vmem:[#allocation8 + $0x48] sm:$0xff]  ;;  %v3838_v53 = vpop.f32.mrf.mxu3  ;;  %v8443_v30 = vld [vmem:[#allocation8 + $0x118] sm:$0xff] }
 0x24e   :  { %5147 = vmatpush.bf16.msra.mxu3 %v8439_v17  ;;  %5122 = vmatpush.bf16.msra.mxu1 %v8422_v19  ;;  %v8425_v50 = vld [vmem:[#allocation8 + $0x88] sm:$0xff]  ;;  %v8454_v17 = vld [vmem:[#allocation8 + $0x170] sm:$0xff]  ;;  %v8448_v53 = vld [vmem:[#allocation8 + $0x140] sm:$0xff] }
 0x24f   :  { %v3824_v37 = vadd.f32 %v3823_v12, %v3811_v31  ;;  %v3799_v43 = vpop.f32.mrf.mxu0  ;;  %v8433_v52 = vld [vmem:[#allocation8 + $0xc8] sm:$0xff]  ;;  %v8459_v31 = vld [vmem:[#allocation8 + $0x198] sm:$0xff] }
 0x250   :  { %5135 = vmatpush.bf16.msra.mxu2 %v8430_v20  ;;  %5110 = vmatpush.bf16.msra.mxu0 %v8413_v23  ;;  %v8445_v58 = vld [vmem:[#allocation8 + $0x128] sm:$0xff]  ;;  %v8458_v43 = vld [vmem:[#allocation8 + $0x190] sm:$0xff]  ;;  %v8495_v5 = vld [vmem:[#allocation8 + $0x2b8] sm:$0xff] }
 0x251   :  { %v8866_v40 = vadd.f32 %v3836_v38, %v3824_v37  ;;  %v8453_v19 = vld [vmem:[#allocation8 + $0x168] sm:$0xff] }
 0x252   :  { %5148 = vmatpush.bf16.msra.mxu3 %v8438_v22  ;;  %5123 = vmatpush.bf16.msra.mxu1 %v8421_v24  ;;  %v8461_v20 = vld [vmem:[#allocation8 + $0x1a8] sm:$0xff]  ;;  %v8872_v22 = vld [vmem:[#allocation7 + $0x8] sm:$0xff] }
 0x253   :  { %v636_v23 = vperm.slane %v8872_v22, 4  ;;  %v8469_v24 = vld [vmem:[#allocation8 + $0x1e8] sm:$0xff] }
 0x254   :  { %5136 = vmatpush.bf16.msra.mxu2 %v8429_v25  ;;  %5111 = vmatpush.bf16.msra.mxu0 %v8412_v28  ;;  %v8444_v25 = vld [vmem:[#allocation8 + $0x120] sm:$0xff]  ;;  %v8441_v46 = vld [vmem:[#allocation8 + $0x108] sm:$0xff] }
 0x255   :  { %v8460_v28 = vld [vmem:[#allocation8 + $0x1a0] sm:$0xff] }
 0x256   :  { %5149 = vmatpush.bf16.msra.mxu3 %v8437_v27  ;;  %5124 = vmatpush.bf16.msra.mxu1 %v8420_v42  ;;  %v8452_v27 = vld [vmem:[#allocation8 + $0x160] sm:$0xff] }
 0x258   :  { %5137 = vmatpush.bf16.msra.mxu2 %v8428_v29  ;;  %5112 = vmatpush.bf16.msra.mxu0 %v8411_v32  ;;  %v8468_v29 = vld [vmem:[#allocation8 + $0x1e0] sm:$0xff] }
 0x25a   :  { %5150 = vmatpush.bf16.msra.mxu3 %v8436_v41  ;;  %5125 = vmatpush.bf16.msra.mxu1 %v8419_v35  ;;  %v8451_v41 = vld [vmem:[#allocation8 + $0x158] sm:$0xff] }
 0x25b   :  { %v3849_v26 = vpop.f32.mrf.mxu0  ;;  %v8467_v35 = vld [vmem:[#allocation8 + $0x1d8] sm:$0xff] }
 0x25c   :  { %5138 = vmatpush.bf16.msra.mxu2 %v8427_v15  ;;  %5113 = vmatpush.bf16.msra.mxu0 %v8410_v39  ;;  %v3850_v34 = vadd.f32 %v3849_v26, %v636_v23  ;;  %v8450_v39 = vld [vmem:[#allocation8 + $0x150] sm:$0xff]  ;;  %v8500_v23 = vld [vmem:[#allocation8 + $0x2e0] sm:$0xff]  ;;  %v8491_v26 = vld [vmem:[#allocation8 + $0x298] sm:$0xff] }
 0x25d   :  { %v3862_v42 = vpop.f32.mrf.mxu1 }
 0x25e   :  { %5151 = vmatpush.bf16.msra.mxu3 %v8435_v36  ;;  %5126 = vmatpush.bf16.msra.mxu1 %v8418_v44  ;;  %v3863_v33 = vadd.f32 %v3862_v42, %v3850_v34  ;;  %v8442_v36 = vld [vmem:[#allocation8 + $0x110] sm:$0xff] }
 0x25f   :  { %v8474_v42 = vld [vmem:[#allocation8 + $0x210] sm:$0xff] }
 0x260   :  { %5139 = vmatpush.bf16.msra.mxu2 %v8426_v45  ;;  %5114 = vmatpush.bf16.msra.mxu0 %v8409_v48  ;;  %v8466_v45 = vld [vmem:[#allocation8 + $0x1d0] sm:$0xff]  ;;  %v8457_v48 = vld [vmem:[#allocation8 + $0x188] sm:$0xff] }
 0x262   :  { %5152 = vmatpush.bf16.msra.mxu3 %v8434_v47  ;;  %5127 = vmatpush.bf16.msra.mxu1 %v8417_v49  ;;  %v8449_v47 = vld [vmem:[#allocation8 + $0x148] sm:$0xff] }
 0x263   :  { %v3851_v38 = vpop.f32.mrf.mxu0 }
 0x264   :  { %5140 = vmatpush.bf16.msra.mxu2 %v8425_v50  ;;  %5115 = vmatpush.bf16.msra.mxu0 %v8408_v54  ;;  %v8465_v50 = vld [vmem:[#allocation8 + $0x1c8] sm:$0xff]  ;;  %v8456_v54 = vld [vmem:[#allocation8 + $0x180] sm:$0xff] }
 0x265   :  { %v3875_v32 = vpop.f32.mrf.mxu2  ;;  %v3864_v44 = vpop.f32.mrf.mxu1 }
 0x266   :  { %5153 = vmatpush.bf16.msra.mxu3 %v8433_v52  ;;  %5128 = vmatpush.bf16.msra.mxu1 %v8416_v57  ;;  %v3876_v15 = vadd.f32 %v3875_v32, %v3863_v33  ;;  %v8440_v52 = vld [vmem:[#allocation8 + $0x100] sm:$0xff]  ;;  %v4052_v57 = vmax.f32 %v8815_v55, 0.0  ;;  %v8482_v33 = vld [vmem:[#allocation8 + $0x250] sm:$0xff]  ;;  %v8473_v32 = vld [vmem:[#allocation8 + $0x208] sm:$0xff] }
 0x267   :  { %5116 = vmatmul.bf16.vlgmr.msra.gmra.mxu0 %v4064_v13  ;;  %v3888_v12 = vpop.f32.mrf.mxu3  ;;  %v8488_v44 = vld [vmem:[#allocation8 + $0x280] sm:$0xff] }
 0x268   :  { %5141 = vmatpush.bf16.msra.mxu2 %v8424_v59  ;;  %5160 = vmatpush.bf16.msrb.mxu0 %v8447_v0  ;;  %v8875_v37 = vadd.f32 %v3888_v12, %v3876_v15  ;;  %v8464_v59 = vld [vmem:[#allocation8 + $0x1c0] sm:$0xff]  ;;  %v4054_v0 = vmax.f32 %v8829_v60, 0.0  ;;  %v4068_v9 = vpack.c.bf16 %v4052_v57, %v4052_v57  ;;  %v8502_v60 = vld [vmem:[#allocation8 + $0x2f0] sm:$0xff]  ;;  %v8489_v15 = vld [vmem:[#allocation8 + $0x288] sm:$0xff] }
 0x269   :  { %5129 = vmatmul.bf16.vlgmr.msra.gmra.mxu1 %v4065_v4  ;;  %v8510_v57 = vld [vmem:[#allocation8 + $0x330] sm:$0xff] }
 0x26a   :  { %5154 = vmatpush.bf16.msra.mxu3 %v8432_v62  ;;  %5173 = vmatpush.bf16.msrb.mxu1 %v8455_v6  ;;  %v4053_v62 = vmax.f32 %v8822_v56, 0.0  ;;  %v4055_v6 = vmax.f32 %v8836_v1, 0.0  ;;  %v4070_v13 = vpack.c.bf16 %v4054_v0, %v4054_v0  ;;  %v8494_v56 = vld [vmem:[#allocation8 + $0x2b0] sm:$0xff]  ;;  %v8477_v1 = vld [vmem:[#allocation8 + $0x228] sm:$0xff] }
 0x26b   :  { %5142 = vmatmul.bf16.vlgmr.msra.gmra.mxu2 %v4066_v16  ;;  %v8485_v16 = vld [vmem:[#allocation8 + $0x268] sm:$0xff] }
 0x26c   :  { %5186 = vmatpush.bf16.msrb.mxu2 %v8463_v8  ;;  %5161 = vmatpush.bf16.msrb.mxu0 %v8446_v14  ;;  %v8503_v8 = vld [vmem:[#allocation8 + $0x2f8] sm:$0xff]  ;;  %v4069_v55 = vpack.c.bf16 %v4053_v62, %v4053_v62  ;;  %v8486_v14 = vld [vmem:[#allocation8 + $0x270] sm:$0xff]  ;;  %v4071_v4 = vpack.c.bf16 %v4055_v6, %v4055_v6  ;;  %v8517_v0 = vld [vmem:[#allocation8 + $0x368] sm:$0xff]  ;;  %v637_v6 = vperm.slane %v8872_v22, 5 }
 0x26d   :  { %5155 = vmatmul.bf16.vlgmr.msra.gmra.mxu3 %v4067_v18  ;;  %v3877_v49 = vpop.f32.mrf.mxu2  ;;  %v8476_v18 = vld [vmem:[#allocation8 + $0x220] sm:$0xff]  ;;  %v8526_v62 = vld [vmem:[#allocation8 + $0x3b0] sm:$0xff] }
 0x26e   :  { %5199 = vmatpush.bf16.msrb.mxu3 %v8471_v11  ;;  %5174 = vmatpush.bf16.msrb.mxu1 %v8454_v17  ;;  %v8478_v11 = vld [vmem:[#allocation8 + $0x230] sm:$0xff]  ;;  %v8493_v17 = vld [vmem:[#allocation8 + $0x2a8] sm:$0xff]  ;;  %v4058_v49 = vmax.f32 %v8859_v3, 0.0 }
 0x26f   :  { %v3890_v51 = vpop.f32.mrf.mxu3  ;;  %v8509_v3 = vld [vmem:[#allocation8 + $0x328] sm:$0xff] }
 0x270   :  { %5187 = vmatpush.bf16.msrb.mxu2 %v8462_v7  ;;  %5162 = vmatpush.bf16.msrb.mxu0 %v8445_v58  ;;  %v8501_v7 = vld [vmem:[#allocation8 + $0x2e8] sm:$0xff]  ;;  %v8484_v58 = vld [vmem:[#allocation8 + $0x260] sm:$0xff]  ;;  %v8519_v51 = vld [vmem:[#allocation8 + $0x378] sm:$0xff] }
 0x272   :  { %5200 = vmatpush.bf16.msrb.mxu3 %v8470_v63  ;;  %5175 = vmatpush.bf16.msrb.mxu1 %v8453_v19  ;;  %v8492_v19 = vld [vmem:[#allocation8 + $0x2a0] sm:$0xff] }
 0x274   :  { %5188 = vmatpush.bf16.msrb.mxu2 %v8461_v20  ;;  %5163 = vmatpush.bf16.msrb.mxu0 %v8444_v25  ;;  %v8483_v25 = vld [vmem:[#allocation8 + $0x258] sm:$0xff] }
 0x276   :  { %5201 = vmatpush.bf16.msrb.mxu3 %v8469_v24  ;;  %5176 = vmatpush.bf16.msrb.mxu1 %v8452_v27  ;;  %v8475_v24 = vld [vmem:[#allocation8 + $0x218] sm:$0xff] }
 0x278   :  { %5189 = vmatpush.bf16.msrb.mxu2 %v8460_v28  ;;  %5164 = vmatpush.bf16.msrb.mxu0 %v8443_v30  ;;  %v8499_v28 = vld [vmem:[#allocation8 + $0x2d8] sm:$0xff]  ;;  %v8490_v30 = vld [vmem:[#allocation8 + $0x290] sm:$0xff] }
 0x27a   :  { %5202 = vmatpush.bf16.msrb.mxu3 %v8468_v29  ;;  %5177 = vmatpush.bf16.msrb.mxu1 %v8451_v41 }
 0x27c   :  { %5190 = vmatpush.bf16.msrb.mxu2 %v8459_v31  ;;  %5165 = vmatpush.bf16.msrb.mxu0 %v8442_v36  ;;  %v8498_v31 = vld [vmem:[#allocation8 + $0x2d0] sm:$0xff]  ;;  %v8497_v36 = vld [vmem:[#allocation8 + $0x2c8] sm:$0xff] }
 0x27e   :  { %5203 = vmatpush.bf16.msrb.mxu3 %v8467_v35  ;;  %5178 = vmatpush.bf16.msrb.mxu1 %v8450_v39  ;;  %v8881_v63 = vpop.f32.mrf.mxu0  ;;  %v8481_v35 = vld [vmem:[#allocation8 + $0x248] sm:$0xff]  ;;  %v8472_v39 = vld [vmem:[#allocation8 + $0x200] sm:$0xff] }
 0x280   :  { %5191 = vmatpush.bf16.msrb.mxu2 %v8458_v43  ;;  %5166 = vmatpush.bf16.msrb.mxu0 %v8441_v46  ;;  %v8883_v20 = vpop.f32.mrf.mxu1  ;;  %v8480_v43 = vld [vmem:[#allocation8 + $0x240] sm:$0xff]  ;;  %v4057_v46 = vmax.f32 %v8852_v21, 0.0 }
 0x282   :  { %5204 = vmatpush.bf16.msrb.mxu3 %v8466_v45  ;;  %5179 = vmatpush.bf16.msrb.mxu1 %v8449_v47  ;;  %v4056_v45 = vmax.f32 %v8845_v10, 0.0  ;;  %v8496_v47 = vld [vmem:[#allocation8 + $0x2c0] sm:$0xff]  ;;  %v8535_v10 = vld [vmem:[#allocation8 + $0x3f8] sm:$0xff] }
 0x284   :  { %5192 = vmatpush.bf16.msrb.mxu2 %v8457_v48  ;;  %5167 = vmatpush.bf16.msrb.mxu0 %v8440_v52  ;;  %v8511_v48 = vld [vmem:[#allocation8 + $0x338] sm:$0xff] }
 0x285   :  { %v8527_v52 = vld [vmem:[#allocation8 + $0x3b8] sm:$0xff] }
 0x286   :  { %5205 = vmatpush.bf16.msrb.mxu3 %v8465_v50  ;;  %5180 = vmatpush.bf16.msrb.mxu1 %v8448_v53  ;;  %v3903_v29 = vpop.f32.mrf.mxu0  ;;  %v4059_v50 = vmax.f32 %v8866_v40, 0.0  ;;  %v4072_v53 = vpack.c.bf16 %v4056_v45, %v4056_v45  ;;  %v8534_v40 = vld [vmem:[#allocation8 + $0x3f0] sm:$0xff] }
 0x287   :  { %5168 = vmatmul.bf16.vlgmr.msrb.gmra.mxu0 %v4068_v9 }
 0x288   :  { %5193 = vmatpush.bf16.msrb.mxu2 %v8456_v54  ;;  %5212 = vmatpush.bf16.msra.mxu0 %v8479_v61  ;;  %v8885_v27 = vpop.f32.mrf.mxu2  ;;  %v3916_v41 = vpop.f32.mrf.mxu1  ;;  %v4073_v54 = vpack.c.bf16 %v4057_v46, %v4057_v46  ;;  %v4075_v21 = vpack.c.bf16 %v4059_v50, %v4059_v50  ;;  %v8518_v61 = vld [vmem:[#allocation8 + $0x370] sm:$0xff] }
 0x289   :  { %5181 = vmatmul.bf16.vlgmr.msrb.gmra.mxu1 %v4069_v55  ;;  %v8516_v55 = vld [vmem:[#allocation8 + $0x360] sm:$0xff]  ;;  %v8530_v41 = vld [vmem:[#allocation8 + $0x3d0] sm:$0xff] }
 0x28a   :  { %5206 = vmatpush.bf16.msrb.mxu3 %v8464_v59  ;;  %5225 = vmatpush.bf16.msra.mxu1 %v8487_v2  ;;  %v8887_v34 = vpop.f32.mrf.mxu3  ;;  %v4074_v59 = vpack.c.bf16 %v4058_v49, %v4058_v49  ;;  %v8525_v2 = vld [vmem:[#allocation8 + $0x3a8] sm:$0xff] }
 0x28b   :  { %5194 = vmatmul.bf16.vlgmr.msrb.gmra.mxu2 %v4070_v13  ;;  %v8524_v13 = vld [vmem:[#allocation8 + $0x3a0] sm:$0xff] }
 0x28c   :  { %5238 = vmatpush.bf16.msra.mxu2 %v8495_v5  ;;  %5213 = vmatpush.bf16.msra.mxu0 %v8478_v11  ;;  %v638_v5 = vperm.slane %v8872_v22, 6  ;;  %v8533_v11 = vld [vmem:[#allocation8 + $0x3e8] sm:$0xff] }
 0x28d   :  { %5207 = vmatmul.bf16.vlgmr.msrb.gmra.mxu3 %v4071_v4  ;;  %v3902_v4 = vadd.f32 %v8881_v63, %v637_v6  ;;  %v8514_v63 = vld [vmem:[#allocation8 + $0x350] sm:$0xff] }
 0x28e   :  { %5251 = vmatpush.bf16.msra.mxu3 %v8503_v8  ;;  %5226 = vmatpush.bf16.msra.mxu1 %v8486_v14  ;;  %v8508_v8 = vld [vmem:[#allocation8 + $0x320] sm:$0xff] }
 0x290   :  { %5239 = vmatpush.bf16.msra.mxu2 %v8494_v56  ;;  %5214 = vmatpush.bf16.msra.mxu0 %v8477_v1  ;;  %v3929_v12 = vpop.f32.mrf.mxu2 }
 0x292   :  { %5252 = vmatpush.bf16.msra.mxu3 %v8502_v60  ;;  %5227 = vmatpush.bf16.msra.mxu1 %v8485_v16  ;;  %v3942_v38 = vpop.f32.mrf.mxu3  ;;  %v8507_v60 = vld [vmem:[#allocation8 + $0x318] sm:$0xff]  ;;  %v8532_v16 = vld [vmem:[#allocation8 + $0x3e0] sm:$0xff] }
 0x293   :  { %v8529_v38 = vld [vmem:[#allocation8 + $0x3c8] sm:$0xff] }
 0x294   :  { %5240 = vmatpush.bf16.msra.mxu2 %v8493_v17  ;;  %5215 = vmatpush.bf16.msra.mxu0 %v8476_v18  ;;  %v8515_v17 = vld [vmem:[#allocation8 + $0x358] sm:$0xff] }
 0x296   :  { %5253 = vmatpush.bf16.msra.mxu3 %v8501_v7  ;;  %5228 = vmatpush.bf16.msra.mxu1 %v8484_v58  ;;  %v8523_v7 = vld [vmem:[#allocation8 + $0x398] sm:$0xff]  ;;  %v3915_v58 = vadd.f32 %v8883_v20, %v3902_v4  ;;  %v8513_v20 = vld [vmem:[#allocation8 + $0x348] sm:$0xff] }
 0x298   :  { %5241 = vmatpush.bf16.msra.mxu2 %v8492_v19  ;;  %5216 = vmatpush.bf16.msra.mxu0 %v8475_v24  ;;  %v3928_v29 = vadd.f32 %v8885_v27, %v3915_v58  ;;  %v4060_v27 = vmax.f32 %v8875_v37, 0.0 }
 0x29a   :  { %5254 = vmatpush.bf16.msra.mxu3 %v8500_v23  ;;  %5229 = vmatpush.bf16.msra.mxu1 %v8483_v25  ;;  %v8506_v23 = vld [vmem:[#allocation8 + $0x310] sm:$0xff]  ;;  %v4076_v46 = vpack.c.bf16 %v4060_v27, %v4060_v27 }
 0x29c   :  { %5242 = vmatpush.bf16.msra.mxu2 %v8491_v26  ;;  %5217 = vmatpush.bf16.msra.mxu0 %v8474_v42  ;;  %v8531_v26 = vld [vmem:[#allocation8 + $0x3d8] sm:$0xff] }
 0x29e   :  { %5255 = vmatpush.bf16.msra.mxu3 %v8499_v28  ;;  %5230 = vmatpush.bf16.msra.mxu1 %v8482_v33  ;;  %v8522_v28 = vld [vmem:[#allocation8 + $0x390] sm:$0xff] }
 0x2a0   :  { %5243 = vmatpush.bf16.msra.mxu2 %v8490_v30  ;;  %5218 = vmatpush.bf16.msra.mxu0 %v8473_v32  ;;  %v8505_v30 = vld [vmem:[#allocation8 + $0x308] sm:$0xff] }
 0x2a1   :  { %v3953_v9 = vpop.f32.mrf.mxu0 }
 0x2a2   :  { %5256 = vmatpush.bf16.msra.mxu3 %v8498_v31  ;;  %5231 = vmatpush.bf16.msra.mxu1 %v8481_v35  ;;  %v3954_v14 = vadd.f32 %v3953_v9, %v638_v5  ;;  %v8521_v31 = vld [vmem:[#allocation8 + $0x388] sm:$0xff]  ;;  %v3941_v35 = vadd.f32 %v8887_v34, %v3928_v29  ;;  %v8528_v34 = vld [vmem:[#allocation8 + $0x3c0] sm:$0xff] }
 0x2a3   :  { %v3966_v56 = vpop.f32.mrf.mxu1 }
 0x2a4   :  { %5244 = vmatpush.bf16.msra.mxu2 %v8489_v15  ;;  %5219 = vmatpush.bf16.msra.mxu0 %v8472_v39  ;;  %v3967_v1 = vadd.f32 %v3966_v56, %v3954_v14  ;;  %v8512_v39 = vld [vmem:[#allocation8 + $0x340] sm:$0xff] }
 0x2a6   :  { %5257 = vmatpush.bf16.msra.mxu3 %v8497_v36  ;;  %5232 = vmatpush.bf16.msra.mxu1 %v8480_v43  ;;  %v8504_v36 = vld [vmem:[#allocation8 + $0x300] sm:$0xff] }
 0x2a7   :  { %5220 = vmatmul.bf16.vlgmr.msra.gmra.mxu0 %v4072_v53  ;;  %v8520_v43 = vld [vmem:[#allocation8 + $0x380] sm:$0xff] }
 0x2a8   :  { %5245 = vmatpush.bf16.msra.mxu2 %v8488_v44  ;;  %5264 = vmatpush.bf16.msrb.mxu0 %v8511_v48  ;;  %v4061_v44 = vmax.f32 %v3941_v35, 0.0  ;;  %v639_v48 = vperm.slane %v8872_v22, 7 }
 0x2a9   :  { %5233 = vmatmul.bf16.vlgmr.msra.gmra.mxu1 %v4073_v54  ;;  %v3955_v25 = vpop.f32.mrf.mxu0 }
 0x2aa   :  { %5258 = vmatpush.bf16.msra.mxu3 %v8496_v47  ;;  %5277 = vmatpush.bf16.msrb.mxu1 %v8519_v51  ;;  %v4077_v47 = vpack.c.bf16 %v4061_v44, %v4061_v44 }
 0x2ab   :  { %5246 = vmatmul.bf16.vlgmr.msra.gmra.mxu2 %v4074_v59  ;;  %v3979_v18 = vpop.f32.mrf.mxu2  ;;  %v3968_v42 = vpop.f32.mrf.mxu1 }
 0x2ac   :  { %5290 = vmatpush.bf16.msrb.mxu2 %v8527_v52  ;;  %5265 = vmatpush.bf16.msrb.mxu0 %v8510_v57  ;;  %v3980_v24 = vadd.f32 %v3979_v18, %v3967_v1 }
 0x2ad   :  { %5259 = vmatmul.bf16.vlgmr.msra.gmra.mxu3 %v4075_v21  ;;  %v3992_v19 = vpop.f32.mrf.mxu3 }
 0x2ae   :  { %5303 = vmatpush.bf16.msrb.mxu3 %v8535_v10  ;;  %5278 = vmatpush.bf16.msrb.mxu1 %v8518_v61  ;;  %v3993_v33 = vadd.f32 %v3992_v19, %v3980_v24 }
 0x2b0   :  { %5291 = vmatpush.bf16.msrb.mxu2 %v8526_v62  ;;  %5266 = vmatpush.bf16.msrb.mxu0 %v8509_v3  ;;  %v4062_v12 = vmax.f32 %v3993_v33, 0.0 }
 0x2b2   :  { %5304 = vmatpush.bf16.msrb.mxu3 %v8534_v40  ;;  %5279 = vmatpush.bf16.msrb.mxu1 %v8517_v0  ;;  %v4078_v45 = vpack.c.bf16 %v4062_v12, %v4062_v12  ;;  %v8545_v40 = vld [vmem:[#allocation10] ss:$0 sm:$0xff] }
 0x2b3   :  { %v3981_v32 = vpop.f32.mrf.mxu2 }
 0x2b4   :  { %5292 = vmatpush.bf16.msrb.mxu2 %v8525_v2  ;;  %5267 = vmatpush.bf16.msrb.mxu0 %v8508_v8 }
 0x2b5   :  { %v3994_v15 = vpop.f32.mrf.mxu3 }
 0x2b6   :  { %5305 = vmatpush.bf16.msrb.mxu3 %v8533_v11  ;;  %5280 = vmatpush.bf16.msrb.mxu1 %v8516_v55 }
 0x2b8   :  { %5293 = vmatpush.bf16.msrb.mxu2 %v8524_v13  ;;  %5268 = vmatpush.bf16.msrb.mxu0 %v8507_v60 }
 0x2ba   :  { %5306 = vmatpush.bf16.msrb.mxu3 %v8532_v16  ;;  %5281 = vmatpush.bf16.msrb.mxu1 %v8515_v17 }
 0x2bc   :  { %5294 = vmatpush.bf16.msrb.mxu2 %v8523_v7  ;;  %5269 = vmatpush.bf16.msrb.mxu0 %v8506_v23 }
 0x2be   :  { %5307 = vmatpush.bf16.msrb.mxu3 %v8531_v26  ;;  %5282 = vmatpush.bf16.msrb.mxu1 %v8514_v63 }
 0x2c0   :  { %5295 = vmatpush.bf16.msrb.mxu2 %v8522_v28  ;;  %5270 = vmatpush.bf16.msrb.mxu0 %v8505_v30 }
 0x2c2   :  { %5308 = vmatpush.bf16.msrb.mxu3 %v8530_v41  ;;  %5283 = vmatpush.bf16.msrb.mxu1 %v8513_v20 }
 0x2c4   :  { %5296 = vmatpush.bf16.msrb.mxu2 %v8521_v31  ;;  %5271 = vmatpush.bf16.msrb.mxu0 %v8504_v36  ;;  %v4005_v37 = vpop.f32.mrf.mxu0 }
 0x2c5   :  { %v4006_v49 = vadd.f32 %v4005_v37, %v639_v48 }
 0x2c6   :  { %5309 = vmatpush.bf16.msrb.mxu3 %v8529_v38  ;;  %5284 = vmatpush.bf16.msrb.mxu1 %v8512_v39  ;;  %v4018_v50 = vpop.f32.mrf.mxu1 }
 0x2c7   :  { %5272 = vmatmul.bf16.vlgmr.msrb.gmra.mxu0 %v4076_v46  ;;  %v4019_v51 = vadd.f32 %v4018_v50, %v4006_v49 }
 0x2c8   :  { %5297 = vmatpush.bf16.msrb.mxu2 %v8520_v43 }
 0x2c9   :  { %5285 = vmatmul.bf16.vlgmr.msrb.gmra.mxu1 %v4077_v47 }
 0x2ca   :  { %5310 = vmatpush.bf16.msrb.mxu3 %v8528_v34 }
 0x2cb   :  { %5298 = vmatmul.bf16.vlgmr.msrb.gmra.mxu2 %v4078_v45 }
 0x2cc   :  { %v4007_v57 = vpop.f32.mrf.mxu0 }
 0x2ce   :  { %v4031_v52 = vpop.f32.mrf.mxu2  ;;  %v4020_v10 = vpop.f32.mrf.mxu1 }
 0x2cf   :  { %v4032_v53 = vadd.f32 %v4031_v52, %v4019_v51 }
 0x2d0   :  { %v4044_v54 = vpop.f32.mrf.mxu3 }
 0x2d1   :  { %v4045_v59 = vadd.f32 %v4044_v54, %v4032_v53 }
 0x2d3   :  { %v4063_v21 = vmax.f32 %v4045_v59, 0.0 }
 0x2d5   :  { %v4079_v61 = vpack.c.bf16 %v4063_v21, %v4063_v21 }
 0x2d6   :  { %v4033_v62 = vpop.f32.mrf.mxu2 }
 0x2d7   :  { %5311 = vmatmul.bf16.vlgmr.msrb.gmra.mxu3 %v4079_v61 }
 0x2d8   :  { %v4046_v3 = vpop.f32.mrf.mxu3 }
 0x2e4   :  { %v5117_v0 = vpop.f32.mrf.mxu0 }
 0x2e5   :  { %v5118_v2 = vadd.f32 %v8545_v40, %v5117_v0 }
 0x2e6   :  { %v5130_v5 = vpop.f32.mrf.mxu1 }
 0x2e7   :  { %v5131_v22 = vadd.f32 %v5130_v5, %v5118_v2 }
 0x2ec   :  { %v5119_v11 = vpop.f32.mrf.mxu0 }
 0x2ee   :  { %v5143_v6 = vpop.f32.mrf.mxu2  ;;  %v5132_v55 = vpop.f32.mrf.mxu1 }
 0x2ef   :  { %v5144_v8 = vadd.f32 %v5143_v6, %v5131_v22 }
 0x2f0   :  { %v5156_v9 = vpop.f32.mrf.mxu3 }
 0x2f1   :  { %v5157_v13 = vadd.f32 %v5156_v9, %v5144_v8 }
 0x2f6   :  { %v5145_v14 = vpop.f32.mrf.mxu2 }
 0x2f8   :  { %v5158_v56 = vpop.f32.mrf.mxu3 }
 0x304   :  { %v5169_v4 = vpop.f32.mrf.mxu0 }
 0x305   :  { %v5170_v60 = vadd.f32 %v5169_v4, %v5157_v13 }
 0x306   :  { %v5182_v1 = vpop.f32.mrf.mxu1 }
 0x307   :  { %v5183_v16 = vadd.f32 %v5182_v1, %v5170_v60 }
 0x30c   :  { %v5171_v18 = vpop.f32.mrf.mxu0 }
 0x30e   :  { %v5195_v17 = vpop.f32.mrf.mxu2  ;;  %v5184_v58 = vpop.f32.mrf.mxu1 }
 0x30f   :  { %v5196_v20 = vadd.f32 %v5195_v17, %v5183_v16 }
 0x310   :  { %v5208_v7 = vpop.f32.mrf.mxu3 }
 0x311   :  { %v5209_v31 = vadd.f32 %v5208_v7, %v5196_v20 }
 0x316   :  { %v5197_v19 = vpop.f32.mrf.mxu2 }
 0x318   :  { %v5210_v23 = vpop.f32.mrf.mxu3 }
 0x324   :  { %v5221_v24 = vpop.f32.mrf.mxu0 }
 0x325   :  { %v5222_v15 = vadd.f32 %v5221_v24, %v5209_v31 }
 0x326   :  { %v5234_v25 = vpop.f32.mrf.mxu1 }
 0x327   :  { %v5235_v36 = vadd.f32 %v5234_v25, %v5222_v15 }
 0x32c   :  { %v5223_v28 = vpop.f32.mrf.mxu0 }
 0x32e   :  { %v5247_v26 = vpop.f32.mrf.mxu2  ;;  %v5236_v42 = vpop.f32.mrf.mxu1 }
 0x32f   :  { %v5248_v38 = vadd.f32 %v5247_v26, %v5235_v36 }
 0x330   :  { %v5260_v63 = vpop.f32.mrf.mxu3 }
 0x331   :  { %v5261_v39 = vadd.f32 %v5260_v63, %v5248_v38 }
 0x336   :  { %v5249_v29 = vpop.f32.mrf.mxu2 }
 0x338   :  { %v5262_v33 = vpop.f32.mrf.mxu3 }
 0x344   :  { %v5273_v30 = vpop.f32.mrf.mxu0 }
 0x345   :  { %v5274_v43 = vadd.f32 %v5273_v30, %v5261_v39 }
 0x346   :  { %v5286_v41 = vpop.f32.mrf.mxu1 }
 0x347   :  { %v5287_v44 = vadd.f32 %v5286_v41, %v5274_v43 }
 0x34c   :  { %v5275_v35 = vpop.f32.mrf.mxu0 }
 0x34e   :  { %v5299_v32 = vpop.f32.mrf.mxu2  ;;  %v5288_v12 = vpop.f32.mrf.mxu1 }
 0x34f   :  { %v5300_v45 = vadd.f32 %v5299_v32, %v5287_v44 }
 0x356   :  { %v5301_v27 = vpop.f32.mrf.mxu2 }
 0x35a   :  { %v5312_v46 = vpop.f32.mrf.mxu3 }
 0x35b   :  { %v5313_v34 = vadd.f32 %v5312_v46, %v5300_v45 }
 0x35d   :  { %5316 = vst [vmem:[#allocation11] sm:$0x3] %v5313_v34 }
 0x35e   :  { %5327 = dma.vmem_to_hbm [thread:$0]  %s5323_s4, 32, %s5325_s20, [#allocation4]  }
 0x362   :  { %v5314_v47 = vpop.f32.mrf.mxu3 }
 0x363   :  { %8698 = dma.done.wait [#allocation4], 32  }
 0x364   :  { %8699 = vsyncadd [#allocation4], 4294967264 }
 0x365   :  { %5332 = vsyncpa [#allocation3], 1 }
 0x366   :  { %5333 = vsyncpa [#allocation6], 1 }
 0x367   :  { %5334 = vsyncpa [#allocation9], 1 }
 0x368   :  { %5335 = vsyncpa [#allocation4], 1 }

</bundles_post_ra>
